<compile_context>
chip_gen: v7x
topology: tpu7x:2x2x1
jax: 0.10.0
libtpu: 0.0.40
codegen_flags: <defaults>
</compile_context>

<pallas_src>
import functools
import math

import jax
import jax.numpy as jnp
from jax.experimental import pallas as pl
from jax.experimental.pallas import tpu as pltpu

_BN_EPS = 1e-5
_VMEM_LIMIT = 32 * 1024 * 1024   # explicit scoped-VMEM limit, safe on v5e/v6e/v7x


# ----------------------------------------------------------------- helpers --

def _pick_h_tile(h, target=8):
    """Largest divisor of `h` that is <= target (output rows per conv tile)."""
    for t in range(min(target, h), 0, -1):
        if h % t == 0:
            return t
    return h


def _pick_row_tile(m, target=256):
    """Largest divisor of `m` <= target that keeps the sublane dim aligned."""
    for t in range(min(target, m), 0, -1):
        if m % t == 0 and (t % 8 == 0 or t == m):
            return t
    return m


# ----------------------------------------------------------------- kernels --

def _conv3x3_stats_kernel(x_ref, w_ref, b_ref, y_ref, sum_ref, ssq_ref, *,
                          tile_h, width, cin, cout):
    """3x3 / stride-1 / pad-1 conv on one halo'd spatial tile + BN stat partials.

    x_ref   : (1, tile_h+2, width+2, cin)  bf16  padded input tile (with halo rows)
    w_ref   : (9, cin, cout)               bf16  taps ordered t = dh*3 + dw
    b_ref   : (1, cout)                    f32   conv bias (zeros when bias=False)
    y_ref   : (1, tile_h*width, cout)      f32   conv output rows of this tile
    sum_ref : (1, 1, cout)                 f32   per-tile sum(y)    (for BN mean)
    ssq_ref : (1, 1, cout)                 f32   per-tile sum(y*y)  (for BN var)
    """
    x = x_ref[0]                                         # (tile_h+2, width+2, cin)
    acc = jnp.zeros((tile_h * width, cout), jnp.float32)
    # 9 shifted-tap MXU matmuls accumulated in f32 (no im2col materialization).
    for t in range(9):
        dh, dw = divmod(t, 3)
        xt = x[dh:dh + tile_h, dw:dw + width, :].reshape(tile_h * width, cin)
        acc = acc + jnp.dot(xt, w_ref[t], preferred_element_type=jnp.float32)
    y = acc + b_ref[...]                                 # (tile_h*width, cout)
    y_ref[...] = y[None]
    # Training-mode BatchNorm statistics, reduced per tile; the tiny cross-tile
    # reduction happens in the wrapper (keeps the grid fully "parallel").
    sum_ref[...] = jnp.sum(y, axis=0, keepdims=True)[None]
    ssq_ref[...] = jnp.sum(y * y, axis=0, keepdims=True)[None]


def _bn_relu_kernel(y_ref, s_ref, q_ref, g_ref, b_ref, o_ref, *, count):
    """Training-mode BatchNorm (from precomputed sum / sum-sq) + ReLU, tiled over rows."""
    inv_n = 1.0 / count
    mean = s_ref[...] * inv_n                            # (1, C)
    var = q_ref[...] * inv_n - mean * mean               # biased variance (PyTorch)
    scale = g_ref[...] * jax.lax.rsqrt(var + _BN_EPS)    # rsqrt -> EUP slot
    shift = b_ref[...] - mean * scale
    o_ref[...] = jnp.maximum(y_ref[...] * scale + shift, 0.0).astype(o_ref.dtype)


# ---------------------------------------------------------------- wrappers --

def conv3x3_with_stats(x_nhwc, w_oihw, bias, *, h_tile=8):
    """3x3 conv (stride 1, pad 1) fused with BN batch-statistic accumulation.

    Returns (y_flat (N*H*W, Cout) f32, ch_sum (1, Cout) f32, ch_ssq (1, Cout) f32).
    """
    n, h, w, cin = x_nhwc.shape
    cout = w_oihw.shape[0]
    th = _pick_h_tile(h, h_tile)
    nt = h // th
    t_tiles = n * nt

    # bf16 operands for the MXU; accumulation stays f32 inside the kernel.
    xp = jnp.pad(x_nhwc.astype(jnp.bfloat16), ((0, 0), (1, 1), (1, 1), (0, 0)))
    # Overlapping halo tiles along H (duplication factor (th+2)/th; none if th==H).
    tiles = jnp.stack([xp[:, i * th:i * th + th + 2] for i in range(nt)], axis=1)
    tiles = tiles.reshape(t_tiles, th + 2, w + 2, cin)

    # PyTorch OIHW -> (tap, cin, cout), tap index t = dh*3 + dw.
    w_taps = jnp.transpose(w_oihw, (2, 3, 1, 0)).reshape(9, cin, cout)
    w_taps = w_taps.astype(jnp.bfloat16)
    b_vec = jnp.zeros((cout,), jnp.float32) if bias is None else bias.astype(jnp.float32)
    b_vec = b_vec.reshape(1, cout)

    kernel = functools.partial(_conv3x3_stats_kernel,
                               tile_h=th, width=w, cin=cin, cout=cout)
    y, s_part, q_part = pl.pallas_call(
        kernel,
        out_shape=(
            jax.ShapeDtypeStruct((t_tiles, th * w, cout), jnp.float32),
            jax.ShapeDtypeStruct((t_tiles, 1, cout), jnp.float32),
            jax.ShapeDtypeStruct((t_tiles, 1, cout), jnp.float32),
        ),
        grid=(t_tiles,),
        in_specs=[
            pl.BlockSpec((1, th + 2, w + 2, cin), lambda i: (i, 0, 0, 0)),
            pl.BlockSpec((9, cin, cout), lambda i: (0, 0, 0)),   # weights stay resident
            pl.BlockSpec((1, cout), lambda i: (0, 0)),
        ],
        out_specs=(
            pl.BlockSpec((1, th * w, cout), lambda i: (i, 0, 0)),
            pl.BlockSpec((1, 1, cout), lambda i: (i, 0, 0)),
            pl.BlockSpec((1, 1, cout), lambda i: (i, 0, 0)),
        ),
        compiler_params=pltpu.CompilerParams(
            dimension_semantics=("parallel",),     # tiles independent -> megacore-shardable
            vmem_limit_bytes=_VMEM_LIMIT,
        ),
    )(tiles, w_taps, b_vec)

    # Tiny cross-tile reductions (t_tiles x cout elements) for the BN statistics.
    ch_sum = jnp.sum(s_part, axis=0)               # (1, cout)
    ch_ssq = jnp.sum(q_part, axis=0)               # (1, cout)
    return y.reshape(n * h * w, cout), ch_sum, ch_ssq


def bn_relu_apply(y_flat, ch_sum, ch_ssq, gamma, beta, *, count, out_dtype,
                  row_tile=256):
    """Training-mode BatchNorm + ReLU over flattened (M, C) rows, tiled over M.

    row_tile=256 exercises the pipelined grid at demo sizes; raise to 512-1024
    rows for production-sized inputs (memory-bound roofline sweet spot).
    """
    m, c = y_flat.shape
    tm = _pick_row_tile(m, row_tile)
    kernel = functools.partial(_bn_relu_kernel, count=float(count))
    return pl.pallas_call(
        kernel,
        out_shape=jax.ShapeDtypeStruct((m, c), out_dtype),
        grid=(m // tm,),
        in_specs=[
            pl.BlockSpec((tm, c), lambda i: (i, 0)),
            pl.BlockSpec((1, c), lambda i: (0, 0)),
            pl.BlockSpec((1, c), lambda i: (0, 0)),
            pl.BlockSpec((1, c), lambda i: (0, 0)),
            pl.BlockSpec((1, c), lambda i: (0, 0)),
        ],
        out_specs=pl.BlockSpec((tm, c), lambda i: (i, 0)),
        compiler_params=pltpu.CompilerParams(
            dimension_semantics=("parallel",),
            vmem_limit_bytes=_VMEM_LIMIT,
        ),
    )(y_flat, ch_sum, ch_ssq,
      gamma.reshape(1, c).astype(jnp.float32),
      beta.reshape(1, c).astype(jnp.float32))


# ----------------------------------------------------------------- forward --

def double_conv_forward(params, x_nchw, *, h_tile=8):
    """Forward of PyTorch `double_conv` (training-mode BatchNorm semantics)."""
    # TODO(synk): BatchNorm running_mean/running_var buffers are not updated
    # (PyTorch side effect); the returned tensor matches training-mode forward.
    x = jnp.transpose(x_nchw, (0, 2, 3, 1)).astype(jnp.float32)    # NCHW -> NHWC
    n, h, w, _ = x.shape
    count = n * h * w

    # Conv(bias=False) -> BN -> ReLU   (inter-layer activation handed off in bf16)
    y1, s1, q1 = conv3x3_with_stats(x, params["w1"], None, h_tile=h_tile)
    a1 = bn_relu_apply(y1, s1, q1, params["g1"], params["beta1"],
                       count=count, out_dtype=jnp.bfloat16)
    a1 = a1.reshape(n, h, w, -1)

    # Conv(bias=True) -> BN -> ReLU
    y2, s2, q2 = conv3x3_with_stats(a1, params["w2"], params["b2"], h_tile=h_tile)
    a2 = bn_relu_apply(y2, s2, q2, params["g2"], params["beta2"],
                       count=count, out_dtype=jnp.float32)
    a2 = a2.reshape(n, h, w, -1)
    return jnp.transpose(a2, (0, 3, 1, 2))                          # NHWC -> NCHW


# ------------------------------------------------------------------ params --

def init_double_conv_params(key, input_dim, output_dim):
    k1, k2, k3, k4, k5 = jax.random.split(key, 5)
    return dict(
        # Conv weights kept in PyTorch OIHW layout.
        w1=jax.random.normal(k1, (output_dim, input_dim, 3, 3), jnp.float32)
        / math.sqrt(9 * input_dim),
        g1=1.0 + 0.1 * jax.random.normal(k2, (output_dim,), jnp.float32),
        beta1=0.1 * jax.random.normal(k3, (output_dim,), jnp.float32),
        w2=jax.random.normal(k4, (output_dim, output_dim, 3, 3), jnp.float32)
        / math.sqrt(9 * output_dim),
        b2=0.1 * jax.random.normal(k5, (output_dim,), jnp.float32),
        g2=jnp.ones((output_dim,), jnp.float32),
        beta2=jnp.zeros((output_dim,), jnp.float32),
    )


# --------------------------------------------------------------- reference --

def reference_double_conv(params, x_nchw):
    """Pure-JAX f32 reference with PyTorch training-mode semantics."""
    def conv(x, w_oihw, b):
        y = jax.lax.conv_general_dilated(
            x, w_oihw, window_strides=(1, 1), padding=((1, 1), (1, 1)),
            dimension_numbers=("NCHW", "OIHW", "NCHW"))
        return y if b is None else y + b[None, :, None, None]

    def bn_relu(x, g, b):
        mean = jnp.mean(x, axis=(0, 2, 3), keepdims=True)
        var = jnp.mean((x - mean) ** 2, axis=(0, 2, 3), keepdims=True)
        xn = (x - mean) * jax.lax.rsqrt(var + _BN_EPS)
        return jnp.maximum(xn * g[None, :, None, None] + b[None, :, None, None], 0.0)

    x = bn_relu(conv(x_nchw, params["w1"], None), params["g1"], params["beta1"])
    x = bn_relu(conv(x, params["w2"], params["b2"]), params["g2"], params["beta2"])
    return x


# -------------------------------------------------------------------- main --

if __name__ == "__main__":
    key = jax.random.PRNGKey(0)
    k_param, k_x = jax.random.split(key)

    input_dim, output_dim = 4, 32
    params = init_double_conv_params(k_param, input_dim, output_dim)
    x = jax.random.normal(k_x, (2, input_dim, 16, 16), jnp.float32)   # NCHW, like PyTorch

    fwd = jax.jit(double_conv_forward)
    y = jax.block_until_ready(fwd(params, x))

    assert y.shape == (2, output_dim, 16, 16), y.shape
    assert bool(jnp.all(jnp.isfinite(y)))

    # Numerical sanity check vs. a pure-JAX f32 reference (kernel uses bf16 MXU
    # operands and a bf16 inter-layer hand-off, so the tolerance is loose).
    y_ref = reference_double_conv(params, x)
    max_err = float(jnp.max(jnp.abs(y - y_ref)))
    assert max_err < 0.25, f"max abs err vs reference: {max_err}"

    print("KERNEL_OK")
</pallas_src>

<mosaic_0001>
module attributes {stable_mosaic.version = 11 : i64} {
  func.func @_bn_relu_kernel(%arg0: i32, %arg1: memref<256x32xf32, #tpu.memory_space<vmem>>, %arg2: memref<1x32xf32, #tpu.memory_space<vmem>>, %arg3: memref<1x32xf32, #tpu.memory_space<vmem>>, %arg4: memref<1x32xf32, #tpu.memory_space<vmem>>, %arg5: memref<1x32xf32, #tpu.memory_space<vmem>>, %arg6: memref<256x32xbf16, #tpu.memory_space<vmem>>) attributes {dimension_semantics = [#tpu.dimension_semantics<parallel>], iteration_bounds = array<i64: 2>, scalar_prefetch = 0 : i64, scratch_operands = 0 : i64, tpu.core_type = #tpu.core_type<tc>, window_params = [{transform_indices = @transform_0, window_bounds = array<i64: 256, 32>}, {pipeline_mode = #tpu.pipeline_mode<synchronous>, transform_indices = @transform_1, window_bounds = array<i64: 1, 32>}, {pipeline_mode = #tpu.pipeline_mode<synchronous>, transform_indices = @transform_2, window_bounds = array<i64: 1, 32>}, {pipeline_mode = #tpu.pipeline_mode<synchronous>, transform_indices = @transform_3, window_bounds = array<i64: 1, 32>}, {pipeline_mode = #tpu.pipeline_mode<synchronous>, transform_indices = @transform_4, window_bounds = array<i64: 1, 32>}, {transform_indices = @transform_5, window_bounds = array<i64: 256, 32>}]} {
    %c0 = arith.constant 0 : index
    %c0_0 = arith.constant 0 : index
    %0 = vector.load %arg2[%c0, %c0_0] : memref<1x32xf32, #tpu.memory_space<vmem>>, vector<1x32xf32>
    %cst = arith.constant 0.001953125 : f32
    %1 = vector.broadcast %cst : f32 to vector<1x32xf32>
    %2 = arith.mulf %0, %1 : vector<1x32xf32>
    %c0_1 = arith.constant 0 : index
    %c0_2 = arith.constant 0 : index
    %3 = vector.load %arg3[%c0_1, %c0_2] : memref<1x32xf32, #tpu.memory_space<vmem>>, vector<1x32xf32>
    %cst_3 = arith.constant 0.001953125 : f32
    %4 = vector.broadcast %cst_3 : f32 to vector<1x32xf32>
    %5 = arith.mulf %3, %4 : vector<1x32xf32>
    %6 = arith.mulf %2, %2 : vector<1x32xf32>
    %7 = arith.subf %5, %6 : vector<1x32xf32>
    %c0_4 = arith.constant 0 : index
    %c0_5 = arith.constant 0 : index
    %8 = vector.load %arg4[%c0_4, %c0_5] : memref<1x32xf32, #tpu.memory_space<vmem>>, vector<1x32xf32>
    %cst_6 = arith.constant 9.99999974E-6 : f32
    %9 = vector.broadcast %cst_6 : f32 to vector<1x32xf32>
    %10 = arith.addf %7, %9 : vector<1x32xf32>
    %11 = math.rsqrt %10 : vector<1x32xf32>
    %12 = arith.mulf %8, %11 : vector<1x32xf32>
    %c0_7 = arith.constant 0 : index
    %c0_8 = arith.constant 0 : index
    %13 = vector.load %arg5[%c0_7, %c0_8] : memref<1x32xf32, #tpu.memory_space<vmem>>, vector<1x32xf32>
    %14 = arith.mulf %2, %12 : vector<1x32xf32>
    %15 = arith.subf %13, %14 : vector<1x32xf32>
    %c0_9 = arith.constant 0 : index
    %c0_10 = arith.constant 0 : index
    %16 = vector.load %arg1[%c0_9, %c0_10] : memref<256x32xf32, #tpu.memory_space<vmem>>, vector<256x32xf32>
    %17 = vector.broadcast %12 : vector<1x32xf32> to vector<256x32xf32>
    %18 = arith.mulf %16, %17 : vector<256x32xf32>
    %19 = vector.broadcast %15 : vector<1x32xf32> to vector<256x32xf32>
    %20 = arith.addf %18, %19 : vector<256x32xf32>
    %cst_11 = arith.constant 0.000000e+00 : f32
    %21 = vector.broadcast %cst_11 : f32 to vector<256x32xf32>
    %22 = arith.maximumf %20, %21 : vector<256x32xf32>
    %23 = arith.truncf %22 : vector<256x32xf32> to vector<256x32xbf16>
    %c0_12 = arith.constant 0 : index
    %c0_13 = arith.constant 0 : index
    %24 = vector.load %arg6[%c0_12, %c0_13] : memref<256x32xbf16, #tpu.memory_space<vmem>>, vector<256x32xbf16>
    tpu.vector_store %arg6[%c0_12, %c0_13], %23 {strides = array<i32>} : memref<256x32xbf16, #tpu.memory_space<vmem>>, vector<256x32xbf16>,
    return
  }
  func.func @transform_0(%arg0: i32) -> (i32, i32) {
    %c0_i32 = arith.constant 0 : i32
    %c0_i32_0 = arith.constant 0 : i32
    return %arg0, %c0_i32 : i32, i32
  }
  func.func @transform_1(%arg0: i32) -> (i32, i32) {
    %c0_i32 = arith.constant 0 : i32
    %c0_i32_0 = arith.constant 0 : i32
    %c0_i32_1 = arith.constant 0 : i32
    return %c0_i32, %c0_i32_0 : i32, i32
  }
  func.func @transform_2(%arg0: i32) -> (i32, i32) {
    %c0_i32 = arith.constant 0 : i32
    %c0_i32_0 = arith.constant 0 : i32
    %c0_i32_1 = arith.constant 0 : i32
    return %c0_i32, %c0_i32_0 : i32, i32
  }
  func.func @transform_3(%arg0: i32) -> (i32, i32) {
    %c0_i32 = arith.constant 0 : i32
    %c0_i32_0 = arith.constant 0 : i32
    %c0_i32_1 = arith.constant 0 : i32
    return %c0_i32, %c0_i32_0 : i32, i32
  }
  func.func @transform_4(%arg0: i32) -> (i32, i32) {
    %c0_i32 = arith.constant 0 : i32
    %c0_i32_0 = arith.constant 0 : i32
    %c0_i32_1 = arith.constant 0 : i32
    return %c0_i32, %c0_i32_0 : i32, i32
  }
  func.func @transform_5(%arg0: i32) -> (i32, i32) {
    %c0_i32 = arith.constant 0 : i32
    %c0_i32_0 = arith.constant 0 : i32
    return %arg0, %c0_i32 : i32, i32
  }
}

module attributes {stable_mosaic.version = 11 : i64} {
  func.func @_conv3x3_stats_kernel(%arg0: i32, %arg1: memref<1x10x18x4xbf16, #tpu.memory_space<vmem>>, %arg2: memref<9x4x32xbf16, #tpu.memory_space<vmem>>, %arg3: memref<1x32xf32, #tpu.memory_space<vmem>>, %arg4: memref<1x128x32xf32, #tpu.memory_space<vmem>>, %arg5: memref<1x1x32xf32, #tpu.memory_space<vmem>>, %arg6: memref<1x1x32xf32, #tpu.memory_space<vmem>>) attributes {dimension_semantics = [#tpu.dimension_semantics<parallel>], iteration_bounds = array<i64: 4>, scalar_prefetch = 0 : i64, scratch_operands = 0 : i64, tpu.core_type = #tpu.core_type<tc>, window_params = [{transform_indices = @transform_0, window_bounds = array<i64: 1, 10, 18, 4>}, {pipeline_mode = #tpu.pipeline_mode<synchronous>, transform_indices = @transform_1, window_bounds = array<i64: 9, 4, 32>}, {pipeline_mode = #tpu.pipeline_mode<synchronous>, transform_indices = @transform_2, window_bounds = array<i64: 1, 32>}, {transform_indices = @transform_3, window_bounds = array<i64: 1, 128, 32>}, {transform_indices = @transform_4, window_bounds = array<i64: 1, 1, 32>}, {transform_indices = @transform_5, window_bounds = array<i64: 1, 1, 32>}]} {
    %c0 = arith.constant 0 : index
    %c0_0 = arith.constant 0 : index
    %c0_1 = arith.constant 0 : index
    %c0_2 = arith.constant 0 : index
    %0 = vector.load %arg1[%c0, %c0_0, %c0_1, %c0_2] : memref<1x10x18x4xbf16, #tpu.memory_space<vmem>>, vector<1x10x18x4xbf16>
    %1 = vector.shape_cast %0 : vector<1x10x18x4xbf16> to vector<10x18x4xbf16>
    %cst = arith.constant 0.000000e+00 : f32
    %2 = vector.broadcast %cst : f32 to vector<128x32xf32>
    %3 = vector.extract_strided_slice %1 {offsets = [0, 0, 0], sizes = [8, 16, 4], strides = [1, 1, 1]} : vector<10x18x4xbf16> to vector<8x16x4xbf16>
    %4 = vector.shape_cast %3 : vector<8x16x4xbf16> to vector<128x4xbf16>
    %c0_3 = arith.constant 0 : index
    %c0_4 = arith.constant 0 : index
    %c0_5 = arith.constant 0 : index
    %5 = vector.load %arg2[%c0_3, %c0_4, %c0_5] : memref<9x4x32xbf16, #tpu.memory_space<vmem>>, vector<1x4x32xbf16>
    %6 = vector.shape_cast %5 : vector<1x4x32xbf16> to vector<4x32xbf16>
    %cst_6 = arith.constant dense<0.000000e+00> : vector<128x32xf32>
    %7 = tpu.matmul %4, %6, %cst_6 {dimension_numbers = #tpu.dot_dimension_numbers<[1], [0], [0], [1], [0, 0, 1, 1], [], []>} : vector<128x4xbf16>, vector<4x32xbf16>, vector<128x32xf32> -> vector<128x32xf32>
    %8 = arith.addf %2, %7 : vector<128x32xf32>
    %9 = vector.extract_strided_slice %1 {offsets = [0, 1, 0], sizes = [8, 16, 4], strides = [1, 1, 1]} : vector<10x18x4xbf16> to vector<8x16x4xbf16>
    %10 = vector.shape_cast %9 : vector<8x16x4xbf16> to vector<128x4xbf16>
    %c1 = arith.constant 1 : index
    %c0_7 = arith.constant 0 : index
    %c0_8 = arith.constant 0 : index
    %11 = vector.load %arg2[%c1, %c0_7, %c0_8] : memref<9x4x32xbf16, #tpu.memory_space<vmem>>, vector<1x4x32xbf16>
    %12 = vector.shape_cast %11 : vector<1x4x32xbf16> to vector<4x32xbf16>
    %cst_9 = arith.constant dense<0.000000e+00> : vector<128x32xf32>
    %13 = tpu.matmul %10, %12, %cst_9 {dimension_numbers = #tpu.dot_dimension_numbers<[1], [0], [0], [1], [0, 0, 1, 1], [], []>} : vector<128x4xbf16>, vector<4x32xbf16>, vector<128x32xf32> -> vector<128x32xf32>
    %14 = arith.addf %8, %13 : vector<128x32xf32>
    %15 = vector.extract_strided_slice %1 {offsets = [0, 2, 0], sizes = [8, 16, 4], strides = [1, 1, 1]} : vector<10x18x4xbf16> to vector<8x16x4xbf16>
    %16 = vector.shape_cast %15 : vector<8x16x4xbf16> to vector<128x4xbf16>
    %c2 = arith.constant 2 : index
    %c0_10 = arith.constant 0 : index
    %c0_11 = arith.constant 0 : index
    %17 = vector.load %arg2[%c2, %c0_10, %c0_11] : memref<9x4x32xbf16, #tpu.memory_space<vmem>>, vector<1x4x32xbf16>
    %18 = vector.shape_cast %17 : vector<1x4x32xbf16> to vector<4x32xbf16>
    %cst_12 = arith.constant dense<0.000000e+00> : vector<128x32xf32>
    %19 = tpu.matmul %16, %18, %cst_12 {dimension_numbers = #tpu.dot_dimension_numbers<[1], [0], [0], [1], [0, 0, 1, 1], [], []>} : vector<128x4xbf16>, vector<4x32xbf16>, vector<128x32xf32> -> vector<128x32xf32>
    %20 = arith.addf %14, %19 : vector<128x32xf32>
    %21 = vector.extract_strided_slice %1 {offsets = [1, 0, 0], sizes = [8, 16, 4], strides = [1, 1, 1]} : vector<10x18x4xbf16> to vector<8x16x4xbf16>
    %22 = vector.shape_cast %21 : vector<8x16x4xbf16> to vector<128x4xbf16>
    %c3 = arith.constant 3 : index
    %c0_13 = arith.constant 0 : index
    %c0_14 = arith.constant 0 : index
    %23 = vector.load %arg2[%c3, %c0_13, %c0_14] : memref<9x4x32xbf16, #tpu.memory_space<vmem>>, vector<1x4x32xbf16>
    %24 = vector.shape_cast %23 : vector<1x4x32xbf16> to vector<4x32xbf16>
    %cst_15 = arith.constant dense<0.000000e+00> : vector<128x32xf32>
    %25 = tpu.matmul %22, %24, %cst_15 {dimension_numbers = #tpu.dot_dimension_numbers<[1], [0], [0], [1], [0, 0, 1, 1], [], []>} : vector<128x4xbf16>, vector<4x32xbf16>, vector<128x32xf32> -> vector<128x32xf32>
    %26 = arith.addf %20, %25 : vector<128x32xf32>
    %27 = vector.extract_strided_slice %1 {offsets = [1, 1, 0], sizes = [8, 16, 4], strides = [1, 1, 1]} : vector<10x18x4xbf16> to vector<8x16x4xbf16>
    %28 = vector.shape_cast %27 : vector<8x16x4xbf16> to vector<128x4xbf16>
    %c4 = arith.constant 4 : index
    %c0_16 = arith.constant 0 : index
    %c0_17 = arith.constant 0 : index
    %29 = vector.load %arg2[%c4, %c0_16, %c0_17] : memref<9x4x32xbf16, #tpu.memory_space<vmem>>, vector<1x4x32xbf16>
    %30 = vector.shape_cast %29 : vector<1x4x32xbf16> to vector<4x32xbf16>
    %cst_18 = arith.constant dense<0.000000e+00> : vector<128x32xf32>
    %31 = tpu.matmul %28, %30, %cst_18 {dimension_numbers = #tpu.dot_dimension_numbers<[1], [0], [0], [1], [0, 0, 1, 1], [], []>} : vector<128x4xbf16>, vector<4x32xbf16>, vector<128x32xf32> -> vector<128x32xf32>
    %32 = arith.addf %26, %31 : vector<128x32xf32>
    %33 = vector.extract_strided_slice %1 {offsets = [1, 2, 0], sizes = [8, 16, 4], strides = [1, 1, 1]} : vector<10x18x4xbf16> to vector<8x16x4xbf16>
    %34 = vector.shape_cast %33 : vector<8x16x4xbf16> to vector<128x4xbf16>
    %c5 = arith.constant 5 : index
    %c0_19 = arith.constant 0 : index
    %c0_20 = arith.constant 0 : index
    %35 = vector.load %arg2[%c5, %c0_19, %c0_20] : memref<9x4x32xbf16, #tpu.memory_space<vmem>>, vector<1x4x32xbf16>
    %36 = vector.shape_cast %35 : vector<1x4x32xbf16> to vector<4x32xbf16>
    %cst_21 = arith.constant dense<0.000000e+00> : vector<128x32xf32>
    %37 = tpu.matmul %34, %36, %cst_21 {dimension_numbers = #tpu.dot_dimension_numbers<[1], [0], [0], [1], [0, 0, 1, 1], [], []>} : vector<128x4xbf16>, vector<4x32xbf16>, vector<128x32xf32> -> vector<128x32xf32>
    %38 = arith.addf %32, %37 : vector<128x32xf32>
    %39 = vector.extract_strided_slice %1 {offsets = [2, 0, 0], sizes = [8, 16, 4], strides = [1, 1, 1]} : vector<10x18x4xbf16> to vector<8x16x4xbf16>
    %40 = vector.shape_cast %39 : vector<8x16x4xbf16> to vector<128x4xbf16>
    %c6 = arith.constant 6 : index
    %c0_22 = arith.constant 0 : index
    %c0_23 = arith.constant 0 : index
    %41 = vector.load %arg2[%c6, %c0_22, %c0_23] : memref<9x4x32xbf16, #tpu.memory_space<vmem>>, vector<1x4x32xbf16>
    %42 = vector.shape_cast %41 : vector<1x4x32xbf16> to vector<4x32xbf16>
    %cst_24 = arith.constant dense<0.000000e+00> : vector<128x32xf32>
    %43 = tpu.matmul %40, %42, %cst_24 {dimension_numbers = #tpu.dot_dimension_numbers<[1], [0], [0], [1], [0, 0, 1, 1], [], []>} : vector<128x4xbf16>, vector<4x32xbf16>, vector<128x32xf32> -> vector<128x32xf32>
    %44 = arith.addf %38, %43 : vector<128x32xf32>
    %45 = vector.extract_strided_slice %1 {offsets = [2, 1, 0], sizes = [8, 16, 4], strides = [1, 1, 1]} : vector<10x18x4xbf16> to vector<8x16x4xbf16>
    %46 = vector.shape_cast %45 : vector<8x16x4xbf16> to vector<128x4xbf16>
    %c7 = arith.constant 7 : index
    %c0_25 = arith.constant 0 : index
    %c0_26 = arith.constant 0 : index
    %47 = vector.load %arg2[%c7, %c0_25, %c0_26] : memref<9x4x32xbf16, #tpu.memory_space<vmem>>, vector<1x4x32xbf16>
    %48 = vector.shape_cast %47 : vector<1x4x32xbf16> to vector<4x32xbf16>
    %cst_27 = arith.constant dense<0.000000e+00> : vector<128x32xf32>
    %49 = tpu.matmul %46, %48, %cst_27 {dimension_numbers = #tpu.dot_dimension_numbers<[1], [0], [0], [1], [0, 0, 1, 1], [], []>} : vector<128x4xbf16>, vector<4x32xbf16>, vector<128x32xf32> -> vector<128x32xf32>
    %50 = arith.addf %44, %49 : vector<128x32xf32>
    %51 = vector.extract_strided_slice %1 {offsets = [2, 2, 0], sizes = [8, 16, 4], strides = [1, 1, 1]} : vector<10x18x4xbf16> to vector<8x16x4xbf16>
    %52 = vector.shape_cast %51 : vector<8x16x4xbf16> to vector<128x4xbf16>
    %c8 = arith.constant 8 : index
    %c0_28 = arith.constant 0 : index
    %c0_29 = arith.constant 0 : index
    %53 = vector.load %arg2[%c8, %c0_28, %c0_29] : memref<9x4x32xbf16, #tpu.memory_space<vmem>>, vector<1x4x32xbf16>
    %54 = vector.shape_cast %53 : vector<1x4x32xbf16> to vector<4x32xbf16>
    %cst_30 = arith.constant dense<0.000000e+00> : vector<128x32xf32>
    %55 = tpu.matmul %52, %54, %cst_30 {dimension_numbers = #tpu.dot_dimension_numbers<[1], [0], [0], [1], [0, 0, 1, 1], [], []>} : vector<128x4xbf16>, vector<4x32xbf16>, vector<128x32xf32> -> vector<128x32xf32>
    %56 = arith.addf %50, %55 : vector<128x32xf32>
    %c0_31 = arith.constant 0 : index
    %c0_32 = arith.constant 0 : index
    %57 = vector.load %arg3[%c0_31, %c0_32] : memref<1x32xf32, #tpu.memory_space<vmem>>, vector<1x32xf32>
    %58 = vector.broadcast %57 : vector<1x32xf32> to vector<128x32xf32>
    %59 = arith.addf %56, %58 : vector<128x32xf32>
    %60 = vector.shape_cast %59 : vector<128x32xf32> to vector<1x128x32xf32>
    %c0_33 = arith.constant 0 : index
    %c0_34 = arith.constant 0 : index
    %c0_35 = arith.constant 0 : index
    %61 = vector.load %arg4[%c0_33, %c0_34, %c0_35] : memref<1x128x32xf32, #tpu.memory_space<vmem>>, vector<1x128x32xf32>
    tpu.vector_store %arg4[%c0_33, %c0_34, %c0_35], %60 {strides = array<i32>} : memref<1x128x32xf32, #tpu.memory_space<vmem>>, vector<1x128x32xf32>,
    %cst_36 = arith.constant dense<0.000000e+00> : vector<32xf32>
    %62 = vector.multi_reduction <add>, %59, %cst_36 [0] : vector<128x32xf32> to vector<32xf32>
    %63 = vector.shape_cast %62 : vector<32xf32> to vector<1x32xf32>
    %64 = vector.shape_cast %63 : vector<1x32xf32> to vector<1x1x32xf32>
    %c0_37 = arith.constant 0 : index
    %c0_38 = arith.constant 0 : index
    %c0_39 = arith.constant 0 : index
    %65 = vector.load %arg5[%c0_37, %c0_38, %c0_39] : memref<1x1x32xf32, #tpu.memory_space<vmem>>, vector<1x1x32xf32>
    tpu.vector_store %arg5[%c0_37, %c0_38, %c0_39], %64 {strides = array<i32>} : memref<1x1x32xf32, #tpu.memory_space<vmem>>, vector<1x1x32xf32>,
    %66 = arith.mulf %59, %59 : vector<128x32xf32>
    %cst_40 = arith.constant dense<0.000000e+00> : vector<32xf32>
    %67 = vector.multi_reduction <add>, %66, %cst_40 [0] : vector<128x32xf32> to vector<32xf32>
    %68 = vector.shape_cast %67 : vector<32xf32> to vector<1x32xf32>
    %69 = vector.shape_cast %68 : vector<1x32xf32> to vector<1x1x32xf32>
    %c0_41 = arith.constant 0 : index
    %c0_42 = arith.constant 0 : index
    %c0_43 = arith.constant 0 : index
    %70 = vector.load %arg6[%c0_41, %c0_42, %c0_43] : memref<1x1x32xf32, #tpu.memory_space<vmem>>, vector<1x1x32xf32>
    tpu.vector_store %arg6[%c0_41, %c0_42, %c0_43], %69 {strides = array<i32>} : memref<1x1x32xf32, #tpu.memory_space<vmem>>, vector<1x1x32xf32>,
    return
  }
  func.func @transform_0(%arg0: i32) -> (i32, i32, i32, i32) {
    %c0_i32 = arith.constant 0 : i32
    %c0_i32_0 = arith.constant 0 : i32
    %c0_i32_1 = arith.constant 0 : i32
    %c0_i32_2 = arith.constant 0 : i32
    return %arg0, %c0_i32, %c0_i32_0, %c0_i32_1 : i32, i32, i32, i32
  }
  func.func @transform_1(%arg0: i32) -> (i32, i32, i32) {
    %c0_i32 = arith.constant 0 : i32
    %c0_i32_0 = arith.constant 0 : i32
    %c0_i32_1 = arith.constant 0 : i32
    %c0_i32_2 = arith.constant 0 : i32
    return %c0_i32, %c0_i32_0, %c0_i32_1 : i32, i32, i32
  }
  func.func @transform_2(%arg0: i32) -> (i32, i32) {
    %c0_i32 = arith.constant 0 : i32
    %c0_i32_0 = arith.constant 0 : i32
    %c0_i32_1 = arith.constant 0 : i32
    return %c0_i32, %c0_i32_0 : i32, i32
  }
  func.func @transform_3(%arg0: i32) -> (i32, i32, i32) {
    %c0_i32 = arith.constant 0 : i32
    %c0_i32_0 = arith.constant 0 : i32
    %c0_i32_1 = arith.constant 0 : i32
    return %arg0, %c0_i32, %c0_i32_0 : i32, i32, i32
  }
  func.func @transform_4(%arg0: i32) -> (i32, i32, i32) {
    %c0_i32 = arith.constant 0 : i32
    %c0_i32_0 = arith.constant 0 : i32
    %c0_i32_1 = arith.constant 0 : i32
    return %arg0, %c0_i32, %c0_i32_0 : i32, i32, i32
  }
  func.func @transform_5(%arg0: i32) -> (i32, i32, i32) {
    %c0_i32 = arith.constant 0 : i32
    %c0_i32_0 = arith.constant 0 : i32
    %c0_i32_1 = arith.constant 0 : i32
    return %arg0, %c0_i32, %c0_i32_0 : i32, i32, i32
  }
}

module attributes {stable_mosaic.version = 11 : i64} {
  func.func @_conv3x3_stats_kernel(%arg0: i32, %arg1: memref<1x10x18x32xbf16, #tpu.memory_space<vmem>>, %arg2: memref<9x32x32xbf16, #tpu.memory_space<vmem>>, %arg3: memref<1x32xf32, #tpu.memory_space<vmem>>, %arg4: memref<1x128x32xf32, #tpu.memory_space<vmem>>, %arg5: memref<1x1x32xf32, #tpu.memory_space<vmem>>, %arg6: memref<1x1x32xf32, #tpu.memory_space<vmem>>) attributes {dimension_semantics = [#tpu.dimension_semantics<parallel>], iteration_bounds = array<i64: 4>, scalar_prefetch = 0 : i64, scratch_operands = 0 : i64, tpu.core_type = #tpu.core_type<tc>, window_params = [{transform_indices = @transform_0, window_bounds = array<i64: 1, 10, 18, 32>}, {pipeline_mode = #tpu.pipeline_mode<synchronous>, transform_indices = @transform_1, window_bounds = array<i64: 9, 32, 32>}, {pipeline_mode = #tpu.pipeline_mode<synchronous>, transform_indices = @transform_2, window_bounds = array<i64: 1, 32>}, {transform_indices = @transform_3, window_bounds = array<i64: 1, 128, 32>}, {transform_indices = @transform_4, window_bounds = array<i64: 1, 1, 32>}, {transform_indices = @transform_5, window_bounds = array<i64: 1, 1, 32>}]} {
    %c0 = arith.constant 0 : index
    %c0_0 = arith.constant 0 : index
    %c0_1 = arith.constant 0 : index
    %c0_2 = arith.constant 0 : index
    %0 = vector.load %arg1[%c0, %c0_0, %c0_1, %c0_2] : memref<1x10x18x32xbf16, #tpu.memory_space<vmem>>, vector<1x10x18x32xbf16>
    %1 = vector.shape_cast %0 : vector<1x10x18x32xbf16> to vector<10x18x32xbf16>
    %cst = arith.constant 0.000000e+00 : f32
    %2 = vector.broadcast %cst : f32 to vector<128x32xf32>
    %3 = vector.extract_strided_slice %1 {offsets = [0, 0, 0], sizes = [8, 16, 32], strides = [1, 1, 1]} : vector<10x18x32xbf16> to vector<8x16x32xbf16>
    %4 = vector.shape_cast %3 : vector<8x16x32xbf16> to vector<128x32xbf16>
    %c0_3 = arith.constant 0 : index
    %c0_4 = arith.constant 0 : index
    %c0_5 = arith.constant 0 : index
    %5 = vector.load %arg2[%c0_3, %c0_4, %c0_5] : memref<9x32x32xbf16, #tpu.memory_space<vmem>>, vector<1x32x32xbf16>
    %6 = vector.shape_cast %5 : vector<1x32x32xbf16> to vector<32x32xbf16>
    %cst_6 = arith.constant dense<0.000000e+00> : vector<128x32xf32>
    %7 = tpu.matmul %4, %6, %cst_6 {dimension_numbers = #tpu.dot_dimension_numbers<[1], [0], [0], [1], [0, 0, 1, 1], [], []>} : vector<128x32xbf16>, vector<32x32xbf16>, vector<128x32xf32> -> vector<128x32xf32>
    %8 = arith.addf %2, %7 : vector<128x32xf32>
    %9 = vector.extract_strided_slice %1 {offsets = [0, 1, 0], sizes = [8, 16, 32], strides = [1, 1, 1]} : vector<10x18x32xbf16> to vector<8x16x32xbf16>
    %10 = vector.shape_cast %9 : vector<8x16x32xbf16> to vector<128x32xbf16>
    %c1 = arith.constant 1 : index
    %c0_7 = arith.constant 0 : index
    %c0_8 = arith.constant 0 : index
    %11 = vector.load %arg2[%c1, %c0_7, %c0_8] : memref<9x32x32xbf16, #tpu.memory_space<vmem>>, vector<1x32x32xbf16>
    %12 = vector.shape_cast %11 : vector<1x32x32xbf16> to vector<32x32xbf16>
    %cst_9 = arith.constant dense<0.000000e+00> : vector<128x32xf32>
    %13 = tpu.matmul %10, %12, %cst_9 {dimension_numbers = #tpu.dot_dimension_numbers<[1], [0], [0], [1], [0, 0, 1, 1], [], []>} : vector<128x32xbf16>, vector<32x32xbf16>, vector<128x32xf32> -> vector<128x32xf32>
    %14 = arith.addf %8, %13 : vector<128x32xf32>
    %15 = vector.extract_strided_slice %1 {offsets = [0, 2, 0], sizes = [8, 16, 32], strides = [1, 1, 1]} : vector<10x18x32xbf16> to vector<8x16x32xbf16>
    %16 = vector.shape_cast %15 : vector<8x16x32xbf16> to vector<128x32xbf16>
    %c2 = arith.constant 2 : index
    %c0_10 = arith.constant 0 : index
    %c0_11 = arith.constant 0 : index
    %17 = vector.load %arg2[%c2, %c0_10, %c0_11] : memref<9x32x32xbf16, #tpu.memory_space<vmem>>, vector<1x32x32xbf16>
    %18 = vector.shape_cast %17 : vector<1x32x32xbf16> to vector<32x32xbf16>
    %cst_12 = arith.constant dense<0.000000e+00> : vector<128x32xf32>
    %19 = tpu.matmul %16, %18, %cst_12 {dimension_numbers = #tpu.dot_dimension_numbers<[1], [0], [0], [1], [0, 0, 1, 1], [], []>} : vector<128x32xbf16>, vector<32x32xbf16>, vector<128x32xf32> -> vector<128x32xf32>
    %20 = arith.addf %14, %19 : vector<128x32xf32>
    %21 = vector.extract_strided_slice %1 {offsets = [1, 0, 0], sizes = [8, 16, 32], strides = [1, 1, 1]} : vector<10x18x32xbf16> to vector<8x16x32xbf16>
    %22 = vector.shape_cast %21 : vector<8x16x32xbf16> to vector<128x32xbf16>
    %c3 = arith.constant 3 : index
    %c0_13 = arith.constant 0 : index
    %c0_14 = arith.constant 0 : index
    %23 = vector.load %arg2[%c3, %c0_13, %c0_14] : memref<9x32x32xbf16, #tpu.memory_space<vmem>>, vector<1x32x32xbf16>
    %24 = vector.shape_cast %23 : vector<1x32x32xbf16> to vector<32x32xbf16>
    %cst_15 = arith.constant dense<0.000000e+00> : vector<128x32xf32>
    %25 = tpu.matmul %22, %24, %cst_15 {dimension_numbers = #tpu.dot_dimension_numbers<[1], [0], [0], [1], [0, 0, 1, 1], [], []>} : vector<128x32xbf16>, vector<32x32xbf16>, vector<128x32xf32> -> vector<128x32xf32>
    %26 = arith.addf %20, %25 : vector<128x32xf32>
    %27 = vector.extract_strided_slice %1 {offsets = [1, 1, 0], sizes = [8, 16, 32], strides = [1, 1, 1]} : vector<10x18x32xbf16> to vector<8x16x32xbf16>
    %28 = vector.shape_cast %27 : vector<8x16x32xbf16> to vector<128x32xbf16>
    %c4 = arith.constant 4 : index
    %c0_16 = arith.constant 0 : index
    %c0_17 = arith.constant 0 : index
    %29 = vector.load %arg2[%c4, %c0_16, %c0_17] : memref<9x32x32xbf16, #tpu.memory_space<vmem>>, vector<1x32x32xbf16>
    %30 = vector.shape_cast %29 : vector<1x32x32xbf16> to vector<32x32xbf16>
    %cst_18 = arith.constant dense<0.000000e+00> : vector<128x32xf32>
    %31 = tpu.matmul %28, %30, %cst_18 {dimension_numbers = #tpu.dot_dimension_numbers<[1], [0], [0], [1], [0, 0, 1, 1], [], []>} : vector<128x32xbf16>, vector<32x32xbf16>, vector<128x32xf32> -> vector<128x32xf32>
    %32 = arith.addf %26, %31 : vector<128x32xf32>
    %33 = vector.extract_strided_slice %1 {offsets = [1, 2, 0], sizes = [8, 16, 32], strides = [1, 1, 1]} : vector<10x18x32xbf16> to vector<8x16x32xbf16>
    %34 = vector.shape_cast %33 : vector<8x16x32xbf16> to vector<128x32xbf16>
    %c5 = arith.constant 5 : index
    %c0_19 = arith.constant 0 : index
    %c0_20 = arith.constant 0 : index
    %35 = vector.load %arg2[%c5, %c0_19, %c0_20] : memref<9x32x32xbf16, #tpu.memory_space<vmem>>, vector<1x32x32xbf16>
    %36 = vector.shape_cast %35 : vector<1x32x32xbf16> to vector<32x32xbf16>
    %cst_21 = arith.constant dense<0.000000e+00> : vector<128x32xf32>
    %37 = tpu.matmul %34, %36, %cst_21 {dimension_numbers = #tpu.dot_dimension_numbers<[1], [0], [0], [1], [0, 0, 1, 1], [], []>} : vector<128x32xbf16>, vector<32x32xbf16>, vector<128x32xf32> -> vector<128x32xf32>
    %38 = arith.addf %32, %37 : vector<128x32xf32>
    %39 = vector.extract_strided_slice %1 {offsets = [2, 0, 0], sizes = [8, 16, 32], strides = [1, 1, 1]} : vector<10x18x32xbf16> to vector<8x16x32xbf16>
    %40 = vector.shape_cast %39 : vector<8x16x32xbf16> to vector<128x32xbf16>
    %c6 = arith.constant 6 : index
    %c0_22 = arith.constant 0 : index
    %c0_23 = arith.constant 0 : index
    %41 = vector.load %arg2[%c6, %c0_22, %c0_23] : memref<9x32x32xbf16, #tpu.memory_space<vmem>>, vector<1x32x32xbf16>
    %42 = vector.shape_cast %41 : vector<1x32x32xbf16> to vector<32x32xbf16>
    %cst_24 = arith.constant dense<0.000000e+00> : vector<128x32xf32>
    %43 = tpu.matmul %40, %42, %cst_24 {dimension_numbers = #tpu.dot_dimension_numbers<[1], [0], [0], [1], [0, 0, 1, 1], [], []>} : vector<128x32xbf16>, vector<32x32xbf16>, vector<128x32xf32> -> vector<128x32xf32>
    %44 = arith.addf %38, %43 : vector<128x32xf32>
    %45 = vector.extract_strided_slice %1 {offsets = [2, 1, 0], sizes = [8, 16, 32], strides = [1, 1, 1]} : vector<10x18x32xbf16> to vector<8x16x32xbf16>
    %46 = vector.shape_cast %45 : vector<8x16x32xbf16> to vector<128x32xbf16>
    %c7 = arith.constant 7 : index
    %c0_25 = arith.constant 0 : index
    %c0_26 = arith.constant 0 : index
    %47 = vector.load %arg2[%c7, %c0_25, %c0_26] : memref<9x32x32xbf16, #tpu.memory_space<vmem>>, vector<1x32x32xbf16>
    %48 = vector.shape_cast %47 : vector<1x32x32xbf16> to vector<32x32xbf16>
    %cst_27 = arith.constant dense<0.000000e+00> : vector<128x32xf32>
    %49 = tpu.matmul %46, %48, %cst_27 {dimension_numbers = #tpu.dot_dimension_numbers<[1], [0], [0], [1], [0, 0, 1, 1], [], []>} : vector<128x32xbf16>, vector<32x32xbf16>, vector<128x32xf32> -> vector<128x32xf32>
    %50 = arith.addf %44, %49 : vector<128x32xf32>
    %51 = vector.extract_strided_slice %1 {offsets = [2, 2, 0], sizes = [8, 16, 32], strides = [1, 1, 1]} : vector<10x18x32xbf16> to vector<8x16x32xbf16>
    %52 = vector.shape_cast %51 : vector<8x16x32xbf16> to vector<128x32xbf16>
    %c8 = arith.constant 8 : index
    %c0_28 = arith.constant 0 : index
    %c0_29 = arith.constant 0 : index
    %53 = vector.load %arg2[%c8, %c0_28, %c0_29] : memref<9x32x32xbf16, #tpu.memory_space<vmem>>, vector<1x32x32xbf16>
    %54 = vector.shape_cast %53 : vector<1x32x32xbf16> to vector<32x32xbf16>
    %cst_30 = arith.constant dense<0.000000e+00> : vector<128x32xf32>
    %55 = tpu.matmul %52, %54, %cst_30 {dimension_numbers = #tpu.dot_dimension_numbers<[1], [0], [0], [1], [0, 0, 1, 1], [], []>} : vector<128x32xbf16>, vector<32x32xbf16>, vector<128x32xf32> -> vector<128x32xf32>
    %56 = arith.addf %50, %55 : vector<128x32xf32>
    %c0_31 = arith.constant 0 : index
    %c0_32 = arith.constant 0 : index
    %57 = vector.load %arg3[%c0_31, %c0_32] : memref<1x32xf32, #tpu.memory_space<vmem>>, vector<1x32xf32>
    %58 = vector.broadcast %57 : vector<1x32xf32> to vector<128x32xf32>
    %59 = arith.addf %56, %58 : vector<128x32xf32>
    %60 = vector.shape_cast %59 : vector<128x32xf32> to vector<1x128x32xf32>
    %c0_33 = arith.constant 0 : index
    %c0_34 = arith.constant 0 : index
    %c0_35 = arith.constant 0 : index
    %61 = vector.load %arg4[%c0_33, %c0_34, %c0_35] : memref<1x128x32xf32, #tpu.memory_space<vmem>>, vector<1x128x32xf32>
    tpu.vector_store %arg4[%c0_33, %c0_34, %c0_35], %60 {strides = array<i32>} : memref<1x128x32xf32, #tpu.memory_space<vmem>>, vector<1x128x32xf32>,
    %cst_36 = arith.constant dense<0.000000e+00> : vector<32xf32>
    %62 = vector.multi_reduction <add>, %59, %cst_36 [0] : vector<128x32xf32> to vector<32xf32>
    %63 = vector.shape_cast %62 : vector<32xf32> to vector<1x32xf32>
    %64 = vector.shape_cast %63 : vector<1x32xf32> to vector<1x1x32xf32>
    %c0_37 = arith.constant 0 : index
    %c0_38 = arith.constant 0 : index
    %c0_39 = arith.constant 0 : index
    %65 = vector.load %arg5[%c0_37, %c0_38, %c0_39] : memref<1x1x32xf32, #tpu.memory_space<vmem>>, vector<1x1x32xf32>
    tpu.vector_store %arg5[%c0_37, %c0_38, %c0_39], %64 {strides = array<i32>} : memref<1x1x32xf32, #tpu.memory_space<vmem>>, vector<1x1x32xf32>,
    %66 = arith.mulf %59, %59 : vector<128x32xf32>
    %cst_40 = arith.constant dense<0.000000e+00> : vector<32xf32>
    %67 = vector.multi_reduction <add>, %66, %cst_40 [0] : vector<128x32xf32> to vector<32xf32>
    %68 = vector.shape_cast %67 : vector<32xf32> to vector<1x32xf32>
    %69 = vector.shape_cast %68 : vector<1x32xf32> to vector<1x1x32xf32>
    %c0_41 = arith.constant 0 : index
    %c0_42 = arith.constant 0 : index
    %c0_43 = arith.constant 0 : index
    %70 = vector.load %arg6[%c0_41, %c0_42, %c0_43] : memref<1x1x32xf32, #tpu.memory_space<vmem>>, vector<1x1x32xf32>
    tpu.vector_store %arg6[%c0_41, %c0_42, %c0_43], %69 {strides = array<i32>} : memref<1x1x32xf32, #tpu.memory_space<vmem>>, vector<1x1x32xf32>,
    return
  }
  func.func @transform_0(%arg0: i32) -> (i32, i32, i32, i32) {
    %c0_i32 = arith.constant 0 : i32
    %c0_i32_0 = arith.constant 0 : i32
    %c0_i32_1 = arith.constant 0 : i32
    %c0_i32_2 = arith.constant 0 : i32
    return %arg0, %c0_i32, %c0_i32_0, %c0_i32_1 : i32, i32, i32, i32
  }
  func.func @transform_1(%arg0: i32) -> (i32, i32, i32) {
    %c0_i32 = arith.constant 0 : i32
    %c0_i32_0 = arith.constant 0 : i32
    %c0_i32_1 = arith.constant 0 : i32
    %c0_i32_2 = arith.constant 0 : i32
    return %c0_i32, %c0_i32_0, %c0_i32_1 : i32, i32, i32
  }
  func.func @transform_2(%arg0: i32) -> (i32, i32) {
    %c0_i32 = arith.constant 0 : i32
    %c0_i32_0 = arith.constant 0 : i32
    %c0_i32_1 = arith.constant 0 : i32
    return %c0_i32, %c0_i32_0 : i32, i32
  }
  func.func @transform_3(%arg0: i32) -> (i32, i32, i32) {
    %c0_i32 = arith.constant 0 : i32
    %c0_i32_0 = arith.constant 0 : i32
    %c0_i32_1 = arith.constant 0 : i32
    return %arg0, %c0_i32, %c0_i32_0 : i32, i32, i32
  }
  func.func @transform_4(%arg0: i32) -> (i32, i32, i32) {
    %c0_i32 = arith.constant 0 : i32
    %c0_i32_0 = arith.constant 0 : i32
    %c0_i32_1 = arith.constant 0 : i32
    return %arg0, %c0_i32, %c0_i32_0 : i32, i32, i32
  }
  func.func @transform_5(%arg0: i32) -> (i32, i32, i32) {
    %c0_i32 = arith.constant 0 : i32
    %c0_i32_0 = arith.constant 0 : i32
    %c0_i32_1 = arith.constant 0 : i32
    return %arg0, %c0_i32, %c0_i32_0 : i32, i32, i32
  }
}

module attributes {stable_mosaic.version = 11 : i64} {
  func.func @_bn_relu_kernel(%arg0: i32, %arg1: memref<256x32xf32, #tpu.memory_space<vmem>>, %arg2: memref<1x32xf32, #tpu.memory_space<vmem>>, %arg3: memref<1x32xf32, #tpu.memory_space<vmem>>, %arg4: memref<1x32xf32, #tpu.memory_space<vmem>>, %arg5: memref<1x32xf32, #tpu.memory_space<vmem>>, %arg6: memref<256x32xf32, #tpu.memory_space<vmem>>) attributes {dimension_semantics = [#tpu.dimension_semantics<parallel>], iteration_bounds = array<i64: 2>, scalar_prefetch = 0 : i64, scratch_operands = 0 : i64, tpu.core_type = #tpu.core_type<tc>, window_params = [{transform_indices = @transform_0, window_bounds = array<i64: 256, 32>}, {pipeline_mode = #tpu.pipeline_mode<synchronous>, transform_indices = @transform_1, window_bounds = array<i64: 1, 32>}, {pipeline_mode = #tpu.pipeline_mode<synchronous>, transform_indices = @transform_2, window_bounds = array<i64: 1, 32>}, {pipeline_mode = #tpu.pipeline_mode<synchronous>, transform_indices = @transform_3, window_bounds = array<i64: 1, 32>}, {pipeline_mode = #tpu.pipeline_mode<synchronous>, transform_indices = @transform_4, window_bounds = array<i64: 1, 32>}, {transform_indices = @transform_5, window_bounds = array<i64: 256, 32>}]} {
    %c0 = arith.constant 0 : index
    %c0_0 = arith.constant 0 : index
    %0 = vector.load %arg2[%c0, %c0_0] : memref<1x32xf32, #tpu.memory_space<vmem>>, vector<1x32xf32>
    %cst = arith.constant 0.001953125 : f32
    %1 = vector.broadcast %cst : f32 to vector<1x32xf32>
    %2 = arith.mulf %0, %1 : vector<1x32xf32>
    %c0_1 = arith.constant 0 : index
    %c0_2 = arith.constant 0 : index
    %3 = vector.load %arg3[%c0_1, %c0_2] : memref<1x32xf32, #tpu.memory_space<vmem>>, vector<1x32xf32>
    %cst_3 = arith.constant 0.001953125 : f32
    %4 = vector.broadcast %cst_3 : f32 to vector<1x32xf32>
    %5 = arith.mulf %3, %4 : vector<1x32xf32>
    %6 = arith.mulf %2, %2 : vector<1x32xf32>
    %7 = arith.subf %5, %6 : vector<1x32xf32>
    %c0_4 = arith.constant 0 : index
    %c0_5 = arith.constant 0 : index
    %8 = vector.load %arg4[%c0_4, %c0_5] : memref<1x32xf32, #tpu.memory_space<vmem>>, vector<1x32xf32>
    %cst_6 = arith.constant 9.99999974E-6 : f32
    %9 = vector.broadcast %cst_6 : f32 to vector<1x32xf32>
    %10 = arith.addf %7, %9 : vector<1x32xf32>
    %11 = math.rsqrt %10 : vector<1x32xf32>
    %12 = arith.mulf %8, %11 : vector<1x32xf32>
    %c0_7 = arith.constant 0 : index
    %c0_8 = arith.constant 0 : index
    %13 = vector.load %arg5[%c0_7, %c0_8] : memref<1x32xf32, #tpu.memory_space<vmem>>, vector<1x32xf32>
    %14 = arith.mulf %2, %12 : vector<1x32xf32>
    %15 = arith.subf %13, %14 : vector<1x32xf32>
    %c0_9 = arith.constant 0 : index
    %c0_10 = arith.constant 0 : index
    %16 = vector.load %arg1[%c0_9, %c0_10] : memref<256x32xf32, #tpu.memory_space<vmem>>, vector<256x32xf32>
    %17 = vector.broadcast %12 : vector<1x32xf32> to vector<256x32xf32>
    %18 = arith.mulf %16, %17 : vector<256x32xf32>
    %19 = vector.broadcast %15 : vector<1x32xf32> to vector<256x32xf32>
    %20 = arith.addf %18, %19 : vector<256x32xf32>
    %cst_11 = arith.constant 0.000000e+00 : f32
    %21 = vector.broadcast %cst_11 : f32 to vector<256x32xf32>
    %22 = arith.maximumf %20, %21 : vector<256x32xf32>
    %c0_12 = arith.constant 0 : index
    %c0_13 = arith.constant 0 : index
    %23 = vector.load %arg6[%c0_12, %c0_13] : memref<256x32xf32, #tpu.memory_space<vmem>>, vector<256x32xf32>
    tpu.vector_store %arg6[%c0_12, %c0_13], %22 {strides = array<i32>} : memref<256x32xf32, #tpu.memory_space<vmem>>, vector<256x32xf32>,
    return
  }
  func.func @transform_0(%arg0: i32) -> (i32, i32) {
    %c0_i32 = arith.constant 0 : i32
    %c0_i32_0 = arith.constant 0 : i32
    return %arg0, %c0_i32 : i32, i32
  }
  func.func @transform_1(%arg0: i32) -> (i32, i32) {
    %c0_i32 = arith.constant 0 : i32
    %c0_i32_0 = arith.constant 0 : i32
    %c0_i32_1 = arith.constant 0 : i32
    return %c0_i32, %c0_i32_0 : i32, i32
  }
  func.func @transform_2(%arg0: i32) -> (i32, i32) {
    %c0_i32 = arith.constant 0 : i32
    %c0_i32_0 = arith.constant 0 : i32
    %c0_i32_1 = arith.constant 0 : i32
    return %c0_i32, %c0_i32_0 : i32, i32
  }
  func.func @transform_3(%arg0: i32) -> (i32, i32) {
    %c0_i32 = arith.constant 0 : i32
    %c0_i32_0 = arith.constant 0 : i32
    %c0_i32_1 = arith.constant 0 : i32
    return %c0_i32, %c0_i32_0 : i32, i32
  }
  func.func @transform_4(%arg0: i32) -> (i32, i32) {
    %c0_i32 = arith.constant 0 : i32
    %c0_i32_0 = arith.constant 0 : i32
    %c0_i32_1 = arith.constant 0 : i32
    return %c0_i32, %c0_i32_0 : i32, i32
  }
  func.func @transform_5(%arg0: i32) -> (i32, i32) {
    %c0_i32 = arith.constant 0 : i32
    %c0_i32_0 = arith.constant 0 : i32
    return %arg0, %c0_i32 : i32, i32
  }
}

</mosaic_0001>

<bundles_post_ra>
// kernel: double_conv_forward.5
= control target key start
LH: loop header
LB: loop body
LE: loop exit
PB: predicated region body
PF: predicated region fallthrough
CT: control target
= control target key end

     0   :  { %s721_s18 = smov 0   ;;  %s922_s0 = inlined_call_operand.vmem [shape: f32[512,32], index: 0, kind: input, shape index: {}]   ;;  %s923_s1 = inlined_call_operand.vmem [shape: f32[1,32], index: 1, kind: input, shape index: {}]   ;;  %s924_s2 = inlined_call_operand.vmem [shape: f32[1,32], index: 2, kind: input, shape index: {}]   ;;  %s925_s3 = inlined_call_operand.vmem [shape: f32[1,32], index: 3, kind: input, shape index: {}]   ;;  %s926_s4 = inlined_call_operand.vmem [shape: f32[1,32], index: 4, kind: input, shape index: {}]   ;;  %s927_s5 = inlined_call_operand.vmem [shape: bf16[512,32], index: 5, kind: output, shape index: {}]  }
   0x1 LB: > { %s598_s19 = sadd.s32 4294967295, %s689_s18   ;;  %p602_p0 = scmp.ge.s32.totalorder %s689_s18, 1  ;;  %s689_s18 = sphi %s721_s18, %s15_s18  }
   0x2   : > { %p188_p1 = scmp.lt.s32.totalorder %s689_s18, 3 }
   0x4   : > { %p189_p2 = pnand %p602_p0, %p188_p1 }
   0x5   : > { %v228_v0 = vld [vmem:[%s923_s1] sm:$0x1] (!%p189_p2)  ;;  %s603_s24 = sshll.u32 (!%p189_p2), %s598_s19, 5  ;;  %v274_v7 = vlaneseq (!%p189_p2)  ;;  %vm509_vm0 = vcmask (!%p189_p2), 257024  }
   0x6   : > { %192 = sbr.rel (%p189_p2) target bundleno = 68 (0x44), region = 40  ;;  %v230_v1 = vld [vmem:[%s924_s2] sm:$0x1] (!%p189_p2)  ;;  %v229_v2 = vmul.f32 (!%p189_p2), 0.001953125, %v228_v0  ;;  %p217_p3 = scmp.lt.s32.totalorder (!%p189_p2), %s603_s24, 63 }
   0x7   : > { %v231_v3 = vmul.f32 (!%p189_p2), 0.001953125, %v230_v1  ;;  %v275_v8 = vshrl.u32 (!%p189_p2), %v274_v7, 7  ;;  %v234_v9 = vld [vmem:[%s925_s3] sm:$0x1] (!%p189_p2) }
   0x8   : > { %v232_v4 = vmul.f32 (!%p189_p2), %v229_v2, %v229_v2  ;;  %v238_v13 = vld [vmem:[%s926_s4] sm:$0x1] (!%p189_p2) }
   0x9   : > { %v276_v10 = vsub.s32 (!%p189_p2), 0, %v275_v8 }
   0xa   : > { %v233_v5 = vsub.f32 (!%p189_p2), %v231_v3, %v232_v4 }
   0xc   : > { %v235_v6 = vadd.f32 (!%p189_p2), 1e-05, %v233_v5 }
   0xd   : > { %s929_s24 = smov (!%p217_p3, %s603_s24), 63 }
   0xe   : > { %681 = vrsqrt.f32 %v235_v6  ;;  %s604_s25 = sshll.u32 %s929_s24, 3  ;;  %s606_s8 = sshll.u32 %s929_s24, 2 }
   0xf   : > { %s741_s28 = scalar_lea.vmem %s922_s0, %s604_s25  ;;  %s793_s11 = scalar_lea.vmem %s927_s5, %s606_s8 }
  0x10   : > { %v241_v14 = vld [vmem:[%s741_s28] sm:$0xff]  ;;  %v242_v15 = vld [vmem:[%s741_s28 + $0x8] sm:$0xff]  ;;  %v243_v16 = vld [vmem:[%s741_s28 + $0x10] sm:$0xff] }
  0x11   : > { %v244_v17 = vld [vmem:[%s741_s28 + $0x18] sm:$0xff]  ;;  %v245_v18 = vld [vmem:[%s741_s28 + $0x20] sm:$0xff]  ;;  %v246_v21 = vld [vmem:[%s741_s28 + $0x28] sm:$0xff] }
  0x12   : > { %v247_v22 = vld [vmem:[%s741_s28 + $0x30] sm:$0xff]  ;;  %v248_v23 = vld [vmem:[%s741_s28 + $0x38] sm:$0xff]  ;;  %v249_v24 = vld [vmem:[%s741_s28 + $0x40] sm:$0xff] }
  0x13   : > { %v250_v25 = vld [vmem:[%s741_s28 + $0x48] sm:$0xff]  ;;  %v251_v26 = vld [vmem:[%s741_s28 + $0x50] sm:$0xff]  ;;  %v252_v31 = vld [vmem:[%s741_s28 + $0x58] sm:$0xff] }
  0x14   : > { %v253_v32 = vld [vmem:[%s741_s28 + $0x60] sm:$0xff]  ;;  %v254_v33 = vld [vmem:[%s741_s28 + $0x68] sm:$0xff]  ;;  %v256_v3 = vld [vmem:[%s741_s28 + $0x78] sm:$0xff] }
  0x18   : > { %v682_v11 = vpop.eup %681 }
  0x19   : > { %v237_v12 = vmul.f32 %v682_v11, %v234_v9 }
  0x1b   : > { %v239_v19 = vmul.f32 %v237_v12, %v229_v2  ;;  %v754_v20 = vrot.slane %v237_v12, %v276_v10  ;;  %v255_v2 = vld [vmem:[%s741_s28 + $0x70] sm:$0xff] }
  0x1d   : > { %v240_v27 = vsub.f32 %v238_v13, %v239_v19  ;;  %v279_v28 = vmul.f32 %v754_v20, %v241_v14  ;;  %v280_v29 = vmul.f32 %v754_v20, %v242_v15  ;;  %v281_v30 = vmul.f32 %v754_v20, %v243_v16 }
  0x1e   : > { %v282_v34 = vmul.f32 %v754_v20, %v244_v17  ;;  %v283_v35 = vmul.f32 %v754_v20, %v245_v18  ;;  %v284_v36 = vmul.f32 %v754_v20, %v246_v21  ;;  %v285_v37 = vmul.f32 %v754_v20, %v247_v22  ;;  %v257_v21 = vld [vmem:[%s741_s28 + $0x80] sm:$0xff] }
  0x1f   : > { %v772_v38 = vrot.slane %v240_v27, %v276_v10  ;;  %v286_v39 = vmul.f32 %v754_v20, %v248_v23  ;;  %v287_v40 = vmul.f32 %v754_v20, %v249_v24  ;;  %v288_v41 = vmul.f32 %v754_v20, %v250_v25  ;;  %v259_v27 = vld [vmem:[%s741_s28 + $0x90] sm:$0xff] }
  0x20   : > { %v289_v42 = vmul.f32 %v754_v20, %v251_v26  ;;  %v290_v43 = vmul.f32 %v754_v20, %v252_v31  ;;  %v291_v44 = vmul.f32 %v754_v20, %v253_v32  ;;  %v292_v45 = vmul.f32 %v754_v20, %v254_v33  ;;  %v258_v26 = vld [vmem:[%s741_s28 + $0x88] sm:$0xff]  ;;  %v261_v33 = vld [vmem:[%s741_s28 + $0xa0] sm:$0xff] }
  0x21   : > { %v317_v46 = vadd.f32 %v772_v38, %v279_v28  ;;  %v318_v47 = vadd.f32 %v772_v38, %v280_v29  ;;  %v319_v48 = vadd.f32 %v772_v38, %v281_v30  ;;  %v320_v49 = vadd.f32 %v772_v38, %v282_v34  ;;  %v260_v28 = vld [vmem:[%s741_s28 + $0x98] sm:$0xff]  ;;  %v262_v34 = vld [vmem:[%s741_s28 + $0xa8] sm:$0xff] }
  0x22   : > { %v321_v50 = vadd.f32 %v772_v38, %v283_v35  ;;  %v322_v51 = vadd.f32 %v772_v38, %v284_v36  ;;  %v323_v52 = vadd.f32 %v772_v38, %v285_v37  ;;  %v324_v53 = vadd.f32 %v772_v38, %v286_v39 }
  0x23   : > { %v349_v54 = vmax.f32 %v317_v46, 0.0  ;;  %v350_v55 = vmax.f32 %v318_v47, 0.0  ;;  %v351_v56 = vmax.f32 %v319_v48, 0.0  ;;  %v352_v57 = vmax.f32 %v320_v49, 0.0 }
  0x24   : > { %v353_v58 = vmax.f32 %v321_v50, 0.0  ;;  %v354_v59 = vmax.f32 %v322_v51, 0.0  ;;  %v355_v60 = vmax.f32 %v323_v52, 0.0  ;;  %v356_v61 = vmax.f32 %v324_v53, 0.0 }
  0x25   : > { %v641_v62 = vpack.c.bf16 %v349_v54, %v349_v54  ;;  %v642_v63 = vpack.c.bf16 %v350_v55, %v350_v55  ;;  %v643_v0 = vpack.c.bf16 %v351_v56, %v351_v56  ;;  %v644_v1 = vpack.c.bf16 %v352_v57, %v352_v57 }
  0x26   : > { %v645_v4 = vpack.c.bf16 %v353_v58, %v353_v58  ;;  %v646_v5 = vpack.c.bf16 %v354_v59, %v354_v59  ;;  %v647_v6 = vpack.c.bf16 %v355_v60, %v355_v60  ;;  %v648_v7 = vpack.c.bf16 %v356_v61, %v356_v61 }
  0x27   : > { %510 = vst.msk [vmem:[%s793_s11] sm:$0xf] %vm509_vm0, %v641_v62  ;;  %511 = vst.msk [vmem:[%s793_s11 + $0x4] sm:$0xf] %vm509_vm0, %v642_v63  ;;  %v325_v8 = vadd.f32 %v772_v38, %v287_v40  ;;  %v326_v9 = vadd.f32 %v772_v38, %v288_v41  ;;  %v327_v10 = vadd.f32 %v772_v38, %v289_v42  ;;  %v265_v62 = vld [vmem:[%s741_s28 + $0xc0] sm:$0xff] }
  0x28   : > { %512 = vst.msk [vmem:[%s793_s11 + $0x8] sm:$0xf] %vm509_vm0, %v643_v0  ;;  %513 = vst.msk [vmem:[%s793_s11 + $0xc] sm:$0xf] %vm509_vm0, %v644_v1  ;;  %v328_v11 = vadd.f32 %v772_v38, %v290_v43  ;;  %v329_v12 = vadd.f32 %v772_v38, %v291_v44  ;;  %v330_v13 = vadd.f32 %v772_v38, %v292_v45  ;;  %v263_v44 = vld [vmem:[%s741_s28 + $0xb0] sm:$0xff]  ;;  %v264_v45 = vld [vmem:[%s741_s28 + $0xb8] sm:$0xff] }
  0x29   : > { %514 = vst.msk [vmem:[%s793_s11 + $0x10] sm:$0xf] %vm509_vm0, %v645_v4  ;;  %515 = vst.msk [vmem:[%s793_s11 + $0x14] sm:$0xf] %vm509_vm0, %v646_v5  ;;  %v293_v14 = vmul.f32 %v754_v20, %v255_v2  ;;  %v294_v15 = vmul.f32 %v754_v20, %v256_v3  ;;  %v357_v16 = vmax.f32 %v325_v8, 0.0  ;;  %v358_v17 = vmax.f32 %v326_v9, 0.0 }
  0x2a   : > { %516 = vst.msk [vmem:[%s793_s11 + $0x18] sm:$0xf] %vm509_vm0, %v647_v6  ;;  %517 = vst.msk [vmem:[%s793_s11 + $0x1c] sm:$0xf] %vm509_vm0, %v648_v7  ;;  %v359_v18 = vmax.f32 %v327_v10, 0.0  ;;  %v360_v19 = vmax.f32 %v328_v11, 0.0  ;;  %v295_v40 = vmul.f32 %v754_v20, %v257_v21  ;;  %v296_v41 = vmul.f32 %v754_v20, %v258_v26 }
  0x2b   : > { %v361_v22 = vmax.f32 %v329_v12, 0.0  ;;  %v362_v23 = vmax.f32 %v330_v13, 0.0  ;;  %v331_v24 = vadd.f32 %v772_v38, %v293_v14  ;;  %v332_v25 = vadd.f32 %v772_v38, %v294_v15  ;;  %v266_v3 = vld [vmem:[%s741_s28 + $0xc8] sm:$0xff]  ;;  %v267_v4 = vld [vmem:[%s741_s28 + $0xd0] sm:$0xff]  ;;  %v268_v5 = vld [vmem:[%s741_s28 + $0xd8] sm:$0xff] }
  0x2c   : > { %v649_v29 = vpack.c.bf16 %v357_v16, %v357_v16  ;;  %v650_v30 = vpack.c.bf16 %v358_v17, %v358_v17  ;;  %v651_v31 = vpack.c.bf16 %v359_v18, %v359_v18  ;;  %v652_v32 = vpack.c.bf16 %v360_v19, %v360_v19  ;;  %v269_v10 = vld [vmem:[%s741_s28 + $0xe0] sm:$0xff]  ;;  %v270_v11 = vld [vmem:[%s741_s28 + $0xe8] sm:$0xff]  ;;  %v271_v21 = vld [vmem:[%s741_s28 + $0xf0] sm:$0xff] }
  0x2d   : > { %v653_v35 = vpack.c.bf16 %v361_v22, %v361_v22  ;;  %v654_v36 = vpack.c.bf16 %v362_v23, %v362_v23  ;;  %v363_v37 = vmax.f32 %v331_v24, 0.0  ;;  %v364_v39 = vmax.f32 %v332_v25, 0.0  ;;  %v272_v22 = vld [vmem:[%s741_s28 + $0xf8] sm:$0xff] }
  0x2e   : > { %518 = vst.msk [vmem:[%s793_s11 + $0x20] sm:$0xf] %vm509_vm0, %v649_v29  ;;  %519 = vst.msk [vmem:[%s793_s11 + $0x24] sm:$0xf] %vm509_vm0, %v650_v30  ;;  %v297_v42 = vmul.f32 %v754_v20, %v259_v27  ;;  %v298_v43 = vmul.f32 %v754_v20, %v260_v28  ;;  %v299_v48 = vmul.f32 %v754_v20, %v261_v33 }
  0x2f   : > { %520 = vst.msk [vmem:[%s793_s11 + $0x28] sm:$0xf] %vm509_vm0, %v651_v31  ;;  %521 = vst.msk [vmem:[%s793_s11 + $0x2c] sm:$0xf] %vm509_vm0, %v652_v32  ;;  %v655_v46 = vpack.c.bf16 %v363_v37, %v363_v37  ;;  %v656_v47 = vpack.c.bf16 %v364_v39, %v364_v39  ;;  %v300_v49 = vmul.f32 %v754_v20, %v262_v34 }
  0x30   : > { %522 = vst.msk [vmem:[%s793_s11 + $0x30] sm:$0xf] %vm509_vm0, %v653_v35  ;;  %523 = vst.msk [vmem:[%s793_s11 + $0x34] sm:$0xf] %vm509_vm0, %v654_v36  ;;  %v333_v50 = vadd.f32 %v772_v38, %v295_v40  ;;  %v334_v51 = vadd.f32 %v772_v38, %v296_v41  ;;  %v335_v52 = vadd.f32 %v772_v38, %v297_v42 }
  0x31   : > { %v336_v53 = vadd.f32 %v772_v38, %v298_v43  ;;  %524 = vst.msk [vmem:[%s793_s11 + $0x38] sm:$0xf] %vm509_vm0, %v655_v46  ;;  %525 = vst.msk [vmem:[%s793_s11 + $0x3c] sm:$0xf] %vm509_vm0, %v656_v47  ;;  %v337_v54 = vadd.f32 %v772_v38, %v299_v48  ;;  %v338_v55 = vadd.f32 %v772_v38, %v300_v49 }
  0x32   : > { %v301_v56 = vmul.f32 %v754_v20, %v263_v44  ;;  %v302_v57 = vmul.f32 %v754_v20, %v264_v45  ;;  %v365_v58 = vmax.f32 %v333_v50, 0.0  ;;  %v366_v59 = vmax.f32 %v334_v51, 0.0 }
  0x33   : > { %v367_v60 = vmax.f32 %v335_v52, 0.0  ;;  %v368_v61 = vmax.f32 %v336_v53, 0.0  ;;  %v369_v63 = vmax.f32 %v337_v54, 0.0  ;;  %v370_v0 = vmax.f32 %v338_v55, 0.0 }
  0x34   : > { %v339_v1 = vadd.f32 %v772_v38, %v301_v56  ;;  %v340_v2 = vadd.f32 %v772_v38, %v302_v57  ;;  %v657_v6 = vpack.c.bf16 %v365_v58, %v365_v58  ;;  %v658_v7 = vpack.c.bf16 %v366_v59, %v366_v59 }
  0x35   : > { %v659_v8 = vpack.c.bf16 %v367_v60, %v367_v60  ;;  %v660_v9 = vpack.c.bf16 %v368_v61, %v368_v61  ;;  %v661_v12 = vpack.c.bf16 %v369_v63, %v369_v63  ;;  %v662_v13 = vpack.c.bf16 %v370_v0, %v370_v0 }
  0x36   : > { %v371_v14 = vmax.f32 %v339_v1, 0.0  ;;  %v372_v15 = vmax.f32 %v340_v2, 0.0  ;;  %526 = vst.msk [vmem:[%s793_s11 + $0x40] sm:$0xf] %vm509_vm0, %v657_v6  ;;  %527 = vst.msk [vmem:[%s793_s11 + $0x44] sm:$0xf] %vm509_vm0, %v658_v7  ;;  %v303_v16 = vmul.f32 %v754_v20, %v265_v62  ;;  %v304_v17 = vmul.f32 %v754_v20, %v266_v3 }
  0x37   : > { %528 = vst.msk [vmem:[%s793_s11 + $0x48] sm:$0xf] %vm509_vm0, %v659_v8  ;;  %529 = vst.msk [vmem:[%s793_s11 + $0x4c] sm:$0xf] %vm509_vm0, %v660_v9  ;;  %v305_v18 = vmul.f32 %v754_v20, %v267_v4  ;;  %v306_v19 = vmul.f32 %v754_v20, %v268_v5  ;;  %v307_v25 = vmul.f32 %v754_v20, %v269_v10 }
  0x38   : > { %530 = vst.msk [vmem:[%s793_s11 + $0x50] sm:$0xf] %vm509_vm0, %v661_v12  ;;  %531 = vst.msk [vmem:[%s793_s11 + $0x54] sm:$0xf] %vm509_vm0, %v662_v13  ;;  %v663_v23 = vpack.c.bf16 %v371_v14, %v371_v14  ;;  %v664_v24 = vpack.c.bf16 %v372_v15, %v372_v15  ;;  %v308_v26 = vmul.f32 %v754_v20, %v270_v11 }
  0x39   : > { %v341_v27 = vadd.f32 %v772_v38, %v303_v16  ;;  %v342_v28 = vadd.f32 %v772_v38, %v304_v17  ;;  %v343_v29 = vadd.f32 %v772_v38, %v305_v18  ;;  %v344_v30 = vadd.f32 %v772_v38, %v306_v19 }
  0x3a   : > { %532 = vst.msk [vmem:[%s793_s11 + $0x58] sm:$0xf] %vm509_vm0, %v663_v23  ;;  %533 = vst.msk [vmem:[%s793_s11 + $0x5c] sm:$0xf] %vm509_vm0, %v664_v24  ;;  %v345_v31 = vadd.f32 %v772_v38, %v307_v25  ;;  %v346_v32 = vadd.f32 %v772_v38, %v308_v26  ;;  %v309_v33 = vmul.f32 %v754_v20, %v271_v21 }
  0x3b   : > { %v310_v34 = vmul.f32 %v754_v20, %v272_v22  ;;  %v373_v35 = vmax.f32 %v341_v27, 0.0  ;;  %v374_v36 = vmax.f32 %v342_v28, 0.0  ;;  %v375_v37 = vmax.f32 %v343_v29, 0.0 }
  0x3c   : > { %v376_v39 = vmax.f32 %v344_v30, 0.0  ;;  %v377_v40 = vmax.f32 %v345_v31, 0.0  ;;  %v378_v41 = vmax.f32 %v346_v32, 0.0  ;;  %v347_v42 = vadd.f32 %v772_v38, %v309_v33 }
  0x3d   : > { %v348_v43 = vadd.f32 %v772_v38, %v310_v34  ;;  %v665_v44 = vpack.c.bf16 %v373_v35, %v373_v35  ;;  %v666_v45 = vpack.c.bf16 %v374_v36, %v374_v36  ;;  %v667_v20 = vpack.c.bf16 %v375_v37, %v375_v37 }
  0x3e   : > { %v668_v46 = vpack.c.bf16 %v376_v39, %v376_v39  ;;  %v669_v47 = vpack.c.bf16 %v377_v40, %v377_v40  ;;  %v670_v48 = vpack.c.bf16 %v378_v41, %v378_v41  ;;  %v379_v49 = vmax.f32 %v347_v42, 0.0 }
  0x3f   : > { %v380_v50 = vmax.f32 %v348_v43, 0.0  ;;  %534 = vst.msk [vmem:[%s793_s11 + $0x60] sm:$0xf] %vm509_vm0, %v665_v44  ;;  %535 = vst.msk [vmem:[%s793_s11 + $0x64] sm:$0xf] %vm509_vm0, %v666_v45 }
  0x40   : > { %536 = vst.msk [vmem:[%s793_s11 + $0x68] sm:$0xf] %vm509_vm0, %v667_v20  ;;  %537 = vst.msk [vmem:[%s793_s11 + $0x6c] sm:$0xf] %vm509_vm0, %v668_v46  ;;  %v671_v38 = vpack.c.bf16 %v379_v49, %v379_v49 }
  0x41   : > { %538 = vst.msk [vmem:[%s793_s11 + $0x70] sm:$0xf] %vm509_vm0, %v669_v47  ;;  %539 = vst.msk [vmem:[%s793_s11 + $0x74] sm:$0xf] %vm509_vm0, %v670_v48  ;;  %v672_v51 = vpack.c.bf16 %v380_v50, %v380_v50 }
  0x42   : > { %540 = vst.msk [vmem:[%s793_s11 + $0x78] sm:$0xf] %vm509_vm0, %v671_v38 }
  0x43   : > { %541 = vst.msk [vmem:[%s793_s11 + $0x7c] sm:$0xf] %vm509_vm0, %v672_v51 }
  0x44 PF: > { %s15_s18 = sadd.s32 1, %s689_s18  }
  0x45   : > { %p12_p4 = scmp.ge.s32.totalorder %s15_s18, 4  }
  0x47   :  { %14 = sbr.rel (!%p12_p4) target bundleno = 1 (0x1), region = 70 }

// kernel: double_conv_forward.4
= control target key start
LH: loop header
LB: loop body
LE: loop exit
PB: predicated region body
PF: predicated region fallthrough
CT: control target
= control target key end

     0   :  { %s2640_s18 = smov 0   ;;  %s3298_s0 = inlined_call_operand.vmem [shape: bf16[4,10,18,4], index: 0, kind: input, shape index: {}]   ;;  %s3299_s1 = inlined_call_operand.vmem [shape: bf16[9,4,32], index: 1, kind: input, shape index: {}]   ;;  %s3300_s2 = inlined_call_operand.vmem [shape: f32[1,32], index: 2, kind: input, shape index: {}]   ;;  %s3301_s3 = inlined_call_operand.vmem [shape: f32[4,128,32], index: 3, kind: output, shape index: {0}]   ;;  %s3302_s4 = inlined_call_operand.vmem [shape: f32[4,1,32], index: 4, kind: output, shape index: {1}]   ;;  %s3303_s5 = inlined_call_operand.vmem [shape: f32[4,1,32], index: 5, kind: output, shape index: {2}]  }
   0x1 LB: > { %s2068_s19 = sadd.s32 4294967295, %s2608_s18   ;;  %p2072_p0 = scmp.ge.s32.totalorder %s2608_s18, 1  ;;  %s2608_s18 = sphi %s2640_s18, %s16_s18  }
   0x2   : > { %p192_p1 = scmp.lt.s32.totalorder %s2608_s18, 5 }
   0x4   : > { %p193_p2 = pnand %p2072_p0, %p192_p1 }
   0x5   : > { %v2076_v0 = vld [vmem:[%s3299_s1 + $0x2] sm:$0x3] (!%p193_p2)  ;;  %vm520_vm0 = vcmask (!%p193_p2), 1041408   ;;  %v2654_v1 = vld [vmem:[%s3299_s1 + $0x8] sm:$0x3] (!%p193_p2)  ;;  %p226_p3 = scmp.lt.s32.totalorder (!%p193_p2), %s2068_s19, 3 }
   0x6   : > { %196 = sbr.rel (%p193_p2) target bundleno = 417 (0x1a1), region = 32  ;;  %2573 = vmatprep.subr.msk.bf16.mxu1 (!%p193_p2), %vm520_vm0, %v2076_v0  ;;  %2577 = vmatprep.subr.msk.bf16.mxu0 (!%p193_p2), %vm520_vm0, %v2654_v1  ;;  %v522_v2 = vsel (!%p193_p2), %vm520_vm0, %v2076_v0, 0  ;;  %v2662_v3 = vsel (!%p193_p2), %vm520_vm0, %v2654_v1, 0  ;;  %v273_v4 = vld [vmem:[%s3299_s1] sm:$0x3] (!%p193_p2)  ;;  %vm495_vm3 = vcmask (!%p193_p2), 31744  }
   0x7   : > { %2282 = vmatpush3.bf16.msra.mxu1 (!%p193_p2), %v522_v2  ;;  %2354 = vmatpush3.bf16.msra.mxu0 (!%p193_p2), %v2662_v3  ;;  %v2155_v5 = vld [vmem:[%s3299_s1 + $0xa] sm:$0x3] (!%p193_p2)  ;;  %vm274_vm1 = vsmask.f32 (!%p193_p2), 3328  ;;  %vm275_vm2 = vsmask.f32 (!%p193_p2), 7440 }
   0x8   : > { %2574 = vmatprep.subr.msk.bf16.mxu1 (!%p193_p2), %vm520_vm0, %v273_v4  ;;  %2579 = vmatprep.subr.msk.bf16.mxu0 (!%p193_p2), %vm520_vm0, %v2155_v5  ;;  %v2682_v6 = vsel (!%p193_p2), %vm520_vm0, %v273_v4, 0  ;;  %v2708_v18 = vsel (!%p193_p2), %vm520_vm0, %v2155_v5, 0  ;;  %v2713_v23 = vld [vmem:[%s3299_s1 + $0xc] sm:$0x3] (!%p193_p2)  ;;  %vm2725_vm4 = vmor (!%p193_p2), %vm274_vm1, %vm275_vm2  ;;  %vm793_vm5 = vcmask (!%p193_p2), 1042432   ;;  %vm794_vm6 = vcmask (!%p193_p2), 1046532  }
   0x9   : > { %v2734_v38 = vsel (!%p193_p2), %vm520_vm0, %v2713_v23, 0  ;;  %vm2808_vm7 = vmor (!%p193_p2), %vm793_vm5, %vm794_vm6  ;;  %vm1853_vm8 = vcmask (!%p193_p2), 261120   ;;  %vm1907_vm9 = vcmask (!%p193_p2), 253952  }
   0xd   : > { %s3309_s19 = smov (!%p226_p3, %s2068_s19), 3 }
   0xe   : > { %s2583_s28 = smul.u32 120, %s3309_s19  ;;  %s2199_s17 = sshll.u32 %s3309_s19, 7 }
   0xf   : > { %s3205_s24 = scalar_lea.vmem %s3301_s3, %s2199_s17  ;;  %s238_s27 = scalar_lea.vmem %s3302_s4, %s3309_s19 }
  0x10   : > { %s2679_s6 = scalar_lea.vmem %s3298_s0, %s2583_s28  ;;  %s241_s30 = scalar_lea.vmem %s3303_s5, %s3309_s19 }
  0x11   : > { %v2685_v7 = vld [vmem:[%s2679_s6] sm:$0xf]  ;;  %v2688_v8 = vld [vmem:[%s2679_s6 + $0x4] sm:$0xf]  ;;  %v2691_v9 = vld [vmem:[%s2679_s6 + $0x8] sm:$0x1] }
  0x12   : > { %v278_v10 = vshrl.u32 %v2685_v7, 16  ;;  %v281_v11 = vshll.u32 %v2685_v7, 16  ;;  %v287_v12 = vshll.u32 %v2688_v8, 16  ;;  %v291_v13 = vshrl.u32 %v2688_v8, 16  ;;  %v2698_v14 = vld [vmem:[%s2679_s6 + $0xc] sm:$0xf] }
  0x13   : > { %v297_v15 = vshll.u32 %v2691_v9, 16  ;;  %v2702_v16 = vld [vmem:[%s2679_s6 + $0x10] sm:$0xf]  ;;  %v2705_v17 = vld [vmem:[%s2679_s6 + $0x14] sm:$0x1]  ;;  %v302_v25 = vshrl.u32 %v2698_v14, 16 }
  0x14   : > { %v280_v19 = vrot.slane %v278_v10, 4  ;;  %v283_v20 = vrot.slane %v281_v11, 5  ;;  %v289_v21 = vrot.slane %v287_v12, 5  ;;  %v293_v22 = vrot.slane %v291_v13, 4  ;;  %v2721_v32 = vld [vmem:[%s2679_s6 + $0x18] sm:$0xf] }
  0x15   : > { %v299_v24 = vrot.slane %v297_v15, 5  ;;  %v305_v26 = vshll.u32 %v2698_v14, 16  ;;  %v311_v27 = vshll.u32 %v2702_v16, 16  ;;  %v315_v30 = vshrl.u32 %v2702_v16, 16  ;;  %v2730_v37 = vld [vmem:[%s2679_s6 + $0x1c] sm:$0xf] }
  0x16   : > { %v284_v28 = vor.u32 %v283_v20, %v280_v19  ;;  %v294_v29 = vor.u32 %v293_v22, %v289_v21  ;;  %v321_v31 = vshll.u32 %v2705_v17, 16  ;;  %v304_v34 = vrot.slane %v302_v25, 4  ;;  %v2738_v45 = vld [vmem:[%s2679_s6 + $0x20] sm:$0x1]  ;;  %v2748_v56 = vld [vmem:[%s2679_s6 + $0x24] sm:$0xf] }
  0x17   : > { %v307_v35 = vrot.slane %v305_v26, 5  ;;  %v313_v36 = vrot.slane %v311_v27, 5  ;;  %v317_v41 = vrot.slane %v315_v30, 4  ;;  %v808_v44 = vrot.slane %v2705_v17, 5  ;;  %v2753_v61 = vld [vmem:[%s2679_s6 + $0x28] sm:$0xf] }
  0x18   : > { %v285_v39 = vrot.slane %v284_v28, 4  ;;  %v295_v40 = vrot.slane %v294_v29, 4  ;;  %v323_v42 = vrot.slane %v321_v31, 5  ;;  %v326_v46 = vshrl.u32 %v2721_v32, 16  ;;  %v2761_v4 = vld [vmem:[%s2679_s6 + $0x2c] sm:$0x1] }
  0x19   : > { %v308_v43 = vor.u32 %v307_v35, %v304_v34  ;;  %v329_v47 = vshll.u32 %v2721_v32, 16  ;;  %v318_v50 = vor.u32 %v317_v41, %v313_v36  ;;  %v335_v51 = vshll.u32 %v2730_v37, 16  ;;  %v2767_v13 = vld [vmem:[%s2679_s6 + $0x30] sm:$0xf]  ;;  %v2774_v22 = vld [vmem:[%s3299_s1 + $0x4] sm:$0x3] }
  0x1a   : > { %v290_v48 = vsel %vm2725_vm4, %v285_v39, %v289_v21  ;;  %v300_v49 = vsel %vm2725_vm4, %v295_v40, %v299_v24  ;;  %v328_v54 = vrot.slane %v326_v46, 4  ;;  %v339_v59 = vshrl.u32 %v2730_v37, 16  ;;  %v2779_v28 = vld [vmem:[%s2679_s6 + $0x34] sm:$0xf]  ;;  %v2786_v34 = vld [vmem:[%s2679_s6 + $0x38] sm:$0x1] }
  0x1b   : > { %v2077_v52 = vcombine.low %v290_v48, %v300_v49  ;;  %v309_v53 = vrot.slane %v308_v43, 4  ;;  %v331_v55 = vrot.slane %v329_v47, 5  ;;  %v319_v57 = vrot.slane %v318_v50, 4 }
  0x1c   : > { %v337_v58 = vrot.slane %v335_v51, 5  ;;  %v345_v60 = vshll.u32 %v2738_v45, 16  ;;  %v812_v0 = vrot.slane %v2730_v37, 5  ;;  %v815_v2 = vrot.slane %v2738_v45, 5  ;;  %v2799_v51 = vld [vmem:[%s2679_s6 + $0x3c] sm:$0xf] }
  0x1d   : > { %2283 = vmatprep.mubr.msk.bf16.mxu1 %vm495_vm3, %v2077_v52  ;;  %v314_v62 = vsel %vm2725_vm4, %v309_v53, %v313_v36  ;;  %v332_v63 = vor.u32 %v331_v55, %v328_v54  ;;  %v324_v5 = vsel %vm2725_vm4, %v319_v57, %v323_v42  ;;  %v341_v10 = vrot.slane %v339_v59, 4  ;;  %v2804_v57 = vld [vmem:[%s2679_s6 + $0x40] sm:$0xf] }
  0x1e   : > { %v347_v11 = vrot.slane %v345_v60, 5  ;;  %v350_v12 = vshrl.u32 %v2748_v56, 16  ;;  %v2078_v15 = vcombine.low %v314_v62, %v324_v5  ;;  %v353_v20 = vshll.u32 %v2748_v56, 16 }
  0x1f   : > { %v333_v19 = vrot.slane %v332_v63, 4  ;;  %v359_v21 = vshll.u32 %v2753_v61, 16  ;;  %v342_v24 = vor.u32 %v341_v10, %v337_v58  ;;  %v363_v26 = vshrl.u32 %v2753_v61, 16 }
  0x20   : > { %v352_v25 = vrot.slane %v350_v12, 4  ;;  %v369_v27 = vshll.u32 %v2761_v4, 16  ;;  %2355 = vmatprep.mubr.msk.bf16.mxu0 %vm495_vm3, %v2078_v15  ;;  %2284 = vmatmul.mubr.msk.bf16.vlgmr.msra.gmra.mrb[0].mxu1 %vm495_vm3, %v2078_v15  ;;  %v355_v30 = vrot.slane %v353_v20, 5  ;;  %v374_v35 = vshrl.u32 %v2767_v13, 16  ;;  %v2825_v20 = vld [vmem:[%s2679_s6 + $0x44] sm:$0x1] }
  0x21   : > { %v338_v29 = vsel %vm2725_vm4, %v333_v19, %v337_v58  ;;  %v361_v31 = vrot.slane %v359_v21, 5  ;;  %2300 = vmatpush3.bf16.msra.mxu1 %v2682_v6  ;;  %v343_v36 = vrot.slane %v342_v24, 4  ;;  %v365_v39 = vrot.slane %v363_v26, 4 }
  0x22   : > { %v371_v40 = vrot.slane %v369_v27, 5  ;;  %v377_v41 = vshll.u32 %v2767_v13, 16  ;;  %v356_v42 = vor.u32 %v355_v30, %v352_v25  ;;  %v376_v43 = vrot.slane %v374_v35, 4  ;;  %2575 = vmatprep.subr.msk.bf16.mxu1 %vm520_vm0, %v2774_v22 }
  0x23   : > { %v383_v46 = vshll.u32 %v2779_v28, 16  ;;  %v387_v47 = vshrl.u32 %v2779_v28, 16  ;;  %v348_v48 = vsel %vm2725_vm4, %v343_v36, %v347_v11  ;;  %v366_v49 = vor.u32 %v365_v39, %v361_v31  ;;  %v2838_v36 = vld [vmem:[%s2679_s6 + $0x48] sm:$0xf] }
  0x24   : > { %v379_v6 = vrot.slane %v377_v41, 5  ;;  %v393_v50 = vshll.u32 %v2786_v34, 16  ;;  %v2801_v52 = vcombine.low %v338_v29, %v348_v48  ;;  %v357_v53 = vrot.slane %v356_v42, 4  ;;  %v2853_v42 = vld [vmem:[%s2679_s6 + $0x4c] sm:$0xf] }
  0x25   : > { %v385_v54 = vrot.slane %v383_v46, 5  ;;  %v389_v55 = vrot.slane %v387_v47, 4  ;;  %v367_v58 = vrot.slane %v366_v49, 4  ;;  %v2110_v63 = vrot.slane %v2698_v14, 9 }
  0x26   : > { %v380_v59 = vor.u32 %v379_v6, %v376_v43  ;;  %v395_v60 = vrot.slane %v393_v50, 5  ;;  %2356 = vmatmul.mubr.msk.bf16.vlgmr.msra.gmra.mrb[0].mxu0 %vm495_vm3, %v2801_v52  ;;  %2287 = vmatprep.mubr.msk.bf16.mxu1 %vm495_vm3, %v2801_v52  ;;  %v362_v5 = vsel %vm2725_vm4, %v357_v53, %v361_v31  ;;  %v805_v11 = vrot.slane %v2702_v16, 5 }
  0x27   : > { %v390_v10 = vor.u32 %v389_v55, %v385_v54  ;;  %v398_v12 = vshrl.u32 %v2799_v51, 16  ;;  %2372 = vmatpush3.bf16.msra.mxu0 %v2708_v18  ;;  %v372_v15 = vsel %vm2725_vm4, %v367_v58, %v371_v40  ;;  %v401_v21 = vshll.u32 %v2799_v51, 16 }
  0x28   : > { %v381_v19 = vrot.slane %v380_v59, 4  ;;  %v407_v24 = vshll.u32 %v2804_v57, 16  ;;  %v2829_v25 = vcombine.low %v362_v5, %v372_v15  ;;  %v806_v27 = vsel %vm2808_vm7, %v2110_v63, %v805_v11  ;;  %2580 = vmatprep.subr.msk.bf16.mxu0 %vm520_vm0, %v2713_v23 }
  0x29   : > { %v391_v26 = vrot.slane %v390_v10, 4  ;;  %v807_v29 = vrot.slane %v805_v11, 4  ;;  %v400_v30 = vrot.slane %v398_v12, 4  ;;  %v403_v31 = vrot.slane %v401_v21, 5 }
  0x2a   : > { %v386_v18 = vsel %vm2725_vm4, %v381_v19, %v385_v54  ;;  %v409_v35 = vrot.slane %v407_v24, 5  ;;  %2359 = vmatprep.mubr.msk.bf16.mxu0 %vm495_vm3, %v2829_v25  ;;  %2288 = vmatmul.mubr.msk.bf16.gmra.mrb[4].mxu1 %vm495_vm3, %v2829_v25  ;;  %v411_v40 = vshrl.u32 %v2804_v57, 16  ;;  %v417_v41 = vshll.u32 %v2825_v20, 16  ;;  %v2870_v54 = vld [vmem:[%s2679_s6 + $0x50] sm:$0x1] }
  0x2b   : > { %v396_v39 = vsel %vm2725_vm4, %v391_v26, %v395_v60  ;;  %v809_v23 = vsel %vm2808_vm7, %v807_v29, %v808_v44  ;;  %v404_v47 = vor.u32 %v403_v31, %v400_v30  ;;  %v2111_v48 = vrot.slane %v2721_v32, 9  ;;  %v2895_v29 = vld [vmem:[%s2679_s6 + $0x58] sm:$0xf] }
  0x2c   : > { %v2855_v43 = vcombine.low %v386_v18, %v396_v39  ;;  %v2857_v46 = vcombine.low %v806_v27, %v809_v23  ;;  %v413_v49 = vrot.slane %v411_v40, 4  ;;  %v419_v17 = vrot.slane %v417_v41, 5  ;;  %v2901_v39 = vld [vmem:[%s2679_s6 + $0x5c] sm:$0x1] }
  0x2d   : > { %v814_v6 = vrot.slane %v812_v0, 4  ;;  %v422_v44 = vshrl.u32 %v2838_v36, 16  ;;  %v405_v50 = vrot.slane %v404_v47, 4  ;;  %v813_v53 = vsel %vm2808_vm7, %v2111_v48, %v812_v0  ;;  %v2882_v0 = vld [vmem:[%s2679_s6 + $0x54] sm:$0xf] }
  0x2e   : > { %2291 = vmatprep.mubr.msk.bf16.mxu1 %vm495_vm3, %v2855_v43  ;;  %v425_v55 = vshll.u32 %v2838_v36, 16  ;;  %v431_v58 = vshll.u32 %v2853_v42, 16  ;;  %2360 = vmatmul.mubr.msk.bf16.gmra.mrb[4].mxu0 %vm495_vm3, %v2855_v43  ;;  %v414_v59 = vor.u32 %v413_v49, %v409_v35  ;;  %v435_v5 = vshrl.u32 %v2853_v42, 16 }
  0x2f   : > { %v816_v60 = vsel %vm2808_vm7, %v814_v6, %v815_v2  ;;  %v424_v63 = vrot.slane %v422_v44, 4  ;;  %2373 = vmatprep.mubr.msk.bf16.mxu0 %vm495_vm3, %v2857_v46  ;;  %v410_v10 = vsel %vm2725_vm4, %v405_v50, %v409_v35  ;;  %v441_v2 = vshll.u32 %v2870_v54, 16 }
  0x30   : > { %v2888_v11 = vcombine.low %v813_v53, %v816_v60  ;;  %v427_v12 = vrot.slane %v425_v55, 5  ;;  %v433_v45 = vrot.slane %v431_v58, 5  ;;  %v415_v15 = vrot.slane %v414_v59, 4  ;;  %v2920_v58 = vld [vmem:[%s3299_s1 + $0xe] sm:$0x3] }
  0x31   : > { %v437_v19 = vrot.slane %v435_v5, 4  ;;  %v2112_v21 = vrot.slane %v2748_v56, 9  ;;  %v819_v26 = vrot.slane %v2753_v61, 5  ;;  %v822_v27 = vrot.slane %v2761_v4, 5 }
  0x32   : > { %v428_v24 = vor.u32 %v427_v12, %v424_v63  ;;  %v446_v18 = vshrl.u32 %v2882_v0, 16  ;;  %v420_v30 = vsel %vm2725_vm4, %v415_v15, %v419_v17  ;;  %v443_v35 = vrot.slane %v441_v2, 5 }
  0x33   : > { %v438_v31 = vor.u32 %v437_v19, %v433_v45  ;;  %v449_v23 = vshll.u32 %v2882_v0, 16  ;;  %v2904_v40 = vcombine.low %v410_v10, %v420_v30  ;;  %v820_v47 = vsel %vm2808_vm7, %v2112_v21, %v819_v26 }
  0x34   : > { %v429_v41 = vrot.slane %v428_v24, 4  ;;  %v821_v4 = vrot.slane %v819_v26, 4  ;;  %v448_v49 = vrot.slane %v446_v18, 4  ;;  %v455_v44 = vshll.u32 %v2895_v29, 16 }
  0x35   : > { %v439_v48 = vrot.slane %v438_v31, 4  ;;  %v451_v6 = vrot.slane %v449_v23, 5  ;;  %2292 = vmatmul.mubr.msk.bf16.gmra.mrb[8].mxu1 %vm495_vm3, %v2904_v40  ;;  %v459_v53 = vshrl.u32 %v2895_v29, 16  ;;  %v465_v55 = vshll.u32 %v2901_v39, 16 }
  0x36   : > { %v434_v17 = vsel %vm2725_vm4, %v429_v41, %v433_v45  ;;  %v823_v50 = vsel %vm2808_vm7, %v821_v4, %v822_v27  ;;  %2374 = vmatmul.mubr.msk.bf16.vlgmr.msra.gmra.mrb[0].mxu0 %vm495_vm3, %v2888_v11  ;;  %v457_v5 = vrot.slane %v455_v44, 5  ;;  %v2113_v45 = vrot.slane %v2767_v13, 9 }
  0x37   : > { %v444_v59 = vsel %vm2725_vm4, %v439_v48, %v443_v35  ;;  %v2926_v60 = vcombine.low %v820_v47, %v823_v50  ;;  %v452_v63 = vor.u32 %v451_v6, %v448_v49  ;;  %2390 = vmatpush3.bf16.msra.mxu0 %v2734_v38  ;;  %v461_v12 = vrot.slane %v459_v53, 4  ;;  %v2964_v53 = vld [vmem:[%s2679_s6 + $0x64] sm:$0xf] }
  0x38   : > { %v2929_v10 = vcombine.low %v434_v17, %v444_v59  ;;  %v826_v19 = vrot.slane %v2779_v28, 5  ;;  %v829_v2 = vrot.slane %v2786_v34, 5  ;;  %v2114_v21 = vrot.slane %v2799_v51, 9  ;;  %2581 = vmatprep.subr.msk.bf16.mxu0 %vm520_vm0, %v2920_v58 }
  0x39   : > { %2377 = vmatprep.mubr.msk.bf16.mxu0 %vm495_vm3, %v2926_v60  ;;  %v453_v15 = vrot.slane %v452_v63, 4  ;;  %v462_v38 = vor.u32 %v461_v12, %v457_v5  ;;  %v467_v24 = vrot.slane %v465_v55, 5  ;;  %v833_v26 = vrot.slane %v2804_v57, 5 }
  0x3a   : > { %2295 = vmatprep.mubr.msk.bf16.mxu1 %vm495_vm3, %v2929_v10  ;;  %v836_v27 = vrot.slane %v2825_v20, 5  ;;  %v827_v18 = vsel %vm2808_vm7, %v2113_v45, %v826_v19  ;;  %v828_v30 = vrot.slane %v826_v19, 4  ;;  %v2093_v34 = vcombine.low %v2685_v7, %v2688_v8  ;;  %v2986_v19 = vld [vmem:[%s2679_s6 + $0x68] sm:$0x1] }
  0x3b   : > { %v840_v31 = vrot.slane %v2853_v42, 5  ;;  %v458_v35 = vsel %vm2725_vm4, %v453_v15, %v457_v5  ;;  %v463_v23 = vrot.slane %v462_v38, 4  ;;  %v834_v41 = vsel %vm2808_vm7, %v2114_v21, %v833_v26  ;;  %v2975_v5 = vld [vmem:[%s2679_s6 + $0x60] sm:$0xf] }
  0x3c   : > { %v835_v47 = vrot.slane %v833_v26, 4  ;;  %v830_v20 = vsel %vm2808_vm7, %v828_v30, %v829_v2  ;;  %v2115_v4 = vrot.slane %v2838_v36, 9  ;;  %v843_v49 = vrot.slane %v2870_v54, 5 }
  0x3d   : > { %v842_v48 = vrot.slane %v840_v31, 4  ;;  %v468_v6 = vsel %vm2725_vm4, %v463_v23, %v467_v24  ;;  %v2958_v44 = vcombine.low %v827_v18, %v830_v20  ;;  %v2116_v50 = vrot.slane %v2882_v0, 9  ;;  %v3011_v23 = vld [vmem:[%s2679_s6 + $0x70] sm:$0xf] }
  0x3e   : > { %v837_v17 = vsel %vm2808_vm7, %v835_v47, %v836_v27  ;;  %v2966_v55 = vcombine.low %v458_v35, %v468_v6  ;;  %v847_v63 = vrot.slane %v2895_v29, 5  ;;  %v850_v54 = vrot.slane %v2901_v39, 5 }
  0x3f   : > { %v2968_v59 = vcombine.low %v834_v41, %v837_v17  ;;  %2378 = vmatmul.mubr.msk.bf16.gmra.mrb[4].mxu0 %vm495_vm3, %v2958_v44  ;;  %v841_v12 = vsel %vm2808_vm7, %v2115_v4, %v840_v31  ;;  %v844_v45 = vsel %vm2808_vm7, %v842_v48, %v843_v49  ;;  %v1295_v39 = vrot.slane %v2964_v53, 5  ;;  %v272_v49 = vld [vmem:[%s2679_s6 + $0x74] sm:$0x1] }
  0x40   : > { %2296 = vmatmul.mubr.msk.bf16.gmra.mrb[12].mxu1 %vm495_vm3, %v2966_v55  ;;  %v849_v15 = vrot.slane %v847_v63, 4  ;;  %v848_v2 = vsel %vm2808_vm7, %v2116_v50, %v847_v63  ;;  %v801_v21 = vrot.slane %v2691_v9, 5  ;;  %v2154_v24 = vrot.slane %v2975_v5, 9 }
  0x41   : > { %2381 = vmatprep.mubr.msk.bf16.mxu0 %vm495_vm3, %v2968_v59  ;;  %2301 = vmatprep.mubr.msk.bf16.mxu1 %vm495_vm3, %v2093_v34  ;;  %v2109_v26 = vrot.slane %v2685_v7, 9  ;;  %v2997_v27 = vcombine.low %v841_v12, %v844_v45  ;;  %v1297_v18 = vrot.slane %v1295_v39, 4  ;;  %v1298_v30 = vrot.slane %v2986_v19, 5  ;;  %v3002_v34 = vld [vmem:[%s2679_s6 + $0x6c] sm:$0xf] }
  0x42   : > { %v851_v38 = vsel %vm2808_vm7, %v849_v15, %v850_v54  ;;  %v798_v31 = vrot.slane %v2688_v8, 5  ;;  %v3006_v9 = vcombine.low %v2698_v14, %v2702_v16  ;;  %v1551_v7 = vshrl.u32 %v3002_v34, 16 }
  0x43   : > { %v3008_v35 = vcombine.low %v848_v2, %v851_v38  ;;  %v1554_v41 = vshll.u32 %v3002_v34, 16  ;;  %v3017_v47 = vcombine.low %v2721_v32, %v2730_v37  ;;  %v1564_v4 = vshrl.u32 %v3011_v23, 16  ;;  %v2134_v37 = vld [vmem:[%s3299_s1 + $0x6] sm:$0x3] }
  0x44   : > { %v799_v8 = vsel %vm2808_vm7, %v2109_v26, %v798_v31  ;;  %v800_v20 = vrot.slane %v798_v31, 4  ;;  %v903_v14 = vsel %vm520_vm0, %v2774_v22, 0  ;;  %v1296_v16 = vsel %vm2808_vm7, %v2154_v24, %v1295_v39 }
  0x45   : > { %v1299_v48 = vsel %vm2808_vm7, %v1297_v18, %v1298_v30  ;;  %v1553_v6 = vrot.slane %v1551_v7, 4  ;;  %v1556_v17 = vrot.slane %v1554_v41, 5  ;;  %v1560_v63 = vshll.u32 %v3011_v23, 16 }
  0x46   : > { %v802_v32 = vsel %vm2808_vm7, %v800_v20, %v801_v21  ;;  %v1566_v54 = vrot.slane %v1564_v4, 4  ;;  %v3043_v12 = vcombine.low %v1296_v16, %v1299_v48  ;;  %v1570_v45 = vshll.u32 %v272_v49, 16 }
  0x47   : > { %2382 = vmatmul.mubr.msk.bf16.gmra.mrb[8].mxu0 %vm495_vm3, %v2997_v27  ;;  %v2118_v22 = vcombine.low %v799_v8, %v802_v32  ;;  %v1557_v50 = vor.u32 %v1556_v17, %v1553_v6  ;;  %v2185_v15 = vrot.slane %v3002_v34, 9  ;;  %v1562_v2 = vrot.slane %v1560_v63, 5 }
  0x48   : > { %2302 = vmatmul.mubr.msk.bf16.vlgmr.msra.gmra.mrb[0].mxu1 %vm495_vm3, %v3006_v9  ;;  %2385 = vmatprep.mubr.msk.bf16.mxu0 %vm495_vm3, %v3008_v35  ;;  %v1701_v21 = vrot.slane %v3011_v23, 5  ;;  %v1704_v38 = vrot.slane %v272_v49, 5  ;;  %v3050_v24 = vcombine.low %v2748_v56, %v2753_v61  ;;  %v3054_v26 = vcombine.low %v2767_v13, %v2779_v28 }
  0x49   : > { %2318 = vmatpush3.bf16.msra.mxu1 %v903_v14  ;;  %2305 = vmatprep.mubr.msk.bf16.mxu1 %vm495_vm3, %v3017_v47  ;;  %v1558_v39 = vrot.slane %v1557_v50, 4  ;;  %v1572_v18 = vrot.slane %v1570_v45, 5  ;;  %v1567_v31 = vor.u32 %v1566_v54, %v1562_v2  ;;  %v3080_v62 = vcombine.low %v2799_v51, %v2804_v57  ;;  %v2186_v14 = vld [vmem:[%s3299_s1 + $0x10] sm:$0x3] }
  0x4a   : > { %2576 = vmatprep.subr.msk.bf16.mxu1 %vm520_vm0, %v2134_v37  ;;  %v3060_v7 = vsel %vm2808_vm7, %v2185_v15, %v1701_v21  ;;  %v1703_v41 = vrot.slane %v1701_v21, 4  ;;  %v1583_v20 = vsel %vm520_vm0, %v2920_v58, 0  ;;  %v3086_v4 = vcombine.low %v2838_v36, %v2853_v42 }
  0x4b   : > { %v1563_v30 = vsel %vm2725_vm4, %v1558_v39, %v1562_v2  ;;  %v1568_v8 = vrot.slane %v1567_v31, 4  ;;  %v2100_v51 = vcombine.low %v2882_v0, %v2895_v29  ;;  %v2135_v57 = vcombine.low %v2975_v5, %v2964_v53 }
  0x4c   : > { %v3066_v56 = vsel %vm2808_vm7, %v1703_v41, %v1704_v38  ;;  %v1029_v36 = vsel %vm520_vm0, %v2134_v37, 0  ;;  %v2166_v42 = vcombine.low %v3002_v34, %v3011_v23  ;;  %v1148_v0 = vshll.u32 %v2975_v5, 16 }
  0x4d   : > { %v2187_v61 = vcombine.low %v3060_v7, %v3066_v56  ;;  %v1573_v13 = vsel %vm2725_vm4, %v1568_v8, %v1572_v18  ;;  %v1158_v29 = vshrl.u32 %v2964_v53, 16  ;;  %v1715_v58 = vsel %vm520_vm0, %v2186_v14, 0 }
  0x4e   : > { %v2176_v28 = vcombine.low %v1563_v30, %v1573_v13  ;;  %v1150_v23 = vrot.slane %v1148_v0, 5 }
  0x4f   : > { %2386 = vmatmul.mubr.msk.bf16.gmra.mrb[12].mxu0 %vm495_vm3, %v3043_v12  ;;  %v1160_v48 = vrot.slane %v1158_v29, 4 }
  0x50   : > { %2306 = vmatmul.mubr.msk.bf16.gmra.mrb[4].mxu1 %vm495_vm3, %v3050_v24  ;;  %2391 = vmatprep.mubr.msk.bf16.mxu0 %vm495_vm3, %v3017_v47 }
  0x51   : > { %2309 = vmatprep.mubr.msk.bf16.mxu1 %vm495_vm3, %v3054_v26 }
  0x57   : > { %2392 = vmatmul.mubr.msk.bf16.vlgmr.msra.gmra.mrb[0].mxu0 %vm495_vm3, %v3050_v24 }
  0x58   : > { %2310 = vmatmul.mubr.msk.bf16.gmra.mrb[8].mxu1 %vm495_vm3, %v3080_v62  ;;  %2408 = vmatpush3.bf16.msra.mxu0 %v1583_v20 }
  0x59   : > { %2313 = vmatprep.mubr.msk.bf16.mxu1 %vm495_vm3, %v3086_v4  ;;  %2395 = vmatprep.mubr.msk.bf16.mxu0 %vm495_vm3, %v3054_v26 }
  0x5a   : > { %2582 = vmatprep.subr.msk.bf16.mxu0 %vm520_vm0, %v2186_v14 }
  0x5f   : > { %2396 = vmatmul.mubr.msk.bf16.gmra.mrb[4].mxu0 %vm495_vm3, %v3080_v62 }
  0x60   : > { %2314 = vmatmul.mubr.msk.bf16.gmra.mrb[12].mxu1 %vm495_vm3, %v2100_v51  ;;  %2399 = vmatprep.mubr.msk.bf16.mxu0 %vm495_vm3, %v3086_v4 }
  0x61   : > { %2319 = vmatprep.mubr.msk.bf16.mxu1 %vm495_vm3, %v2118_v22 }
  0x67   : > { %2400 = vmatmul.mubr.msk.bf16.gmra.mrb[8].mxu0 %vm495_vm3, %v2100_v51 }
  0x68   : > { %2320 = vmatmul.mubr.msk.bf16.vlgmr.msra.gmra.mrb[0].mxu1 %vm495_vm3, %v2857_v46  ;;  %2403 = vmatprep.mubr.msk.bf16.mxu0 %vm495_vm3, %v2135_v57  ;;  %v1145_v46 = vshrl.u32 %v2975_v5, 16  ;;  %v1164_v5 = vshll.u32 %v2986_v19, 16 }
  0x69   : > { %2336 = vmatpush3.bf16.msra.mxu1 %v1029_v36  ;;  %2323 = vmatprep.mubr.msk.bf16.mxu1 %vm495_vm3, %v2888_v11 }
  0x6a   : > { %2578 = vmatprep.subr.msk.bf16.mxu1 %vm520_vm0, %v2654_v1  ;;  %v1154_v1 = vshll.u32 %v2964_v53, 16  ;;  %v1147_v34 = vrot.slane %v1145_v46, 4  ;;  %v1166_v49 = vrot.slane %v1164_v5, 5 }
  0x6c   : > { %v1156_v16 = vrot.slane %v1154_v1, 5 }
  0x6e   : > { %v1161_v53 = vor.u32 %v1160_v48, %v1156_v16 }
  0x6f   : > { %2404 = vmatmul.mubr.msk.bf16.gmra.mrb[12].mxu0 %vm495_vm3, %v2166_v42 }
  0x70   : > { %2324 = vmatmul.mubr.msk.bf16.gmra.mrb[4].mxu1 %vm495_vm3, %v2926_v60  ;;  %2409 = vmatprep.mubr.msk.bf16.mxu0 %vm495_vm3, %v2801_v52  ;;  %v1151_v52 = vor.u32 %v1150_v23, %v1147_v34  ;;  %v1162_v37 = vrot.slane %v1161_v53, 4 }
  0x71   : > { %2327 = vmatprep.mubr.msk.bf16.mxu1 %vm495_vm3, %v2958_v44 }
  0x72   : > { %v1152_v32 = vrot.slane %v1151_v52, 4 }
  0x77   : > { %2410 = vmatmul.mubr.msk.bf16.vlgmr.msra.gmra.mrb[0].mxu0 %vm495_vm3, %v2829_v25  ;;  %v1157_v25 = vsel %vm2725_vm4, %v1152_v32, %v1156_v16 }
  0x78   : > { %2328 = vmatmul.mubr.msk.bf16.gmra.mrb[8].mxu1 %vm495_vm3, %v2968_v59  ;;  %2426 = vmatpush3.bf16.msra.mxu0 %v1715_v58 }
  0x79   : > { %2331 = vmatprep.mubr.msk.bf16.mxu1 %vm495_vm3, %v2997_v27  ;;  %2413 = vmatprep.mubr.msk.bf16.mxu0 %vm495_vm3, %v2855_v43  ;;  %v1167_v43 = vsel %vm2725_vm4, %v1162_v37, %v1166_v49 }
  0x7a   : > { %v2145_v19 = vcombine.low %v1157_v25, %v1167_v43 }
  0x7f   : > { %2414 = vmatmul.mubr.msk.bf16.gmra.mrb[4].mxu0 %vm495_vm3, %v2904_v40 }
  0x80   : > { %2332 = vmatmul.mubr.msk.bf16.gmra.mrb[12].mxu1 %vm495_vm3, %v3008_v35  ;;  %2417 = vmatprep.mubr.msk.bf16.mxu0 %vm495_vm3, %v2929_v10 }
  0x81   : > { %2337 = vmatprep.mubr.msk.bf16.mxu1 %vm495_vm3, %v3006_v9 }
  0x87   : > { %2418 = vmatmul.mubr.msk.bf16.gmra.mrb[8].mxu0 %vm495_vm3, %v2966_v55 }
  0x88   : > { %2338 = vmatmul.mubr.msk.bf16.vlgmr.msra.gmra.mrb[0].mxu1 %vm495_vm3, %v3017_v47  ;;  %2421 = vmatprep.mubr.msk.bf16.mxu0 %vm495_vm3, %v2145_v19 }
  0x89   : > { %2444 = vmatpush3.bf16.msra.mxu1 %v2662_v3  ;;  %2341 = vmatprep.mubr.msk.bf16.mxu1 %vm495_vm3, %v3050_v24 }
  0x8f   : > { %2422 = vmatmul.mubr.msk.bf16.gmra.mrb[12].mxu0 %vm495_vm3, %v2176_v28 }
  0x90   : > { %2342 = vmatmul.mubr.msk.bf16.gmra.mrb[4].mxu1 %vm495_vm3, %v3054_v26  ;;  %2427 = vmatprep.mubr.msk.bf16.mxu0 %vm495_vm3, %v2888_v11 }
  0x91   : > { %2345 = vmatprep.mubr.msk.bf16.mxu1 %vm495_vm3, %v3080_v62 }
  0x97   : > { %2428 = vmatmul.mubr.msk.bf16.vlgmr.msra.gmra.mrb[0].mxu0 %vm495_vm3, %v2926_v60 }
  0x98   : > { %2346 = vmatmul.mubr.msk.bf16.gmra.mrb[8].mxu1 %vm495_vm3, %v3086_v4  ;;  %2431 = vmatprep.mubr.msk.bf16.mxu0 %vm495_vm3, %v2958_v44 }
  0x99   : > { %2349 = vmatprep.mubr.msk.bf16.mxu1 %vm495_vm3, %v2100_v51 }
  0x9f   : > { %2432 = vmatmul.mubr.msk.bf16.gmra.mrb[4].mxu0 %vm495_vm3, %v2968_v59 }
  0xa0   : > { %2350 = vmatmul.mubr.msk.bf16.gmra.mrb[12].mxu1 %vm495_vm3, %v2135_v57  ;;  %2435 = vmatprep.mubr.msk.bf16.mxu0 %vm495_vm3, %v2997_v27 }
  0xa1   : > { %2363 = vmatprep.mubr.msk.bf16.mxu1 %vm495_vm3, %v2904_v40 }
  0xa7   : > { %2436 = vmatmul.mubr.msk.bf16.gmra.mrb[8].mxu0 %vm495_vm3, %v3008_v35 }
  0xa8   : > { %2364 = vmatmul.mubr.msk.bf16.vlgmr.msra.gmra.mrb[8].mxu1 %vm495_vm3, %v2929_v10  ;;  %2439 = vmatprep.mubr.msk.bf16.mxu0 %vm495_vm3, %v3043_v12 }
  0xa9   : > { %2367 = vmatprep.mubr.msk.bf16.mxu1 %vm495_vm3, %v2966_v55  ;;  %v3200_v55 = vld [vmem:[%s3300_s2] ss:$0 sm:$0xff] }
  0xaf   : > { %2440 = vmatmul.mubr.msk.bf16.gmra.mrb[12].mxu0 %vm495_vm3, %v2187_v61 }
  0xb0   : > { %2368 = vmatmul.mubr.msk.bf16.gmra.mrb[12].mxu1 %vm495_vm3, %v2145_v19 }
 0x15b   : > { %v2339_v3 = vpop.f32.mrb[0].mxu1 }
 0x15c   : > { %v1065_v33 = vpop.f32.mrb[1].mxu1 }
 0x15d   : > { %v2340_v11 = vpop.f32.mrb[2].mxu1 }
 0x15e   : > { %v1068_v40 = vpop.f32.mrb[3].mxu1 }
 0x163   : > { %v2343_v60 = vpop.f32.mrb[4].mxu1 }
 0x164   : > { %v1081_v44 = vpop.f32.mrb[5].mxu1 }
 0x165   : > { %v2344_v10 = vpop.f32.mrb[6].mxu1 }
 0x166   : > { %v1084_v59 = vpop.f32.mrb[7].mxu1 }
 0x16a   : > { %v2429_v27 = vpop.f32.mrb[0].mxu0 }
 0x16b   : > { %v2445_v9 = vadd.f32 %v2429_v27, %v2339_v3  ;;  %v1751_v35 = vpop.f32.mrb[1].mxu0 }
 0x16c   : > { %v2446_v47 = vadd.f32 %v1751_v35, %v1065_v33  ;;  %v2430_v6 = vpop.f32.mrb[2].mxu0 }
 0x16d   : > { %v1839_v17 = vadd.f32 %v2445_v9, %v3200_v55  ;;  %v2447_v22 = vadd.f32 %v2430_v6, %v2340_v11  ;;  %v1754_v50 = vpop.f32.mrb[3].mxu0 }
 0x16e   : > { %v1837_v63 = vadd.f32 %v2446_v47, %v3200_v55  ;;  %v2448_v54 = vadd.f32 %v1754_v50, %v1068_v40 }
 0x16f   : > { %1856 = vst.msk [vmem:[%s3205_s24 + $0x10] sm:$0xff] %vm1853_vm8, %v1839_v17  ;;  %v1840_v12 = vadd.f32 %v2447_v22, %v3200_v55  ;;  %v1911_v39 = vmul.f32 %v1839_v17, %v1839_v17  ;;  %v1873_v7 = vsel %vm1853_vm8, %v1839_v17, 0.0 }
 0x170   : > { %1854 = vst.msk [vmem:[%s3205_s24] sm:$0xff] %vm1853_vm8, %v1837_v63  ;;  %v1909_v45 = vmul.f32 %v1837_v63, %v1837_v63  ;;  %v1838_v15 = vadd.f32 %v2448_v54, %v3200_v55  ;;  %v1870_v2 = vsel %vm1853_vm8, %v1837_v63, 0.0 }
 0x171   : > { %1857 = vst.msk [vmem:[%s3205_s24 + $0x18] sm:$0xff] %vm1853_vm8, %v1840_v12  ;;  %v1912_v26 = vmul.f32 %v1840_v12, %v1840_v12  ;;  %v1928_v14 = vsel %vm1853_vm8, %v1911_v39, 0.0  ;;  %v1875_v51 = vsel %vm1853_vm8, %v1840_v12, 0.0 }
 0x172   : > { %1855 = vst.msk [vmem:[%s3205_s24 + $0x8] sm:$0xff] %vm1853_vm8, %v1838_v15  ;;  %v1871_v21 = vsel %vm1853_vm8, %v1838_v15, 0.0  ;;  %v1910_v38 = vmul.f32 %v1838_v15, %v1838_v15  ;;  %v2433_v24 = vpop.f32.mrb[4].mxu0  ;;  %v1925_v41 = vsel %vm1853_vm8, %v1909_v45, 0.0 }
 0x173   : > { %v1872_v18 = vadd.f32 %v1871_v21, %v1870_v2  ;;  %v2449_v30 = vadd.f32 %v2433_v24, %v2343_v60  ;;  %v1767_v31 = vpop.f32.mrb[5].mxu0  ;;  %v1930_v42 = vsel %vm1853_vm8, %v1912_v26, 0.0 }
 0x174   : > { %v1926_v8 = vsel %vm1853_vm8, %v1910_v38, 0.0  ;;  %v2450_v56 = vadd.f32 %v1767_v31, %v1081_v44  ;;  %v2434_v61 = vpop.f32.mrb[6].mxu0 }
 0x175   : > { %v1874_v13 = vadd.f32 %v1873_v7, %v1872_v18  ;;  %v1927_v28 = vadd.f32 %v1926_v8, %v1925_v41  ;;  %v1843_v62 = vadd.f32 %v2449_v30, %v3200_v55  ;;  %v2451_v20 = vadd.f32 %v2434_v61, %v2344_v10  ;;  %v1770_v4 = vpop.f32.mrb[7].mxu0 }
 0x176   : > { %v1841_v57 = vadd.f32 %v2450_v56, %v3200_v55  ;;  %v2452_v36 = vadd.f32 %v1770_v4, %v1084_v59 }
 0x177   : > { %v1929_v46 = vadd.f32 %v1928_v14, %v1927_v28  ;;  %1860 = vst.msk [vmem:[%s3205_s24 + $0x30] sm:$0xff] %vm1853_vm8, %v1843_v62  ;;  %v1876_v0 = vadd.f32 %v1875_v51, %v1874_v13  ;;  %v1844_v58 = vadd.f32 %v2451_v20, %v3200_v55  ;;  %v1915_v5 = vmul.f32 %v1843_v62, %v1843_v62 }
 0x178   : > { %1858 = vst.msk [vmem:[%s3205_s24 + $0x20] sm:$0xff] %vm1853_vm8, %v1841_v57  ;;  %v1877_v1 = vsel %vm1853_vm8, %v1841_v57, 0.0  ;;  %v1913_v29 = vmul.f32 %v1841_v57, %v1841_v57  ;;  %v1842_v34 = vadd.f32 %v2452_v36, %v3200_v55  ;;  %v1881_v19 = vsel %vm1853_vm8, %v1843_v62, 0.0 }
 0x179   : > { %v1878_v23 = vadd.f32 %v1877_v1, %v1876_v0  ;;  %v1931_v16 = vadd.f32 %v1930_v42, %v1929_v46  ;;  %1861 = vst.msk [vmem:[%s3205_s24 + $0x38] sm:$0xff] %vm1853_vm8, %v1844_v58  ;;  %v1916_v40 = vmul.f32 %v1844_v58, %v1844_v58  ;;  %v1883_v9 = vsel %vm1853_vm8, %v1844_v58, 0.0 }
 0x17a   : > { %v1932_v48 = vsel %vm1853_vm8, %v1913_v29, 0.0  ;;  %1859 = vst.msk [vmem:[%s3205_s24 + $0x28] sm:$0xff] %vm1853_vm8, %v1842_v34  ;;  %v1879_v52 = vsel %vm1853_vm8, %v1842_v34, 0.0  ;;  %v2437_v53 = vpop.f32.mrb[8].mxu0  ;;  %v1914_v49 = vmul.f32 %v1842_v34, %v1842_v34  ;;  %v1936_v22 = vsel %vm1853_vm8, %v1915_v5, 0.0 }
 0x17b   : > { %v1933_v32 = vadd.f32 %v1932_v48, %v1931_v16  ;;  %v1880_v37 = vadd.f32 %v1879_v52, %v1878_v23  ;;  %v2365_v25 = vpop.f32.mrb[8].mxu1  ;;  %v1783_v43 = vpop.f32.mrb[9].mxu0  ;;  %v1938_v15 = vsel %vm1853_vm8, %v1916_v40, 0.0 }
 0x17c   : > { %v2453_v3 = vadd.f32 %v2437_v53, %v2365_v25  ;;  %v1245_v33 = vpop.f32.mrb[9].mxu1  ;;  %v2438_v11 = vpop.f32.mrb[10].mxu0  ;;  %v1934_v44 = vsel %vm1853_vm8, %v1914_v49, 0.0 }
 0x17d   : > { %v1882_v60 = vadd.f32 %v1881_v19, %v1880_v37  ;;  %v2454_v10 = vadd.f32 %v1783_v43, %v1245_v33  ;;  %v2366_v59 = vpop.f32.mrb[10].mxu1  ;;  %v1786_v27 = vpop.f32.mrb[11].mxu0  ;;  %v1935_v35 = vadd.f32 %v1934_v44, %v1933_v32 }
 0x17e   : > { %v1847_v47 = vadd.f32 %v2453_v3, %v3200_v55  ;;  %v2455_v6 = vadd.f32 %v2438_v11, %v2366_v59  ;;  %v1248_v17 = vpop.f32.mrb[11].mxu1 }
 0x17f   : > { %v1845_v50 = vadd.f32 %v2454_v10, %v3200_v55  ;;  %v1884_v63 = vadd.f32 %v1883_v9, %v1882_v60  ;;  %v2456_v54 = vadd.f32 %v1786_v27, %v1248_v17  ;;  %v1937_v12 = vadd.f32 %v1936_v22, %v1935_v35 }
 0x180   : > { %1864 = vst.msk [vmem:[%s3205_s24 + $0x50] sm:$0xff] %vm1853_vm8, %v1847_v47  ;;  %v1848_v45 = vadd.f32 %v2455_v6, %v3200_v55  ;;  %v1919_v18 = vmul.f32 %v1847_v47, %v1847_v47  ;;  %v1889_v4 = vsel %vm1853_vm8, %v1847_v47, 0.0 }
 0x181   : > { %1862 = vst.msk [vmem:[%s3205_s24 + $0x40] sm:$0xff] %vm1853_vm8, %v1845_v50  ;;  %v1885_v39 = vsel %vm1853_vm8, %v1845_v50, 0.0  ;;  %v1917_v2 = vmul.f32 %v1845_v50, %v1845_v50  ;;  %v1846_v21 = vadd.f32 %v2456_v54, %v3200_v55  ;;  %v1939_v24 = vadd.f32 %v1938_v15, %v1937_v12 }
 0x182   : > { %v1886_v38 = vadd.f32 %v1885_v39, %v1884_v63  ;;  %1865 = vst.msk [vmem:[%s3205_s24 + $0x58] sm:$0xff] %vm1853_vm8, %v1848_v45  ;;  %v2441_v26 = vpop.f32.mrb[12].mxu0  ;;  %v1920_v61 = vmul.f32 %v1848_v45, %v1848_v45  ;;  %v1944_v58 = vsel %vm1853_vm8, %v1919_v18, 0.0  ;;  %v1891_v34 = vsel %vm1853_vm8, %v1848_v45, 0.0 }
 0x183   : > { %v1940_v30 = vsel %vm1853_vm8, %v1917_v2, 0.0  ;;  %1863 = vst.msk [vmem:[%s3205_s24 + $0x48] sm:$0xff] %vm1853_vm8, %v1846_v21  ;;  %v1887_v31 = vsel %vm1853_vm8, %v1846_v21, 0.0  ;;  %v1918_v7 = vmul.f32 %v1846_v21, %v1846_v21  ;;  %v2369_v41 = vpop.f32.mrb[12].mxu1  ;;  %v1799_v8 = vpop.f32.mrb[13].mxu0 }
 0x184   : > { %v1941_v56 = vadd.f32 %v1940_v30, %v1939_v24  ;;  %v1888_v13 = vadd.f32 %v1887_v31, %v1886_v38  ;;  %v2457_v28 = vadd.f32 %v2441_v26, %v2369_v41  ;;  %v1261_v62 = vpop.f32.mrb[13].mxu1  ;;  %v2442_v20 = vpop.f32.mrb[14].mxu0  ;;  %v1946_v48 = vsel %vm1853_vm8, %v1920_v61, 0.0 }
 0x185   : > { %v1942_v14 = vsel %vm1853_vm8, %v1918_v7, 0.0  ;;  %v2458_v51 = vadd.f32 %v1799_v8, %v1261_v62  ;;  %v2370_v57 = vpop.f32.mrb[14].mxu1  ;;  %v1802_v36 = vpop.f32.mrb[15].mxu0 }
 0x186   : > { %v1890_v42 = vadd.f32 %v1889_v4, %v1888_v13  ;;  %v1943_v46 = vadd.f32 %v1942_v14, %v1941_v56  ;;  %v1851_v0 = vadd.f32 %v2457_v28, %v3200_v55  ;;  %v2459_v1 = vadd.f32 %v2442_v20, %v2370_v57  ;;  %v1264_v29 = vpop.f32.mrb[15].mxu1 }
 0x187   : > { %v1849_v23 = vadd.f32 %v2458_v51, %v3200_v55  ;;  %v2460_v16 = vadd.f32 %v1802_v36, %v1264_v29 }
 0x188   : > { %v1945_v52 = vadd.f32 %v1944_v58, %v1943_v46  ;;  %1868 = vst.msk [vmem:[%s3205_s24 + $0x70] sm:$0xff] %vm1853_vm8, %v1851_v0  ;;  %v1892_v53 = vadd.f32 %v1891_v34, %v1890_v42  ;;  %v1852_v37 = vadd.f32 %v2459_v1, %v3200_v55  ;;  %v1923_v33 = vmul.f32 %v1851_v0, %v1851_v0 }
 0x189   : > { %1866 = vst.msk [vmem:[%s3205_s24 + $0x60] sm:$0xff] %vm1853_vm8, %v1849_v23  ;;  %v1893_v5 = vsel %vm1853_vm8, %v1849_v23, 0.0  ;;  %v1921_v32 = vmul.f32 %v1849_v23, %v1849_v23  ;;  %v1850_v49 = vadd.f32 %v2460_v16, %v3200_v55  ;;  %v1897_v44 = vsel %vm1853_vm8, %v1851_v0, 0.0 }
 0x18a   : > { %v1894_v25 = vadd.f32 %v1893_v5, %v1892_v53  ;;  %v1947_v43 = vadd.f32 %v1946_v48, %v1945_v52  ;;  %1869 = vst.msk [vmem:[%s3205_s24 + $0x78] sm:$0xff] %vm1853_vm8, %v1852_v37  ;;  %v1924_v10 = vmul.f32 %v1852_v37, %v1852_v37  ;;  %v1899_v27 = vsel %vm1853_vm8, %v1852_v37, 0.0 }
 0x18b   : > { %v1948_v19 = vsel %vm1853_vm8, %v1921_v32, 0.0  ;;  %1867 = vst.msk [vmem:[%s3205_s24 + $0x68] sm:$0xff] %vm1853_vm8, %v1850_v49  ;;  %v1895_v3 = vsel %vm1853_vm8, %v1850_v49, 0.0  ;;  %v1922_v60 = vmul.f32 %v1850_v49, %v1850_v49  ;;  %v1952_v35 = vsel %vm1853_vm8, %v1923_v33, 0.0 }
 0x18c   : > { %v1949_v11 = vadd.f32 %v1948_v19, %v1947_v43  ;;  %v1896_v40 = vadd.f32 %v1895_v3, %v1894_v25  ;;  %v1954_v17 = vsel %vm1853_vm8, %v1924_v10, 0.0 }
 0x18d   : > { %v1950_v55 = vsel %vm1853_vm8, %v1922_v60, 0.0 }
 0x18e   : > { %v1898_v59 = vadd.f32 %v1897_v44, %v1896_v40  ;;  %v1951_v9 = vadd.f32 %v1950_v55, %v1949_v11 }
 0x190   : > { %v1900_v47 = vadd.f32 %v1899_v27, %v1898_v59  ;;  %v1953_v6 = vadd.f32 %v1952_v35, %v1951_v9 }
 0x192   : > { %v1901_v22 = vrot.slane %v1900_v47, 4  ;;  %v1955_v50 = vadd.f32 %v1954_v17, %v1953_v6 }
 0x194   : > { %v1902_v63 = vadd.f32 %v1901_v22, %v1900_v47  ;;  %v1956_v54 = vrot.slane %v1955_v50, 4 }
 0x196   : > { %v1903_v12 = vrot.slane %v1902_v63, 2  ;;  %v1957_v45 = vadd.f32 %v1956_v54, %v1955_v50 }
 0x198   : > { %v1904_v15 = vadd.f32 %v1903_v12, %v1902_v63  ;;  %v1958_v39 = vrot.slane %v1957_v45, 2 }
 0x19a   : > { %v1905_v2 = vrot.slane %v1904_v15, 1  ;;  %v1959_v21 = vadd.f32 %v1958_v39, %v1957_v45 }
 0x19c   : > { %v1906_v38 = vadd.f32 %v1905_v2, %v1904_v15  ;;  %v1960_v24 = vrot.slane %v1959_v21, 1 }
 0x19e   : > { %1908 = vst.msk [vmem:[%s238_s27] sm:$0x1] %vm1907_vm9, %v1906_v38  ;;  %v1961_v26 = vadd.f32 %v1960_v24, %v1959_v21 }
 0x1a0   : > { %1962 = vst.msk [vmem:[%s241_s30] sm:$0x1] %vm1907_vm9, %v1961_v26 }
 0x1a1 PF: > { %s16_s18 = sadd.s32 1, %s2608_s18  }
 0x1a2   : > { %p13_p4 = scmp.ge.s32.totalorder %s16_s18, 6  }
 0x1a4   :  { %15 = sbr.rel (!%p13_p4) target bundleno = 1 (0x1), region = 94 }

// kernel: double_conv_forward.7
= control target key start
LH: loop header
LB: loop body
LE: loop exit
PB: predicated region body
PF: predicated region fallthrough
CT: control target
= control target key end

     0   :  { %10 = vsyncpa [#allocation3], 0  ;;  %s928_s0 = inlined_call_operand.vmem [shape: f32[512,32], index: 0, kind: input, shape index: {}]   ;;  %s929_s1 = inlined_call_operand.vmem [shape: f32[1,32], index: 1, kind: input, shape index: {}]   ;;  %s930_s2 = inlined_call_operand.vmem [shape: f32[1,32], index: 2, kind: input, shape index: {}]   ;;  %s931_s3 = inlined_call_operand.vmem [shape: f32[1,32], index: 3, kind: input, shape index: {}]   ;;  %s932_s4 = inlined_call_operand.vmem [shape: f32[1,32], index: 4, kind: input, shape index: {}]   ;;  %s933_s5 = inlined_call_operand.hbm [shape: f32[512,32], index: 5, kind: output, shape index: {}]  }
   0x1   :  { %12 = vsyncpa [#allocation3 + $0x1], 0  ;;  %s641_s18 = smov 0   ;;  %s643_s19 = smov 0  }
   0x2   :  { %s645_s20 = smov 0   ;;  %s647_s21 = smov 0  }
   0x3 LB: > { %s662_s22 = sadd.s32 4294967295, %s606_s21   ;;  %s488_s23 = sadd.s32 4294967294, %s606_s21   ;;  %s606_s21 = sphi %s647_s21, %s939_s21   ;;  %s602_s20 = sphi %s645_s20, %s938_s20   ;;  %s598_s19 = sphi %s643_s19, %s937_s19   ;;  %s594_s18 = sphi %s641_s18, %s936_s18  }
   0x4   : > { %s666_s24 = sadd.s32 1, %s606_s21   ;;  %s135_s25 = sadd.s32 1, %s602_s20 }
   0x5   : > { %s132_s26 = ssub.s32 %s606_s21, %s666_s24  ;;  %p145_p0 = scmp.ne.s32.totalorder %s602_s20, %s598_s19 }
   0x6   : > { %p133_p1 = scmp.eq.s32.totalorder %s132_s26, 0  ;;  %p146_p2 = scmp.eq.s32.totalorder %s662_s22, 1 }
   0x7   : > { %p151_p3 = scmp.ne.s32.totalorder %s598_s19, %s594_s18  ;;  %p152_p4 = scmp.eq.s32.totalorder %s488_s23, 1 }
   0x8   : > { %s677_s27 = scalar_select %p133_p1, %s602_s20, %s135_s25  }
   0x9   : > { %p679_p5 = por %p146_p2, %p145_p0  ;;  %p683_p6 = por %p152_p4, %p151_p3 }
   0xa   : > { %p491_p7 = scmp.ge.s32.totalorder %s606_s21, 1  ;;  %p191_p8 = scmp.lt.s32.totalorder %s606_s21, 3 }
   0xc   : > { %p192_p9 = pnand %p491_p7, %p191_p8 }
   0xd   : > { %v226_v0 = vld [vmem:[%s929_s1] sm:$0x1] (!%p192_p9)  ;;  %s493_s9 = sshll.u32 (!%p192_p9), %s662_s22, 5  ;;  %v272_v7 = vlaneseq (!%p192_p9)  ;;  %s216_s23 = sand.u32 (!%p192_p9), 1, %s598_s19   ;;  %vm379_vm0 = vcmask (!%p192_p9), 261120  }
   0xe   : > { %195 = sbr.rel (%p192_p9) target bundleno = 81 (0x51), region = 40  ;;  %v228_v1 = vld [vmem:[%s930_s2] sm:$0x1] (!%p192_p9)  ;;  %v227_v2 = vmul.f32 (!%p192_p9), 0.001953125, %v226_v0  ;;  %p220_p10 = scmp.lt.s32.totalorder (!%p192_p9), %s493_s9, 63 }
   0xf   : > { %v229_v3 = vmul.f32 (!%p192_p9), 0.001953125, %v228_v1  ;;  %v273_v8 = vshrl.u32 (!%p192_p9), %v272_v7, 7  ;;  %v232_v9 = vld [vmem:[%s931_s3] sm:$0x1] (!%p192_p9)  ;;  %s492_s25 = sshll.u32 (!%p192_p9), %s216_s23, 8  ;;  %s500_s30 = sshll.u32 (!%p192_p9), %s662_s22, 12 }
  0x10   : > { %v230_v4 = vmul.f32 (!%p192_p9), %v227_v2, %v227_v2  ;;  %v236_v13 = vld [vmem:[%s932_s4] sm:$0x1] (!%p192_p9)  ;;  %s752_s26 = scalar_lea.vmem (!%p192_p9), [#allocation2], %s492_s25  ;;  %s873_s8 = scalar_lea.hbm (!%p192_p9), %s933_s5, %s500_s30 }
  0x11   : > { %v274_v10 = vsub.s32 (!%p192_p9), 0, %v273_v8  ;;  %s426_s6 = sshll.u32 (!%p192_p9), %s752_s26, 4  ;;  %s608_s11 = smov (!%p192_p9), [#allocation2]   ;;  %s875_s6 = int_to_ptr.vmem [resolvable:$true] %s426_s6 }
  0x12   : > { %v231_v5 = vsub.f32 (!%p192_p9), %v229_v3, %v230_v4  ;;  %s548_s12 = sshll.u32 (!%p192_p9), %s608_s11, 4  ;;  %s549_s12 = int_to_ptr.vmem [resolvable:$false] %s548_s12 }
  0x13   : > { %p551_p0 = scmp.lt.s32.totalorder (!%p192_p9), %s875_s6, %s549_s12 }
  0x14   : > { %v233_v6 = vadd.f32 (!%p192_p9), 1e-05, %v231_v5 }
  0x15   : > { %s941_s9 = smov (!%p220_p10, %s493_s9), 63 }
  0x16   : > { %542 = vrsqrt.f32 %v233_v6  ;;  %s494_s10 = sshll.u32 %s941_s9, 3  ;;  %s887_s9 = scalar_lea.sflag [#allocation3], %s216_s23 }
  0x17   : > { %s699_s13 = scalar_lea.vmem %s928_s0, %s494_s10  ;;  %s544_s10 = scalar_lea.vmem %s875_s6, 4096 }
  0x18   : > { %v239_v14 = vld [vmem:[%s699_s13] sm:$0xff]  ;;  %v240_v15 = vld [vmem:[%s699_s13 + $0x8] sm:$0xff]  ;;  %v241_v16 = vld [vmem:[%s699_s13 + $0x10] sm:$0xff]  ;;  %p545_p11 = scmp.ne.s32.totalorder %s875_s6, %s544_s10 }
  0x19   : > { %v242_v17 = vld [vmem:[%s699_s13 + $0x18] sm:$0xff]  ;;  %v243_v18 = vld [vmem:[%s699_s13 + $0x20] sm:$0xff]  ;;  %v244_v21 = vld [vmem:[%s699_s13 + $0x28] sm:$0xff] }
  0x1a   : > { %v245_v22 = vld [vmem:[%s699_s13 + $0x30] sm:$0xff]  ;;  %v246_v23 = vld [vmem:[%s699_s13 + $0x38] sm:$0xff]  ;;  %v247_v24 = vld [vmem:[%s699_s13 + $0x40] sm:$0xff]  ;;  %p546_p12 = pnand %p545_p11, %p679_p5 }
  0x1b   : > { %v248_v25 = vld [vmem:[%s699_s13 + $0x48] sm:$0xff]  ;;  %v249_v26 = vld [vmem:[%s699_s13 + $0x50] sm:$0xff]  ;;  %v250_v31 = vld [vmem:[%s699_s13 + $0x58] sm:$0xff] }
  0x1c   : > { %v251_v32 = vld [vmem:[%s699_s13 + $0x60] sm:$0xff]  ;;  %v252_v33 = vld [vmem:[%s699_s13 + $0x68] sm:$0xff]  ;;  %v253_v58 = vld [vmem:[%s699_s13 + $0x70] sm:$0xff]  ;;  %p547_p13 = pneg %p546_p12 }
  0x1d   : > { %v254_v59 = vld [vmem:[%s699_s13 + $0x78] sm:$0xff]  ;;  %v255_v4 = vld [vmem:[%s699_s13 + $0x80] sm:$0xff] }
  0x20   : > { %v543_v11 = vpop.eup %542 }
  0x21   : > { %v235_v12 = vmul.f32 %v543_v11, %v232_v9  ;;  %v256_v9 = vld [vmem:[%s699_s13 + $0x88] sm:$0xff]  ;;  %v258_v11 = vld [vmem:[%s699_s13 + $0x98] sm:$0xff] }
  0x23   : > { %v237_v19 = vmul.f32 %v235_v12, %v227_v2  ;;  %v712_v20 = vrot.slane %v235_v12, %v274_v10 }
  0x25   : > { %v238_v27 = vsub.f32 %v236_v13, %v237_v19  ;;  %v277_v28 = vmul.f32 %v712_v20, %v239_v14  ;;  %v278_v29 = vmul.f32 %v712_v20, %v240_v15  ;;  %v279_v30 = vmul.f32 %v712_v20, %v241_v16  ;;  %v259_v16 = vld [vmem:[%s699_s13 + $0xa0] sm:$0xff] }
  0x26   : > { %v280_v34 = vmul.f32 %v712_v20, %v242_v17  ;;  %v281_v35 = vmul.f32 %v712_v20, %v243_v18  ;;  %v282_v36 = vmul.f32 %v712_v20, %v244_v21  ;;  %v283_v37 = vmul.f32 %v712_v20, %v245_v22  ;;  %v260_v17 = vld [vmem:[%s699_s13 + $0xa8] sm:$0xff] }
  0x27   : > { %v733_v38 = vrot.slane %v238_v27, %v274_v10  ;;  %v284_v39 = vmul.f32 %v712_v20, %v246_v23  ;;  %v285_v40 = vmul.f32 %v712_v20, %v247_v24  ;;  %v286_v41 = vmul.f32 %v712_v20, %v248_v25  ;;  %v257_v10 = vld [vmem:[%s699_s13 + $0x90] sm:$0xff] }
  0x28   : > { %v287_v42 = vmul.f32 %v712_v20, %v249_v26  ;;  %v288_v43 = vmul.f32 %v712_v20, %v250_v31  ;;  %v289_v44 = vmul.f32 %v712_v20, %v251_v32  ;;  %v290_v45 = vmul.f32 %v712_v20, %v252_v33  ;;  %v261_v27 = vld [vmem:[%s699_s13 + $0xb0] sm:$0xff] }
  0x29   : > { %v315_v46 = vadd.f32 %v733_v38, %v277_v28  ;;  %v316_v47 = vadd.f32 %v733_v38, %v278_v29  ;;  %v317_v48 = vadd.f32 %v733_v38, %v279_v30  ;;  %v318_v49 = vadd.f32 %v733_v38, %v280_v34  ;;  %v262_v28 = vld [vmem:[%s699_s13 + $0xb8] sm:$0xff] }
  0x2a   : > { %v319_v50 = vadd.f32 %v733_v38, %v281_v35  ;;  %v320_v51 = vadd.f32 %v733_v38, %v282_v36  ;;  %v321_v52 = vadd.f32 %v733_v38, %v283_v37  ;;  %v322_v53 = vadd.f32 %v733_v38, %v284_v39  ;;  %v263_v37 = vld [vmem:[%s699_s13 + $0xc0] sm:$0xff] }
  0x2b   : > { %v347_v54 = vmax.f32 %v315_v46, 0.0  ;;  %v348_v55 = vmax.f32 %v316_v47, 0.0  ;;  %v349_v56 = vmax.f32 %v317_v48, 0.0  ;;  %v350_v57 = vmax.f32 %v318_v49, 0.0 }
  0x2c   : > { %v351_v60 = vmax.f32 %v319_v50, 0.0  ;;  %v352_v61 = vmax.f32 %v320_v51, 0.0  ;;  %v353_v62 = vmax.f32 %v321_v52, 0.0  ;;  %v354_v63 = vmax.f32 %v322_v53, 0.0  ;;  %v267_v50 = vld [vmem:[%s699_s13 + $0xe0] sm:$0xff]  ;;  %v268_v51 = vld [vmem:[%s699_s13 + $0xe8] sm:$0xff] }
  0x2d   : > { %380 = vst.msk [vmem:[%s752_s26] sm:$0xff] %vm379_vm0, %v347_v54  ;;  %381 = vst.msk [vmem:[%s752_s26 + $0x8] sm:$0xff] %vm379_vm0, %v348_v55  ;;  %v323_v0 = vadd.f32 %v733_v38, %v285_v40  ;;  %v324_v1 = vadd.f32 %v733_v38, %v286_v41  ;;  %v325_v2 = vadd.f32 %v733_v38, %v287_v42 }
  0x2e   : > { %382 = vst.msk [vmem:[%s752_s26 + $0x10] sm:$0xff] %vm379_vm0, %v349_v56  ;;  %383 = vst.msk [vmem:[%s752_s26 + $0x18] sm:$0xff] %vm379_vm0, %v350_v57  ;;  %v326_v3 = vadd.f32 %v733_v38, %v288_v43  ;;  %v327_v5 = vadd.f32 %v733_v38, %v289_v44  ;;  %v328_v6 = vadd.f32 %v733_v38, %v290_v45  ;;  %v264_v43 = vld [vmem:[%s699_s13 + $0xc8] sm:$0xff]  ;;  %v265_v44 = vld [vmem:[%s699_s13 + $0xd0] sm:$0xff] }
  0x2f   : > { %384 = vst.msk [vmem:[%s752_s26 + $0x20] sm:$0xff] %vm379_vm0, %v351_v60  ;;  %385 = vst.msk [vmem:[%s752_s26 + $0x28] sm:$0xff] %vm379_vm0, %v352_v61  ;;  %v291_v7 = vmul.f32 %v712_v20, %v253_v58  ;;  %v292_v8 = vmul.f32 %v712_v20, %v254_v59  ;;  %v355_v12 = vmax.f32 %v323_v0, 0.0  ;;  %v356_v13 = vmax.f32 %v324_v1, 0.0  ;;  %v266_v45 = vld [vmem:[%s699_s13 + $0xd8] sm:$0xff]  ;;  %v269_v60 = vld [vmem:[%s699_s13 + $0xf0] sm:$0xff] }
  0x30   : > { %386 = vst.msk [vmem:[%s752_s26 + $0x30] sm:$0xff] %vm379_vm0, %v353_v62  ;;  %387 = vst.msk [vmem:[%s752_s26 + $0x38] sm:$0xff] %vm379_vm0, %v354_v63  ;;  %v357_v14 = vmax.f32 %v325_v2, 0.0  ;;  %v358_v15 = vmax.f32 %v326_v3, 0.0  ;;  %v359_v18 = vmax.f32 %v327_v5, 0.0  ;;  %v360_v19 = vmax.f32 %v328_v6, 0.0 }
  0x31   : > { %v329_v21 = vadd.f32 %v733_v38, %v291_v7  ;;  %v330_v22 = vadd.f32 %v733_v38, %v292_v8  ;;  %388 = vst.msk [vmem:[%s752_s26 + $0x40] sm:$0xff] %vm379_vm0, %v355_v12  ;;  %389 = vst.msk [vmem:[%s752_s26 + $0x48] sm:$0xff] %vm379_vm0, %v356_v13  ;;  %v293_v23 = vmul.f32 %v712_v20, %v255_v4  ;;  %v270_v61 = vld [vmem:[%s699_s13 + $0xf8] sm:$0xff]  ;;  %s550_s13 = scalar_lea.vmem %s549_s12, 8192 }
  0x32   : > { %390 = vst.msk [vmem:[%s752_s26 + $0x50] sm:$0xff] %vm379_vm0, %v357_v14  ;;  %391 = vst.msk [vmem:[%s752_s26 + $0x58] sm:$0xff] %vm379_vm0, %v358_v15  ;;  %v294_v24 = vmul.f32 %v712_v20, %v256_v9  ;;  %v295_v25 = vmul.f32 %v712_v20, %v257_v10  ;;  %v296_v26 = vmul.f32 %v712_v20, %v258_v11  ;;  %p552_p1 = scmp.lt.s32.totalorder %s550_s13, %s544_s10 }
  0x33   : > { %392 = vst.msk [vmem:[%s752_s26 + $0x60] sm:$0xff] %vm379_vm0, %v359_v18  ;;  %393 = vst.msk [vmem:[%s752_s26 + $0x68] sm:$0xff] %vm379_vm0, %v360_v19  ;;  %v361_v29 = vmax.f32 %v329_v21, 0.0  ;;  %v362_v30 = vmax.f32 %v330_v22, 0.0  ;;  %v297_v31 = vmul.f32 %v712_v20, %v259_v16  ;;  %v298_v32 = vmul.f32 %v712_v20, %v260_v17 }
  0x34   : > { %v331_v33 = vadd.f32 %v733_v38, %v293_v23  ;;  %v332_v34 = vadd.f32 %v733_v38, %v294_v24  ;;  %v333_v35 = vadd.f32 %v733_v38, %v295_v25  ;;  %v334_v36 = vadd.f32 %v733_v38, %v296_v26  ;;  %p553_p2 = por %p552_p1, %p551_p0 }
  0x35   : > { %394 = vst.msk [vmem:[%s752_s26 + $0x70] sm:$0xff] %vm379_vm0, %v361_v29  ;;  %395 = vst.msk [vmem:[%s752_s26 + $0x78] sm:$0xff] %vm379_vm0, %v362_v30  ;;  %v335_v39 = vadd.f32 %v733_v38, %v297_v31  ;;  %v336_v40 = vadd.f32 %v733_v38, %v298_v32  ;;  %v299_v41 = vmul.f32 %v712_v20, %v261_v27 }
  0x36   : > { %v300_v42 = vmul.f32 %v712_v20, %v262_v28  ;;  %v363_v46 = vmax.f32 %v331_v33, 0.0  ;;  %v364_v47 = vmax.f32 %v332_v34, 0.0  ;;  %v365_v48 = vmax.f32 %v333_v35, 0.0  ;;  %p554_p3 = pnand %p553_p2, %p547_p13 }
  0x37   : > { %v366_v49 = vmax.f32 %v334_v36, 0.0  ;;  %v367_v52 = vmax.f32 %v335_v39, 0.0  ;;  %v368_v53 = vmax.f32 %v336_v40, 0.0  ;;  %v337_v54 = vadd.f32 %v733_v38, %v299_v41 }
  0x38   : > { %v338_v55 = vadd.f32 %v733_v38, %v300_v42  ;;  %396 = vst.msk [vmem:[%s752_s26 + $0x80] sm:$0xff] %vm379_vm0, %v363_v46  ;;  %397 = vst.msk [vmem:[%s752_s26 + $0x88] sm:$0xff] %vm379_vm0, %v364_v47  ;;  %v301_v56 = vmul.f32 %v712_v20, %v263_v37  ;;  %v302_v57 = vmul.f32 %v712_v20, %v264_v43 }
  0x39   : > { %398 = vst.msk [vmem:[%s752_s26 + $0x90] sm:$0xff] %vm379_vm0, %v365_v48  ;;  %399 = vst.msk [vmem:[%s752_s26 + $0x98] sm:$0xff] %vm379_vm0, %v366_v49  ;;  %v303_v58 = vmul.f32 %v712_v20, %v265_v44  ;;  %v304_v59 = vmul.f32 %v712_v20, %v266_v45  ;;  %v369_v62 = vmax.f32 %v337_v54, 0.0  ;;  %v305_v0 = vmul.f32 %v712_v20, %v267_v50 }
  0x3a   : > { %400 = vst.msk [vmem:[%s752_s26 + $0xa0] sm:$0xff] %vm379_vm0, %v367_v52  ;;  %401 = vst.msk [vmem:[%s752_s26 + $0xa8] sm:$0xff] %vm379_vm0, %v368_v53  ;;  %v370_v63 = vmax.f32 %v338_v55, 0.0  ;;  %v306_v1 = vmul.f32 %v712_v20, %v268_v51  ;;  %v339_v2 = vadd.f32 %v733_v38, %v301_v56  ;;  %v340_v3 = vadd.f32 %v733_v38, %v302_v57 }
  0x3b   : > { %v341_v4 = vadd.f32 %v733_v38, %v303_v58  ;;  %v342_v5 = vadd.f32 %v733_v38, %v304_v59  ;;  %402 = vst.msk [vmem:[%s752_s26 + $0xb0] sm:$0xff] %vm379_vm0, %v369_v62  ;;  %v343_v6 = vadd.f32 %v733_v38, %v305_v0  ;;  %v307_v8 = vmul.f32 %v712_v20, %v269_v60 }
  0x3c   : > { %403 = vst.msk [vmem:[%s752_s26 + $0xb8] sm:$0xff] %vm379_vm0, %v370_v63  ;;  %v344_v7 = vadd.f32 %v733_v38, %v306_v1  ;;  %v308_v9 = vmul.f32 %v712_v20, %v270_v61  ;;  %v371_v10 = vmax.f32 %v339_v2, 0.0  ;;  %v372_v11 = vmax.f32 %v340_v3, 0.0 }
  0x3d   : > { %v373_v12 = vmax.f32 %v341_v4, 0.0  ;;  %v374_v13 = vmax.f32 %v342_v5, 0.0  ;;  %v375_v14 = vmax.f32 %v343_v6, 0.0  ;;  %v345_v16 = vadd.f32 %v733_v38, %v307_v8 }
  0x3e   : > { %v376_v15 = vmax.f32 %v344_v7, 0.0  ;;  %v346_v17 = vadd.f32 %v733_v38, %v308_v9  ;;  %404 = vst.msk [vmem:[%s752_s26 + $0xc0] sm:$0xff] %vm379_vm0, %v371_v10  ;;  %405 = vst.msk [vmem:[%s752_s26 + $0xc8] sm:$0xff] %vm379_vm0, %v372_v11 }
  0x3f   : > { %406 = vst.msk [vmem:[%s752_s26 + $0xd0] sm:$0xff] %vm379_vm0, %v373_v12  ;;  %407 = vst.msk [vmem:[%s752_s26 + $0xd8] sm:$0xff] %vm379_vm0, %v374_v13  ;;  %v377_v20 = vmax.f32 %v345_v16, 0.0 }
  0x40   : > { %408 = vst.msk [vmem:[%s752_s26 + $0xe0] sm:$0xff] %vm379_vm0, %v375_v14  ;;  %409 = vst.msk [vmem:[%s752_s26 + $0xe8] sm:$0xff] %vm379_vm0, %v376_v15  ;;  %v378_v38 = vmax.f32 %v346_v17, 0.0 }
  0x41   : > { %410 = vst.msk [vmem:[%s752_s26 + $0xf0] sm:$0xff] %vm379_vm0, %v377_v20 }
  0x42   : > { %411 = vst.msk [vmem:[%s752_s26 + $0xf8] sm:$0xff] %vm379_vm0, %v378_v38 }
  0x43   : > { %557 = shalt.err (!%p554_p3)
}
  0x44   : > { %s558_s14 = scalar_lea.hbm %s873_s8, 4096  ;;  %s562_s17 = scalar_lea.hbm %s933_s5, 8192 }
  0x45   : > { %p559_p4 = scmp.ne.s32.totalorder %s873_s8, %s558_s14  ;;  %p563_p9 = scmp.lt.u32.totalorder %s873_s8, %s933_s5 }
  0x46   : > { %p564_p10 = scmp.lt.u32.totalorder %s562_s17, %s558_s14  ;;  %p566_p12 = scmp.lt.u32.totalorder %s558_s14, %s873_s8 }
  0x47   : > { %p560_p7 = pnand %p559_p4, %p679_p5 }
  0x48   : > { %p565_p11 = por %p564_p10, %p563_p9 }
  0x49   : > { %p561_p8 = pneg %p560_p7 }
  0x4a   : > { %p567_p13 = por %p566_p12, %p565_p11 }
  0x4c   : > { %p568_p0 = pnand %p567_p13, %p561_p8 }
  0x4e   : > { %571 = shalt.err (!%p568_p0)
}
  0x4f   : > { %s609_s26 = smov 128   ;;  %s610_s30 = smov 8  }
  0x50   : > { %501 = dma.vmem_to_hbm [thread:$0]  (%p679_p5), %s875_s6, 4096, %s873_s8, %s887_s9, %s609_s26, %s609_s26, %s610_s30  }
  0x51 PF: > { %p507_p1 = scmp.ge.s32.totalorder %s606_s21, 2  ;;  %s441_s22 = sand.u32 1, %s594_s18  }
  0x52   : > { %s442_s7 = scalar_lea.sflag [#allocation3], %s441_s22 }
  0x53   : > { %p504_p2 = pnand %p507_p1, %p683_p6 }
  0x55   : > { %589 = dma.done.wait (!%p504_p2), %s442_s7, 4096  }
  0x56   : > { %591 = vsyncadd (!%p504_p2), %s442_s7, 4294963200  ;;  %p15_p3 = scmp.ge.s32.totalorder %s666_s24, 4   ;;  %s936_s18 = smov %s598_s19 }
  0x57   : > { %s937_s19 = smov %s602_s20  ;;  %s938_s20 = smov %s677_s27 }
  0x58   : > { %s939_s21 = smov %s666_s24  ;;  %17 = sbr.rel (!%p15_p3) target bundleno = 3 (0x3), region = 75 }
  0x5f   :  { %447 = vsyncpa [#allocation3], 1 }
  0x60   :  { %449 = vsyncpa [#allocation3 + $0x1], 1 }

// kernel: double_conv_forward.6
= control target key start
LH: loop header
LB: loop body
LE: loop exit
PB: predicated region body
PF: predicated region fallthrough
CT: control target
= control target key end

     0   :  { %s2825_s18 = smov 0   ;;  %s3504_s0 = inlined_call_operand.vmem [shape: bf16[4,10,18,32], index: 0, kind: input, shape index: {}]   ;;  %s3505_s1 = inlined_call_operand.vmem [shape: bf16[9,32,32], index: 1, kind: input, shape index: {}]   ;;  %s3506_s2 = inlined_call_operand.vmem [shape: f32[1,32], index: 2, kind: input, shape index: {}]   ;;  %s3507_s3 = inlined_call_operand.vmem [shape: f32[4,128,32], index: 3, kind: output, shape index: {0}]   ;;  %s3508_s4 = inlined_call_operand.vmem [shape: f32[4,1,32], index: 4, kind: output, shape index: {1}]   ;;  %s3509_s5 = inlined_call_operand.vmem [shape: f32[4,1,32], index: 5, kind: output, shape index: {2}]  }
   0x1 LB: > { %s2174_s19 = sadd.s32 4294967295, %s2793_s18   ;;  %p2178_p0 = scmp.ge.s32.totalorder %s2793_s18, 1  ;;  %s2793_s18 = sphi %s2825_s18, %s16_s18  }
   0x2   : > { %p192_p1 = scmp.lt.s32.totalorder %s2793_s18, 5 }
   0x4   : > { %p193_p2 = pnand %p2178_p0, %p192_p1 }
   0x5   : > { %v2759_v0 = vld [vmem:[%s3505_s1 + $0x10] sm:$0xff] (!%p193_p2)   ;;  %p226_p3 = scmp.lt.s32.totalorder (!%p193_p2), %s2174_s19, 3  ;;  %v2839_v1 = vld [vmem:[%s3505_s1 + $0x40] sm:$0xff] (!%p193_p2)   ;;  %v2761_v2 = vld [vmem:[%s3505_s1 + $0x18] sm:$0xff] (!%p193_p2)   ;;  %vm277_vm0 = vsmask.f32 (!%p193_p2), 3328 }
   0x6   : > { %196 = sbr.rel (%p193_p2) target bundleno = 417 (0x1a1), region = 32  ;;  %2438 = vmatprep.subr.bf16.mxu1 (!%p193_p2), %v2759_v0  ;;  %2518 = vmatprep.subr.bf16.mxu0 (!%p193_p2), %v2839_v1  ;;  %v2850_v3 = vld [vmem:[%s3505_s1 + $0x48] sm:$0xff] (!%p193_p2)   ;;  %v2857_v4 = vld [vmem:[%s3505_s1] sm:$0xff] (!%p193_p2)   ;;  %vm278_vm1 = vsmask.f32 (!%p193_p2), 7440  ;;  %v2868_v5 = vld [vmem:[%s3505_s1 + $0x50] sm:$0xff] (!%p193_p2)  }
   0x7   : > { %2439 = vmatpush3.bf16.msra.mxu1 (!%p193_p2), %v2759_v0  ;;  %2519 = vmatpush3.bf16.msra.mxu0 (!%p193_p2), %v2839_v1  ;;  %vm2906_vm2 = vmor (!%p193_p2), %vm277_vm0, %vm278_vm1  ;;  %vm513_vm3 = vcmask (!%p193_p2), 261120   ;;  %vm816_vm4 = vcmask (!%p193_p2), 1042432   ;;  %vm817_vm5 = vcmask (!%p193_p2), 1046532   ;;  %vm2013_vm7 = vcmask (!%p193_p2), 253952  }
   0x8   : > { %2440 = vmatprep.subr.bf16.mxu1 (!%p193_p2), %v2761_v2  ;;  %2520 = vmatprep.subr.bf16.mxu0 (!%p193_p2), %v2850_v3  ;;  %vm2989_vm6 = vmor (!%p193_p2), %vm816_vm4, %vm817_vm5 }
   0xb   : > { %2441 = vmatpush3.bf16.msra.mxu1 (!%p193_p2), %v2761_v2  ;;  %2521 = vmatpush3.bf16.msra.mxu0 (!%p193_p2), %v2850_v3 }
   0xc   : > { %2458 = vmatprep.subr.bf16.mxu1 (!%p193_p2), %v2857_v4  ;;  %2538 = vmatprep.subr.bf16.mxu0 (!%p193_p2), %v2868_v5 }
   0xd   : > { %s3515_s19 = smov (!%p226_p3, %s2174_s19), 3 }
   0xe   : > { %s2750_s28 = smul.u32 120, %s3515_s19  ;;  %s2347_s12 = sshll.u32 %s3515_s19, 7 }
   0xf   : > { %s3411_s17 = scalar_lea.vmem %s3507_s3, %s2347_s12  ;;  %s238_s22 = scalar_lea.vmem %s3508_s4, %s3515_s19 }
  0x10   : > { %s2863_s8 = scalar_lea.vmem %s3504_s0, %s2750_s28  ;;  %s241_s25 = scalar_lea.vmem %s3509_s5, %s3515_s19 }
  0x11   : > { %v2871_v6 = vld [vmem:[%s2863_s8] sm:$0xf]  ;;  %v2874_v7 = vld [vmem:[%s2863_s8 + $0x4] sm:$0xf]  ;;  %v2877_v8 = vld [vmem:[%s2863_s8 + $0x8] sm:$0x1] }
  0x12   : > { %v281_v9 = vshrl.u32 %v2871_v6, 16  ;;  %v284_v10 = vshll.u32 %v2871_v6, 16  ;;  %v290_v11 = vshll.u32 %v2874_v7, 16  ;;  %v294_v12 = vshrl.u32 %v2874_v7, 16  ;;  %v2886_v13 = vld [vmem:[%s2863_s8 + $0xc] sm:$0xf] }
  0x13   : > { %v300_v14 = vshll.u32 %v2877_v8, 16  ;;  %v2890_v15 = vld [vmem:[%s2863_s8 + $0x10] sm:$0xf]  ;;  %v2893_v16 = vld [vmem:[%s2863_s8 + $0x14] sm:$0x1]  ;;  %v305_v22 = vshrl.u32 %v2886_v13, 16 }
  0x14   : > { %v283_v17 = vrot.slane %v281_v9, 4  ;;  %v286_v18 = vrot.slane %v284_v10, 5  ;;  %v292_v19 = vrot.slane %v290_v11, 5  ;;  %v296_v20 = vrot.slane %v294_v12, 4  ;;  %v2902_v29 = vld [vmem:[%s2863_s8 + $0x18] sm:$0xf] }
  0x15   : > { %v302_v21 = vrot.slane %v300_v14, 5  ;;  %v308_v23 = vshll.u32 %v2886_v13, 16  ;;  %v314_v24 = vshll.u32 %v2890_v15, 16  ;;  %v318_v27 = vshrl.u32 %v2890_v15, 16  ;;  %v2911_v34 = vld [vmem:[%s2863_s8 + $0x1c] sm:$0xf] }
  0x16   : > { %v287_v25 = vor.u32 %v286_v18, %v283_v17  ;;  %v297_v26 = vor.u32 %v296_v20, %v292_v19  ;;  %v324_v28 = vshll.u32 %v2893_v16, 16  ;;  %v307_v31 = vrot.slane %v305_v22, 4  ;;  %v2914_v39 = vld [vmem:[%s2863_s8 + $0x20] sm:$0x1]  ;;  %v2920_v44 = vld [vmem:[%s2863_s8 + $0x24] sm:$0xf] }
  0x17   : > { %v310_v32 = vrot.slane %v308_v23, 5  ;;  %v316_v33 = vrot.slane %v314_v24, 5  ;;  %v320_v37 = vrot.slane %v318_v27, 4  ;;  %v831_v41 = vrot.slane %v2893_v16, 5  ;;  %v2928_v49 = vld [vmem:[%s2863_s8 + $0x28] sm:$0xf] }
  0x18   : > { %v288_v35 = vrot.slane %v287_v25, 4  ;;  %v298_v36 = vrot.slane %v297_v26, 4  ;;  %v326_v38 = vrot.slane %v324_v28, 5  ;;  %v329_v42 = vshrl.u32 %v2902_v29, 16  ;;  %v2931_v54 = vld [vmem:[%s2863_s8 + $0x2c] sm:$0x1] }
  0x19   : > { %v311_v40 = vor.u32 %v310_v32, %v307_v31  ;;  %v332_v43 = vshll.u32 %v2902_v29, 16  ;;  %v321_v47 = vor.u32 %v320_v37, %v316_v33  ;;  %v338_v48 = vshll.u32 %v2911_v34, 16  ;;  %v2936_v59 = vld [vmem:[%s2863_s8 + $0x30] sm:$0xf]  ;;  %v2767_v18 = vld [vmem:[%s3505_s1 + $0x8] sm:$0xff]  }
  0x1a   : > { %v293_v45 = vsel %vm2906_vm2, %v288_v35, %v292_v19  ;;  %v303_v46 = vsel %vm2906_vm2, %v298_v36, %v302_v21  ;;  %v331_v52 = vrot.slane %v329_v42, 4  ;;  %v342_v57 = vshrl.u32 %v2911_v34, 16  ;;  %v2954_v23 = vld [vmem:[%s2863_s8 + $0x34] sm:$0xf]  ;;  %v2961_v27 = vld [vmem:[%s2863_s8 + $0x38] sm:$0x1] }
  0x1b   : > { %v2186_v50 = vcombine.low %v293_v45, %v303_v46  ;;  %v312_v51 = vrot.slane %v311_v40, 4  ;;  %v334_v53 = vrot.slane %v332_v43, 5  ;;  %v322_v55 = vrot.slane %v321_v47, 4  ;;  %v2972_v46 = vld [vmem:[%s2863_s8 + $0x3c] sm:$0xf]  ;;  %v2977_v47 = vld [vmem:[%s3505_s1 + $0x20] sm:$0xff]  }
  0x1c   : > { %v340_v56 = vrot.slane %v338_v48, 5  ;;  %v348_v58 = vshll.u32 %v2914_v39, 16  ;;  %v835_v62 = vrot.slane %v2911_v34, 5  ;;  %v838_v63 = vrot.slane %v2914_v39, 5 }
  0x1d   : > { %2442 = vmatprep.mubr.msk.bf16.mxu1 %vm513_vm3, %v2186_v50  ;;  %v317_v60 = vsel %vm2906_vm2, %v312_v51, %v316_v33  ;;  %v335_v61 = vor.u32 %v334_v53, %v331_v52  ;;  %v327_v0 = vsel %vm2906_vm2, %v322_v55, %v326_v38  ;;  %v344_v2 = vrot.slane %v342_v57, 4  ;;  %v2766_v51 = vld [vmem:[%s3505_s1 + $0x58] sm:$0xff]   ;;  %v2985_v55 = vld [vmem:[%s2863_s8 + $0x40] sm:$0xf] }
  0x1e   : > { %v350_v9 = vrot.slane %v348_v58, 5  ;;  %v353_v10 = vshrl.u32 %v2920_v44, 16  ;;  %v2187_v11 = vcombine.low %v317_v60, %v327_v0  ;;  %v356_v14 = vshll.u32 %v2920_v44, 16 }
  0x1f   : > { %v336_v12 = vrot.slane %v335_v61, 4  ;;  %v362_v17 = vshll.u32 %v2928_v49, 16  ;;  %v345_v19 = vor.u32 %v344_v2, %v340_v56  ;;  %v366_v21 = vshrl.u32 %v2928_v49, 16 }
  0x20   : > { %v355_v20 = vrot.slane %v353_v10, 4  ;;  %v372_v22 = vshll.u32 %v2931_v54, 16  ;;  %2522 = vmatprep.mubr.msk.bf16.mxu0 %vm513_vm3, %v2187_v11  ;;  %2443 = vmatmul.mubr.msk.bf16.vlgmr.msra.gmra.mrb[0].mxu1 %vm513_vm3, %v2187_v11  ;;  %v358_v25 = vrot.slane %v356_v14, 5  ;;  %v377_v28 = vshrl.u32 %v2936_v59, 16  ;;  %v3002_v10 = vld [vmem:[%s2863_s8 + $0x44] sm:$0x1] }
  0x21   : > { %v341_v24 = vsel %vm2906_vm2, %v336_v12, %v340_v56  ;;  %v364_v26 = vrot.slane %v362_v17, 5  ;;  %2459 = vmatpush3.bf16.msra.mxu1 %v2857_v4  ;;  %v346_v31 = vrot.slane %v345_v19, 4  ;;  %v368_v32 = vrot.slane %v366_v21, 4  ;;  %v3011_v17 = vld [vmem:[%s3505_s1 + $0x60] sm:$0xff]  }
  0x22   : > { %v374_v33 = vrot.slane %v372_v22, 5  ;;  %v380_v35 = vshll.u32 %v2936_v59, 16  ;;  %v359_v36 = vor.u32 %v358_v25, %v355_v20  ;;  %v379_v37 = vrot.slane %v377_v28, 4  ;;  %2460 = vmatprep.subr.bf16.mxu1 %v2767_v18 }
  0x23   : > { %v386_v38 = vshll.u32 %v2954_v23, 16  ;;  %v390_v40 = vshrl.u32 %v2954_v23, 16  ;;  %v351_v42 = vsel %vm2906_vm2, %v346_v31, %v350_v9  ;;  %v369_v43 = vor.u32 %v368_v32, %v364_v26  ;;  %v3023_v31 = vld [vmem:[%s2863_s8 + $0x48] sm:$0xf] }
  0x24   : > { %v382_v45 = vrot.slane %v380_v35, 5  ;;  %v396_v4 = vshll.u32 %v2961_v27, 16  ;;  %v2979_v48 = vcombine.low %v341_v24, %v351_v42  ;;  %v360_v50 = vrot.slane %v359_v36, 4 }
  0x25   : > { %v388_v52 = vrot.slane %v386_v38, 5  ;;  %v392_v53 = vrot.slane %v390_v40, 4  ;;  %v370_v56 = vrot.slane %v369_v43, 4  ;;  %v2223_v61 = vrot.slane %v2886_v13, 9  ;;  %2461 = vmatpush3.bf16.msra.mxu1 %v2767_v18 }
  0x26   : > { %v383_v57 = vor.u32 %v382_v45, %v379_v37  ;;  %v398_v58 = vrot.slane %v396_v4, 5  ;;  %2523 = vmatmul.mubr.msk.bf16.vlgmr.msra.gmra.mrb[0].mxu0 %vm513_vm3, %v2979_v48  ;;  %2446 = vmatprep.mubr.msk.bf16.mxu1 %vm513_vm3, %v2979_v48  ;;  %v365_v0 = vsel %vm2906_vm2, %v360_v50, %v364_v26  ;;  %v828_v9 = vrot.slane %v2890_v15, 5  ;;  %v3038_v37 = vld [vmem:[%s2863_s8 + $0x4c] sm:$0xf]  ;;  %v3046_v45 = vld [vmem:[%s2863_s8 + $0x50] sm:$0x1] }
  0x27   : > { %v393_v2 = vor.u32 %v392_v53, %v388_v52  ;;  %v401_v11 = vshrl.u32 %v2972_v46, 16  ;;  %2539 = vmatpush3.bf16.msra.mxu0 %v2868_v5  ;;  %v375_v12 = vsel %vm2906_vm2, %v370_v56, %v374_v33  ;;  %v404_v18 = vshll.u32 %v2972_v46, 16  ;;  %2478 = vmatprep.subr.bf16.mxu1 %v2977_v47 }
  0x28   : > { %v384_v14 = vrot.slane %v383_v57, 4  ;;  %v410_v19 = vshll.u32 %v2985_v55, 16  ;;  %v3016_v20 = vcombine.low %v365_v0, %v375_v12  ;;  %2540 = vmatprep.subr.bf16.mxu0 %v2766_v51  ;;  %v829_v21 = vsel %vm2989_vm6, %v2223_v61, %v828_v9 }
  0x29   : > { %v394_v5 = vrot.slane %v393_v2, 4  ;;  %v830_v22 = vrot.slane %v828_v9, 4  ;;  %v403_v25 = vrot.slane %v401_v11, 4  ;;  %v406_v26 = vrot.slane %v404_v18, 5 }
  0x2a   : > { %v389_v24 = vsel %vm2906_vm2, %v384_v14, %v388_v52  ;;  %v412_v28 = vrot.slane %v410_v19, 5  ;;  %2526 = vmatprep.mubr.msk.bf16.mxu0 %vm513_vm3, %v3016_v20  ;;  %2447 = vmatmul.mubr.msk.bf16.gmra.mrb[4].mxu1 %vm513_vm3, %v3016_v20  ;;  %v414_v35 = vshrl.u32 %v2985_v55, 16  ;;  %v420_v36 = vshll.u32 %v3002_v10, 16  ;;  %v3053_v52 = vld [vmem:[%s2863_s8 + $0x54] sm:$0xf] }
  0x2b   : > { %v399_v32 = vsel %vm2906_vm2, %v394_v5, %v398_v58  ;;  %v832_v33 = vsel %vm2989_vm6, %v830_v22, %v831_v41  ;;  %2541 = vmatpush3.bf16.msra.mxu0 %v2766_v51  ;;  %v407_v42 = vor.u32 %v406_v26, %v403_v25  ;;  %v2224_v43 = vrot.slane %v2902_v29, 9  ;;  %v3079_v19 = vld [vmem:[%s2863_s8 + $0x58] sm:$0xf] }
  0x2c   : > { %v3040_v38 = vcombine.low %v389_v24, %v399_v32  ;;  %v3042_v40 = vcombine.low %v829_v21, %v832_v33  ;;  %2558 = vmatprep.subr.bf16.mxu0 %v3011_v17  ;;  %v416_v16 = vrot.slane %v414_v35, 4  ;;  %v422_v41 = vrot.slane %v420_v36, 5  ;;  %v3084_v24 = vld [vmem:[%s2863_s8 + $0x5c] sm:$0x1]  ;;  %v2771_v35 = vld [vmem:[%s3505_s1 + $0x68] sm:$0xff]  }
  0x2d   : > { %v837_v4 = vrot.slane %v835_v62, 4  ;;  %v425_v50 = vshrl.u32 %v3023_v31, 16  ;;  %v408_v51 = vrot.slane %v407_v42, 4  ;;  %v836_v53 = vsel %vm2989_vm6, %v2224_v43, %v835_v62 }
  0x2e   : > { %2450 = vmatprep.mubr.msk.bf16.mxu1 %vm513_vm3, %v3040_v38  ;;  %v428_v56 = vshll.u32 %v3023_v31, 16  ;;  %v434_v57 = vshll.u32 %v3038_v37, 16  ;;  %2527 = vmatmul.mubr.msk.bf16.gmra.mrb[4].mxu0 %vm513_vm3, %v3040_v38  ;;  %v417_v58 = vor.u32 %v416_v16, %v412_v28  ;;  %v438_v2 = vshrl.u32 %v3038_v37, 16 }
  0x2f   : > { %v839_v61 = vsel %vm2989_vm6, %v837_v4, %v838_v63  ;;  %v427_v0 = vrot.slane %v425_v50, 4  ;;  %2542 = vmatprep.mubr.msk.bf16.mxu0 %vm513_vm3, %v3042_v40  ;;  %v413_v62 = vsel %vm2906_vm2, %v408_v51, %v412_v28  ;;  %v444_v39 = vshll.u32 %v3046_v45, 16 }
  0x30   : > { %v3074_v9 = vcombine.low %v836_v53, %v839_v61  ;;  %v430_v11 = vrot.slane %v428_v56, 5  ;;  %v436_v12 = vrot.slane %v434_v57, 5  ;;  %v418_v14 = vrot.slane %v417_v58, 4 }
  0x31   : > { %v440_v18 = vrot.slane %v438_v2, 4  ;;  %v2225_v63 = vrot.slane %v2920_v44, 9  ;;  %v842_v21 = vrot.slane %v2928_v49, 5  ;;  %v845_v22 = vrot.slane %v2931_v54, 5 }
  0x32   : > { %v431_v5 = vor.u32 %v430_v11, %v427_v0  ;;  %v449_v25 = vshrl.u32 %v3053_v52, 16  ;;  %v423_v26 = vsel %vm2906_vm2, %v418_v14, %v422_v41  ;;  %v446_v32 = vrot.slane %v444_v39, 5 }
  0x33   : > { %v441_v28 = vor.u32 %v440_v18, %v436_v12  ;;  %v452_v33 = vshll.u32 %v3053_v52, 16  ;;  %v3093_v36 = vcombine.low %v413_v62, %v423_v26  ;;  %v843_v54 = vsel %vm2989_vm6, %v2225_v63, %v842_v21 }
  0x34   : > { %v432_v42 = vrot.slane %v431_v5, 4  ;;  %v844_v43 = vrot.slane %v842_v21, 4  ;;  %v451_v4 = vrot.slane %v449_v25, 4  ;;  %v458_v41 = vshll.u32 %v3079_v19, 16 }
  0x35   : > { %v442_v16 = vrot.slane %v441_v28, 4  ;;  %v454_v50 = vrot.slane %v452_v33, 5  ;;  %2451 = vmatmul.mubr.msk.bf16.gmra.mrb[8].mxu1 %vm513_vm3, %v3093_v36  ;;  %v462_v56 = vshrl.u32 %v3079_v19, 16  ;;  %v468_v57 = vshll.u32 %v3084_v24, 16 }
  0x36   : > { %v437_v51 = vsel %vm2906_vm2, %v432_v42, %v436_v12  ;;  %v846_v53 = vsel %vm2989_vm6, %v844_v43, %v845_v22  ;;  %2543 = vmatmul.mubr.msk.bf16.vlgmr.msra.gmra.mrb[0].mxu0 %vm513_vm3, %v3074_v9  ;;  %v460_v2 = vrot.slane %v458_v41, 5  ;;  %v2226_v12 = vrot.slane %v2936_v59, 9 }
  0x37   : > { %v447_v58 = vsel %vm2906_vm2, %v442_v16, %v446_v32  ;;  %v3110_v61 = vcombine.low %v843_v54, %v846_v53  ;;  %v455_v0 = vor.u32 %v454_v50, %v451_v4  ;;  %2559 = vmatpush3.bf16.msra.mxu0 %v3011_v17  ;;  %v464_v11 = vrot.slane %v462_v56, 4  ;;  %v3124_v17 = vld [vmem:[%s3505_s1 + $0x70] sm:$0xff]   ;;  %v3152_v56 = vld [vmem:[%s2863_s8 + $0x64] sm:$0xf] }
  0x38   : > { %v3113_v62 = vcombine.low %v437_v51, %v447_v58  ;;  %v849_v18 = vrot.slane %v2954_v23, 5  ;;  %v852_v39 = vrot.slane %v2961_v27, 5  ;;  %v2227_v63 = vrot.slane %v2972_v46, 9  ;;  %2560 = vmatprep.subr.bf16.mxu0 %v2771_v35 }
  0x39   : > { %2546 = vmatprep.mubr.msk.bf16.mxu0 %vm513_vm3, %v3110_v61  ;;  %v456_v14 = vrot.slane %v455_v0, 4  ;;  %v465_v5 = vor.u32 %v464_v11, %v460_v2  ;;  %v470_v21 = vrot.slane %v468_v57, 5  ;;  %v856_v22 = vrot.slane %v2985_v55, 5 }
  0x3a   : > { %2454 = vmatprep.mubr.msk.bf16.mxu1 %vm513_vm3, %v3113_v62  ;;  %v859_v25 = vrot.slane %v3002_v10, 5  ;;  %v850_v27 = vsel %vm2989_vm6, %v2226_v12, %v849_v18  ;;  %v851_v26 = vrot.slane %v849_v18, 4  ;;  %v2204_v28 = vcombine.low %v2871_v6, %v2874_v7  ;;  %v3174_v18 = vld [vmem:[%s2863_s8 + $0x68] sm:$0x1] }
  0x3b   : > { %v863_v32 = vrot.slane %v3038_v37, 5  ;;  %v461_v33 = vsel %vm2906_vm2, %v456_v14, %v460_v2  ;;  %v466_v42 = vrot.slane %v465_v5, 4  ;;  %v857_v54 = vsel %vm2989_vm6, %v2227_v63, %v856_v22  ;;  %2561 = vmatpush3.bf16.msra.mxu0 %v2771_v35  ;;  %v3163_v2 = vld [vmem:[%s2863_s8 + $0x60] sm:$0xf] }
  0x3c   : > { %v858_v43 = vrot.slane %v856_v22, 4  ;;  %v853_v10 = vsel %vm2989_vm6, %v851_v26, %v852_v39  ;;  %v2228_v16 = vrot.slane %v3023_v31, 9  ;;  %v866_v50 = vrot.slane %v3046_v45, 5  ;;  %2578 = vmatprep.subr.bf16.mxu0 %v3124_v17 }
  0x3d   : > { %v865_v4 = vrot.slane %v863_v32, 4  ;;  %v471_v41 = vsel %vm2906_vm2, %v466_v42, %v470_v21  ;;  %v3146_v51 = vcombine.low %v850_v27, %v853_v10  ;;  %v2229_v53 = vrot.slane %v3053_v52, 9  ;;  %v3199_v42 = vld [vmem:[%s2863_s8 + $0x70] sm:$0xf] }
  0x3e   : > { %v860_v35 = vsel %vm2989_vm6, %v858_v43, %v859_v25  ;;  %v3154_v57 = vcombine.low %v461_v33, %v471_v41  ;;  %v870_v45 = vrot.slane %v3079_v19, 5  ;;  %v873_v0 = vrot.slane %v3084_v24, 5 }
  0x3f   : > { %v3156_v58 = vcombine.low %v857_v54, %v860_v35  ;;  %2547 = vmatmul.mubr.msk.bf16.gmra.mrb[4].mxu0 %vm513_vm3, %v3146_v51  ;;  %v864_v11 = vsel %vm2989_vm6, %v2228_v16, %v863_v32  ;;  %v867_v12 = vsel %vm2989_vm6, %v865_v4, %v866_v50  ;;  %v1354_v24 = vrot.slane %v3152_v56, 5  ;;  %v2775_v16 = vld [vmem:[%s3505_s1 + $0x28] sm:$0xff]   ;;  %v272_v4 = vld [vmem:[%s2863_s8 + $0x74] sm:$0x1] }
  0x40   : > { %2455 = vmatmul.mubr.msk.bf16.gmra.mrb[12].mxu1 %vm513_vm3, %v3154_v57  ;;  %v872_v14 = vrot.slane %v870_v45, 4  ;;  %v871_v39 = vsel %vm2989_vm6, %v2229_v53, %v870_v45  ;;  %v824_v63 = vrot.slane %v2877_v8, 5  ;;  %v2282_v21 = vrot.slane %v3163_v2, 9 }
  0x41   : > { %2550 = vmatprep.mubr.msk.bf16.mxu0 %vm513_vm3, %v3156_v58  ;;  %2462 = vmatprep.mubr.msk.bf16.mxu1 %vm513_vm3, %v2204_v28  ;;  %v2222_v22 = vrot.slane %v2871_v6, 9  ;;  %v3185_v25 = vcombine.low %v864_v11, %v867_v12  ;;  %v1356_v27 = vrot.slane %v1354_v24, 4  ;;  %v1357_v26 = vrot.slane %v3174_v18, 5  ;;  %v3190_v28 = vld [vmem:[%s2863_s8 + $0x6c] sm:$0xf]  ;;  %v2780_v12 = vld [vmem:[%s3505_s1 + $0x30] sm:$0xff]  }
  0x42   : > { %v874_v5 = vsel %vm2989_vm6, %v872_v14, %v873_v0  ;;  %v821_v32 = vrot.slane %v2874_v7, 5  ;;  %v3194_v8 = vcombine.low %v2886_v13, %v2890_v15  ;;  %v1634_v6 = vshrl.u32 %v3190_v28, 16 }
  0x43   : > { %v3196_v33 = vcombine.low %v871_v39, %v874_v5  ;;  %v1637_v54 = vshll.u32 %v3190_v28, 16  ;;  %v3205_v43 = vcombine.low %v2902_v29, %v2911_v34  ;;  %v1647_v13 = vshrl.u32 %v3199_v42, 16 }
  0x44   : > { %v3209_v7 = vsel %vm2989_vm6, %v2222_v22, %v821_v32  ;;  %v823_v10 = vrot.slane %v821_v32, 4  ;;  %v1355_v15 = vsel %vm2989_vm6, %v2282_v21, %v1354_v24  ;;  %v1358_v29 = vsel %vm2989_vm6, %v1356_v27, %v1357_v26 }
  0x45   : > { %v1636_v50 = vrot.slane %v1634_v6, 4  ;;  %v1639_v41 = vrot.slane %v1637_v54, 5  ;;  %v1643_v45 = vshll.u32 %v3199_v42, 16  ;;  %v1649_v0 = vrot.slane %v1647_v13, 4  ;;  %v2781_v13 = vld [vmem:[%s3505_s1 + $0x78] sm:$0xff]  }
  0x46   : > { %v825_v34 = vsel %vm2989_vm6, %v823_v10, %v824_v63  ;;  %v3233_v11 = vcombine.low %v1355_v15, %v1358_v29  ;;  %v1653_v14 = vshll.u32 %v272_v4, 16  ;;  %v2328_v24 = vrot.slane %v3190_v28, 9 }
  0x47   : > { %2551 = vmatmul.mubr.msk.bf16.gmra.mrb[8].mxu0 %vm513_vm3, %v3185_v25  ;;  %v2234_v35 = vcombine.low %v3209_v7, %v825_v34  ;;  %v1640_v53 = vor.u32 %v1639_v41, %v1636_v50  ;;  %v1645_v63 = vrot.slane %v1643_v45, 5  ;;  %v1799_v5 = vrot.slane %v272_v4, 5  ;;  %v2786_v34 = vld [vmem:[%s3505_s1 + $0x88] sm:$0xff]  }
  0x48   : > { %2463 = vmatmul.mubr.msk.bf16.vlgmr.msra.gmra.mrb[0].mxu1 %vm513_vm3, %v3194_v8  ;;  %2554 = vmatprep.mubr.msk.bf16.mxu0 %vm513_vm3, %v3196_v33  ;;  %v3242_v21 = vcombine.low %v2920_v44, %v2928_v49  ;;  %v3246_v22 = vcombine.low %v2936_v59, %v2954_v23  ;;  %v1655_v27 = vrot.slane %v1653_v14, 5  ;;  %v3274_v60 = vcombine.low %v2972_v46, %v2985_v55  ;;  %v2785_v46 = vld [vmem:[%s3505_s1 + $0x80] sm:$0xff]  }
  0x49   : > { %2479 = vmatpush3.bf16.msra.mxu1 %v2977_v47  ;;  %2466 = vmatprep.mubr.msk.bf16.mxu1 %vm513_vm3, %v3205_v43  ;;  %v1641_v39 = vrot.slane %v1640_v53, 4  ;;  %v1796_v47 = vrot.slane %v3199_v42, 5  ;;  %v1650_v32 = vor.u32 %v1649_v0, %v1645_v63  ;;  %v3278_v10 = vcombine.low %v3023_v31, %v3038_v37  ;;  %v2784_v37 = vld [vmem:[%s3505_s1 + $0x38] sm:$0xff]  }
  0x4a   : > { %2480 = vmatprep.subr.bf16.mxu1 %v2775_v16  ;;  %v3297_v55 = vcombine.low %v3053_v52, %v3079_v19  ;;  %v2256_v31 = vcombine.low %v3163_v2, %v3152_v56  ;;  %v2302_v52 = vcombine.low %v3190_v28, %v3199_v42  ;;  %v1195_v19 = vshll.u32 %v3163_v2, 16 }
  0x4b   : > { %v1646_v26 = vsel %vm2906_vm2, %v1641_v39, %v1645_v63  ;;  %v3252_v6 = vsel %vm2989_vm6, %v2328_v24, %v1796_v47  ;;  %v1798_v54 = vrot.slane %v1796_v47, 4  ;;  %v1651_v44 = vrot.slane %v1650_v32, 4 }
  0x4c   : > { %v1205_v28 = vshrl.u32 %v3152_v56, 16  ;;  %v1197_v15 = vrot.slane %v1195_v19, 5 }
  0x4d   : > { %2481 = vmatpush3.bf16.msra.mxu1 %v2775_v16  ;;  %v3258_v49 = vsel %vm2989_vm6, %v1798_v54, %v1799_v5  ;;  %v1656_v23 = vsel %vm2906_vm2, %v1651_v44, %v1655_v27 }
  0x4e   : > { %2498 = vmatprep.subr.bf16.mxu1 %v2780_v12  ;;  %v2333_v59 = vcombine.low %v3252_v6, %v3258_v49  ;;  %v3270_v7 = vcombine.low %v1646_v26, %v1656_v23  ;;  %v1207_v29 = vrot.slane %v1205_v28, 4 }
  0x4f   : > { %2555 = vmatmul.mubr.msk.bf16.gmra.mrb[12].mxu0 %vm513_vm3, %v3233_v11 }
  0x50   : > { %2467 = vmatmul.mubr.msk.bf16.gmra.mrb[4].mxu1 %vm513_vm3, %v3242_v21  ;;  %2562 = vmatprep.mubr.msk.bf16.mxu0 %vm513_vm3, %v3205_v43 }
  0x51   : > { %2470 = vmatprep.mubr.msk.bf16.mxu1 %vm513_vm3, %v3246_v22 }
  0x57   : > { %2563 = vmatmul.mubr.msk.bf16.vlgmr.msra.gmra.mrb[0].mxu0 %vm513_vm3, %v3242_v21 }
  0x58   : > { %2471 = vmatmul.mubr.msk.bf16.gmra.mrb[8].mxu1 %vm513_vm3, %v3274_v60  ;;  %2579 = vmatpush3.bf16.msra.mxu0 %v3124_v17  ;;  %v1201_v17 = vshll.u32 %v3152_v56, 16 }
  0x59   : > { %2474 = vmatprep.mubr.msk.bf16.mxu1 %vm513_vm3, %v3278_v10  ;;  %2566 = vmatprep.mubr.msk.bf16.mxu0 %vm513_vm3, %v3246_v22 }
  0x5a   : > { %2580 = vmatprep.subr.bf16.mxu0 %v2781_v13  ;;  %v1203_v16 = vrot.slane %v1201_v17, 5 }
  0x5c   : > { %2581 = vmatpush3.bf16.msra.mxu0 %v2781_v13  ;;  %v1208_v56 = vor.u32 %v1207_v29, %v1203_v16 }
  0x5d   : > { %2598 = vmatprep.subr.bf16.mxu0 %v2785_v46 }
  0x5e   : > { %v1209_v50 = vrot.slane %v1208_v56, 4 }
  0x5f   : > { %2567 = vmatmul.mubr.msk.bf16.gmra.mrb[4].mxu0 %vm513_vm3, %v3274_v60 }
  0x60   : > { %2475 = vmatmul.mubr.msk.bf16.gmra.mrb[12].mxu1 %vm513_vm3, %v3297_v55  ;;  %2570 = vmatprep.mubr.msk.bf16.mxu0 %vm513_vm3, %v3278_v10 }
  0x61   : > { %2482 = vmatprep.mubr.msk.bf16.mxu1 %vm513_vm3, %v2234_v35 }
  0x67   : > { %2571 = vmatmul.mubr.msk.bf16.gmra.mrb[8].mxu0 %vm513_vm3, %v3297_v55 }
  0x68   : > { %2483 = vmatmul.mubr.msk.bf16.vlgmr.msra.gmra.mrb[0].mxu1 %vm513_vm3, %v3042_v40  ;;  %2574 = vmatprep.mubr.msk.bf16.mxu0 %vm513_vm3, %v2256_v31  ;;  %v1192_v40 = vshrl.u32 %v3163_v2, 16  ;;  %v1211_v2 = vshll.u32 %v3174_v18, 16 }
  0x69   : > { %2499 = vmatpush3.bf16.msra.mxu1 %v2780_v12  ;;  %2486 = vmatprep.mubr.msk.bf16.mxu1 %vm513_vm3, %v3074_v9 }
  0x6a   : > { %2500 = vmatprep.subr.bf16.mxu1 %v2784_v37  ;;  %v1194_v42 = vrot.slane %v1192_v40, 4  ;;  %v1213_v41 = vrot.slane %v1211_v2, 5 }
  0x6d   : > { %2501 = vmatpush3.bf16.msra.mxu1 %v2784_v37 }
  0x6e   : > { %2618 = vmatprep.subr.bf16.mxu1 %v2839_v1 }
  0x6f   : > { %2575 = vmatmul.mubr.msk.bf16.gmra.mrb[12].mxu0 %vm513_vm3, %v2302_v52 }
  0x70   : > { %2487 = vmatmul.mubr.msk.bf16.gmra.mrb[4].mxu1 %vm513_vm3, %v3110_v61  ;;  %2582 = vmatprep.mubr.msk.bf16.mxu0 %vm513_vm3, %v2979_v48  ;;  %v1198_v48 = vor.u32 %v1197_v15, %v1194_v42 }
  0x71   : > { %2490 = vmatprep.mubr.msk.bf16.mxu1 %vm513_vm3, %v3146_v51 }
  0x72   : > { %v1199_v4 = vrot.slane %v1198_v48, 4 }
  0x77   : > { %2583 = vmatmul.mubr.msk.bf16.vlgmr.msra.gmra.mrb[0].mxu0 %vm513_vm3, %v3016_v20  ;;  %v1204_v20 = vsel %vm2906_vm2, %v1199_v4, %v1203_v16 }
  0x78   : > { %2491 = vmatmul.mubr.msk.bf16.gmra.mrb[8].mxu1 %vm513_vm3, %v3156_v58  ;;  %2599 = vmatpush3.bf16.msra.mxu0 %v2785_v46 }
  0x79   : > { %2494 = vmatprep.mubr.msk.bf16.mxu1 %vm513_vm3, %v3185_v25  ;;  %2586 = vmatprep.mubr.msk.bf16.mxu0 %vm513_vm3, %v3040_v38  ;;  %v1214_v38 = vsel %vm2906_vm2, %v1209_v50, %v1213_v41 }
  0x7a   : > { %2600 = vmatprep.subr.bf16.mxu0 %v2786_v34  ;;  %v2271_v18 = vcombine.low %v1204_v20, %v1214_v38 }
  0x7c   : > { %2601 = vmatpush3.bf16.msra.mxu0 %v2786_v34 }
  0x7f   : > { %2587 = vmatmul.mubr.msk.bf16.gmra.mrb[4].mxu0 %vm513_vm3, %v3093_v36 }
  0x80   : > { %2495 = vmatmul.mubr.msk.bf16.gmra.mrb[12].mxu1 %vm513_vm3, %v3196_v33  ;;  %2590 = vmatprep.mubr.msk.bf16.mxu0 %vm513_vm3, %v3113_v62 }
  0x81   : > { %2502 = vmatprep.mubr.msk.bf16.mxu1 %vm513_vm3, %v3194_v8 }
  0x87   : > { %2591 = vmatmul.mubr.msk.bf16.gmra.mrb[8].mxu0 %vm513_vm3, %v3154_v57 }
  0x88   : > { %2503 = vmatmul.mubr.msk.bf16.vlgmr.msra.gmra.mrb[0].mxu1 %vm513_vm3, %v3205_v43  ;;  %2594 = vmatprep.mubr.msk.bf16.mxu0 %vm513_vm3, %v2271_v18 }
  0x89   : > { %2620 = vmatpush3.bf16.msra.mxu1 %v2839_v1  ;;  %2506 = vmatprep.mubr.msk.bf16.mxu1 %vm513_vm3, %v3242_v21 }
  0x8a   : > { %2619 = vmatprep.subr.bf16.mxu1 %v2850_v3 }
  0x8d   : > { %2621 = vmatpush3.bf16.msra.mxu1 %v2850_v3 }
  0x8f   : > { %2595 = vmatmul.mubr.msk.bf16.gmra.mrb[12].mxu0 %vm513_vm3, %v3270_v7 }
  0x90   : > { %2507 = vmatmul.mubr.msk.bf16.gmra.mrb[4].mxu1 %vm513_vm3, %v3246_v22  ;;  %2602 = vmatprep.mubr.msk.bf16.mxu0 %vm513_vm3, %v3074_v9 }
  0x91   : > { %2510 = vmatprep.mubr.msk.bf16.mxu1 %vm513_vm3, %v3274_v60 }
  0x97   : > { %2603 = vmatmul.mubr.msk.bf16.vlgmr.msra.gmra.mrb[0].mxu0 %vm513_vm3, %v3110_v61 }
  0x98   : > { %2511 = vmatmul.mubr.msk.bf16.gmra.mrb[8].mxu1 %vm513_vm3, %v3278_v10  ;;  %2606 = vmatprep.mubr.msk.bf16.mxu0 %vm513_vm3, %v3146_v51 }
  0x99   : > { %2514 = vmatprep.mubr.msk.bf16.mxu1 %vm513_vm3, %v3297_v55 }
  0x9f   : > { %2607 = vmatmul.mubr.msk.bf16.gmra.mrb[4].mxu0 %vm513_vm3, %v3156_v58 }
  0xa0   : > { %2515 = vmatmul.mubr.msk.bf16.gmra.mrb[12].mxu1 %vm513_vm3, %v2256_v31  ;;  %2610 = vmatprep.mubr.msk.bf16.mxu0 %vm513_vm3, %v3185_v25 }
  0xa1   : > { %2530 = vmatprep.mubr.msk.bf16.mxu1 %vm513_vm3, %v3093_v36 }
  0xa7   : > { %2611 = vmatmul.mubr.msk.bf16.gmra.mrb[8].mxu0 %vm513_vm3, %v3196_v33 }
  0xa8   : > { %2531 = vmatmul.mubr.msk.bf16.vlgmr.msra.gmra.mrb[8].mxu1 %vm513_vm3, %v3113_v62  ;;  %2614 = vmatprep.mubr.msk.bf16.mxu0 %vm513_vm3, %v3233_v11 }
  0xa9   : > { %2534 = vmatprep.mubr.msk.bf16.mxu1 %vm513_vm3, %v3154_v57  ;;  %v3406_v57 = vld [vmem:[%s3506_s2] ss:$0 sm:$0xff] }
  0xaf   : > { %2615 = vmatmul.mubr.msk.bf16.gmra.mrb[12].mxu0 %vm513_vm3, %v2333_v59 }
  0xb0   : > { %2535 = vmatmul.mubr.msk.bf16.gmra.mrb[12].mxu1 %vm513_vm3, %v2271_v18 }
 0x15b   : > { %v2504_v1 = vpop.f32.mrb[0].mxu1 }
 0x15c   : > { %v1112_v3 = vpop.f32.mrb[1].mxu1 }
 0x15d   : > { %v2505_v30 = vpop.f32.mrb[2].mxu1 }
 0x15e   : > { %v1115_v9 = vpop.f32.mrb[3].mxu1 }
 0x163   : > { %v2508_v36 = vpop.f32.mrb[4].mxu1 }
 0x164   : > { %v1128_v61 = vpop.f32.mrb[5].mxu1 }
 0x165   : > { %v2509_v62 = vpop.f32.mrb[6].mxu1 }
 0x166   : > { %v1131_v51 = vpop.f32.mrb[7].mxu1 }
 0x16a   : > { %v2604_v58 = vpop.f32.mrb[0].mxu0 }
 0x16b   : > { %v2622_v25 = vadd.f32 %v2604_v58, %v2504_v1  ;;  %v1858_v8 = vpop.f32.mrb[1].mxu0 }
 0x16c   : > { %v2623_v33 = vadd.f32 %v1858_v8, %v1112_v3  ;;  %v2605_v43 = vpop.f32.mrb[2].mxu0 }
 0x16d   : > { %v1946_v35 = vadd.f32 %v2622_v25, %v3406_v57  ;;  %v2624_v53 = vadd.f32 %v2605_v43, %v2505_v30  ;;  %v1861_v45 = vpop.f32.mrb[3].mxu0 }
 0x16e   : > { %v1944_v0 = vadd.f32 %v2623_v33, %v3406_v57  ;;  %v2625_v11 = vadd.f32 %v1861_v45, %v1115_v9 }
 0x16f   : > { %1962 = vst.msk [vmem:[%s3411_s17 + $0x10] sm:$0xff] %vm513_vm3, %v1946_v35  ;;  %v1947_v12 = vadd.f32 %v2624_v53, %v3406_v57  ;;  %v2017_v39 = vmul.f32 %v1946_v35, %v1946_v35  ;;  %v1979_v6 = vsel %vm513_vm3, %v1946_v35, 0.0 }
 0x170   : > { %1960 = vst.msk [vmem:[%s3411_s17] sm:$0xff] %vm513_vm3, %v1944_v0  ;;  %v2015_v14 = vmul.f32 %v1944_v0, %v1944_v0  ;;  %v1945_v24 = vadd.f32 %v2625_v11, %v3406_v57  ;;  %v1976_v63 = vsel %vm513_vm3, %v1944_v0, 0.0 }
 0x171   : > { %1963 = vst.msk [vmem:[%s3411_s17 + $0x18] sm:$0xff] %vm513_vm3, %v1947_v12  ;;  %v2018_v22 = vmul.f32 %v1947_v12, %v1947_v12  ;;  %v2034_v46 = vsel %vm513_vm3, %v2017_v39, 0.0  ;;  %v1981_v55 = vsel %vm513_vm3, %v1947_v12, 0.0 }
 0x172   : > { %1961 = vst.msk [vmem:[%s3411_s17 + $0x8] sm:$0xff] %vm513_vm3, %v1945_v24  ;;  %v1977_v47 = vsel %vm513_vm3, %v1945_v24, 0.0  ;;  %v2016_v5 = vmul.f32 %v1945_v24, %v1945_v24  ;;  %v2608_v21 = vpop.f32.mrb[4].mxu0  ;;  %v2031_v54 = vsel %vm513_vm3, %v2015_v14, 0.0 }
 0x173   : > { %v1978_v27 = vadd.f32 %v1977_v47, %v1976_v63  ;;  %v2626_v26 = vadd.f32 %v2608_v21, %v2508_v36  ;;  %v1874_v32 = vpop.f32.mrb[5].mxu0  ;;  %v2036_v52 = vsel %vm513_vm3, %v2018_v22, 0.0 }
 0x174   : > { %v2032_v44 = vsel %vm513_vm3, %v2016_v5, 0.0  ;;  %v2627_v49 = vadd.f32 %v1874_v32, %v1128_v61  ;;  %v2609_v59 = vpop.f32.mrb[6].mxu0 }
 0x175   : > { %v1980_v23 = vadd.f32 %v1979_v6, %v1978_v27  ;;  %v2033_v7 = vadd.f32 %v2032_v44, %v2031_v54  ;;  %v1950_v60 = vadd.f32 %v2626_v26, %v3406_v57  ;;  %v2628_v10 = vadd.f32 %v2609_v59, %v2509_v62  ;;  %v1877_v13 = vpop.f32.mrb[7].mxu0 }
 0x176   : > { %v1948_v31 = vadd.f32 %v2627_v49, %v3406_v57  ;;  %v2629_v37 = vadd.f32 %v1877_v13, %v1131_v51 }
 0x177   : > { %v2035_v40 = vadd.f32 %v2034_v46, %v2033_v7  ;;  %1966 = vst.msk [vmem:[%s3411_s17 + $0x30] sm:$0xff] %vm513_vm3, %v1950_v60  ;;  %v1982_v19 = vadd.f32 %v1981_v55, %v1980_v23  ;;  %v1951_v42 = vadd.f32 %v2628_v10, %v3406_v57  ;;  %v2021_v2 = vmul.f32 %v1950_v60, %v1950_v60 }
 0x178   : > { %1964 = vst.msk [vmem:[%s3411_s17 + $0x20] sm:$0xff] %vm513_vm3, %v1948_v31  ;;  %v1983_v17 = vsel %vm513_vm3, %v1948_v31, 0.0  ;;  %v2019_v28 = vmul.f32 %v1948_v31, %v1948_v31  ;;  %v1949_v15 = vadd.f32 %v2629_v37, %v3406_v57  ;;  %v1987_v18 = vsel %vm513_vm3, %v1950_v60, 0.0 }
 0x179   : > { %v1984_v16 = vadd.f32 %v1983_v17, %v1982_v19  ;;  %v2037_v29 = vadd.f32 %v2036_v52, %v2035_v40  ;;  %1967 = vst.msk [vmem:[%s3411_s17 + $0x38] sm:$0xff] %vm513_vm3, %v1951_v42  ;;  %v2022_v9 = vmul.f32 %v1951_v42, %v1951_v42  ;;  %v1989_v25 = vsel %vm513_vm3, %v1951_v42, 0.0 }
 0x17a   : > { %v2038_v34 = vsel %vm513_vm3, %v2019_v28, 0.0  ;;  %1965 = vst.msk [vmem:[%s3411_s17 + $0x28] sm:$0xff] %vm513_vm3, %v1949_v15  ;;  %v1985_v48 = vsel %vm513_vm3, %v1949_v15, 0.0  ;;  %v2612_v56 = vpop.f32.mrb[8].mxu0  ;;  %v2020_v41 = vmul.f32 %v1949_v15, %v1949_v15  ;;  %v2042_v53 = vsel %vm513_vm3, %v2021_v2, 0.0 }
 0x17b   : > { %v2039_v4 = vadd.f32 %v2038_v34, %v2037_v29  ;;  %v1986_v50 = vadd.f32 %v1985_v48, %v1984_v16  ;;  %v2532_v20 = vpop.f32.mrb[8].mxu1  ;;  %v1890_v38 = vpop.f32.mrb[9].mxu0  ;;  %v2044_v24 = vsel %vm513_vm3, %v2022_v9, 0.0 }
 0x17c   : > { %v2630_v1 = vadd.f32 %v2612_v56, %v2532_v20  ;;  %v1304_v3 = vpop.f32.mrb[9].mxu1  ;;  %v2613_v30 = vpop.f32.mrb[10].mxu0  ;;  %v2040_v61 = vsel %vm513_vm3, %v2020_v41, 0.0 }
 0x17d   : > { %v1988_v36 = vadd.f32 %v1987_v18, %v1986_v50  ;;  %v2631_v62 = vadd.f32 %v1890_v38, %v1304_v3  ;;  %v2533_v51 = vpop.f32.mrb[10].mxu1  ;;  %v1893_v58 = vpop.f32.mrb[11].mxu0  ;;  %v2041_v8 = vadd.f32 %v2040_v61, %v2039_v4 }
 0x17e   : > { %v1954_v33 = vadd.f32 %v2630_v1, %v3406_v57  ;;  %v2632_v43 = vadd.f32 %v2613_v30, %v2533_v51  ;;  %v1307_v35 = vpop.f32.mrb[11].mxu1 }
 0x17f   : > { %v1952_v45 = vadd.f32 %v2631_v62, %v3406_v57  ;;  %v1990_v0 = vadd.f32 %v1989_v25, %v1988_v36  ;;  %v2633_v11 = vadd.f32 %v1893_v58, %v1307_v35  ;;  %v2043_v12 = vadd.f32 %v2042_v53, %v2041_v8 }
 0x180   : > { %1970 = vst.msk [vmem:[%s3411_s17 + $0x50] sm:$0xff] %vm513_vm3, %v1954_v33  ;;  %v1955_v14 = vadd.f32 %v2632_v43, %v3406_v57  ;;  %v2025_v27 = vmul.f32 %v1954_v33, %v1954_v33  ;;  %v1995_v13 = vsel %vm513_vm3, %v1954_v33, 0.0 }
 0x181   : > { %1968 = vst.msk [vmem:[%s3411_s17 + $0x40] sm:$0xff] %vm513_vm3, %v1952_v45  ;;  %v1991_v39 = vsel %vm513_vm3, %v1952_v45, 0.0  ;;  %v2023_v63 = vmul.f32 %v1952_v45, %v1952_v45  ;;  %v1953_v47 = vadd.f32 %v2633_v11, %v3406_v57  ;;  %v2045_v21 = vadd.f32 %v2044_v24, %v2043_v12 }
 0x182   : > { %v1992_v5 = vadd.f32 %v1991_v39, %v1990_v0  ;;  %1971 = vst.msk [vmem:[%s3411_s17 + $0x58] sm:$0xff] %vm513_vm3, %v1955_v14  ;;  %v2616_v22 = vpop.f32.mrb[12].mxu0  ;;  %v2026_v59 = vmul.f32 %v1955_v14, %v1955_v14  ;;  %v2050_v42 = vsel %vm513_vm3, %v2025_v27, 0.0  ;;  %v1997_v15 = vsel %vm513_vm3, %v1955_v14, 0.0 }
 0x183   : > { %v2046_v26 = vsel %vm513_vm3, %v2023_v63, 0.0  ;;  %1969 = vst.msk [vmem:[%s3411_s17 + $0x48] sm:$0xff] %vm513_vm3, %v1953_v47  ;;  %v1993_v32 = vsel %vm513_vm3, %v1953_v47, 0.0  ;;  %v2024_v6 = vmul.f32 %v1953_v47, %v1953_v47  ;;  %v2536_v54 = vpop.f32.mrb[12].mxu1  ;;  %v1906_v44 = vpop.f32.mrb[13].mxu0 }
 0x184   : > { %v2047_v49 = vadd.f32 %v2046_v26, %v2045_v21  ;;  %v1994_v23 = vadd.f32 %v1993_v32, %v1992_v5  ;;  %v2634_v7 = vadd.f32 %v2616_v22, %v2536_v54  ;;  %v1320_v60 = vpop.f32.mrb[13].mxu1  ;;  %v2617_v10 = vpop.f32.mrb[14].mxu0  ;;  %v2052_v34 = vsel %vm513_vm3, %v2026_v59, 0.0 }
 0x185   : > { %v2048_v46 = vsel %vm513_vm3, %v2024_v6, 0.0  ;;  %v2635_v55 = vadd.f32 %v1906_v44, %v1320_v60  ;;  %v2537_v31 = vpop.f32.mrb[14].mxu1  ;;  %v1909_v37 = vpop.f32.mrb[15].mxu0 }
 0x186   : > { %v1996_v52 = vadd.f32 %v1995_v13, %v1994_v23  ;;  %v2049_v40 = vadd.f32 %v2048_v46, %v2047_v49  ;;  %v1958_v19 = vadd.f32 %v2634_v7, %v3406_v57  ;;  %v2636_v17 = vadd.f32 %v2617_v10, %v2537_v31  ;;  %v1323_v28 = vpop.f32.mrb[15].mxu1 }
 0x187   : > { %v1956_v16 = vadd.f32 %v2635_v55, %v3406_v57  ;;  %v2637_v29 = vadd.f32 %v1909_v37, %v1323_v28 }
 0x188   : > { %v2051_v48 = vadd.f32 %v2050_v42, %v2049_v40  ;;  %1974 = vst.msk [vmem:[%s3411_s17 + $0x70] sm:$0xff] %vm513_vm3, %v1958_v19  ;;  %v1998_v56 = vadd.f32 %v1997_v15, %v1996_v52  ;;  %v1959_v50 = vadd.f32 %v2636_v17, %v3406_v57  ;;  %v2029_v3 = vmul.f32 %v1958_v19, %v1958_v19 }
 0x189   : > { %1972 = vst.msk [vmem:[%s3411_s17 + $0x60] sm:$0xff] %vm513_vm3, %v1956_v16  ;;  %v1999_v2 = vsel %vm513_vm3, %v1956_v16, 0.0  ;;  %v2027_v4 = vmul.f32 %v1956_v16, %v1956_v16  ;;  %v1957_v41 = vadd.f32 %v2637_v29, %v3406_v57  ;;  %v2003_v61 = vsel %vm513_vm3, %v1958_v19, 0.0 }
 0x18a   : > { %v2000_v20 = vadd.f32 %v1999_v2, %v1998_v56  ;;  %v2053_v38 = vadd.f32 %v2052_v34, %v2051_v48  ;;  %1975 = vst.msk [vmem:[%s3411_s17 + $0x78] sm:$0xff] %vm513_vm3, %v1959_v50  ;;  %v2030_v62 = vmul.f32 %v1959_v50, %v1959_v50  ;;  %v2005_v58 = vsel %vm513_vm3, %v1959_v50, 0.0 }
 0x18b   : > { %v2054_v18 = vsel %vm513_vm3, %v2027_v4, 0.0  ;;  %1973 = vst.msk [vmem:[%s3411_s17 + $0x68] sm:$0xff] %vm513_vm3, %v1957_v41  ;;  %v2001_v1 = vsel %vm513_vm3, %v1957_v41, 0.0  ;;  %v2028_v36 = vmul.f32 %v1957_v41, %v1957_v41  ;;  %v2058_v8 = vsel %vm513_vm3, %v2029_v3, 0.0 }
 0x18c   : > { %v2055_v30 = vadd.f32 %v2054_v18, %v2053_v38  ;;  %v2002_v9 = vadd.f32 %v2001_v1, %v2000_v20  ;;  %v2060_v35 = vsel %vm513_vm3, %v2030_v62, 0.0 }
 0x18d   : > { %v2056_v57 = vsel %vm513_vm3, %v2028_v36, 0.0 }
 0x18e   : > { %v2004_v51 = vadd.f32 %v2003_v61, %v2002_v9  ;;  %v2057_v25 = vadd.f32 %v2056_v57, %v2055_v30 }
 0x190   : > { %v2006_v33 = vadd.f32 %v2005_v58, %v2004_v51  ;;  %v2059_v43 = vadd.f32 %v2058_v8, %v2057_v25 }
 0x192   : > { %v2007_v53 = vrot.slane %v2006_v33, 4  ;;  %v2061_v45 = vadd.f32 %v2060_v35, %v2059_v43 }
 0x194   : > { %v2008_v0 = vadd.f32 %v2007_v53, %v2006_v33  ;;  %v2062_v11 = vrot.slane %v2061_v45, 4 }
 0x196   : > { %v2009_v12 = vrot.slane %v2008_v0, 2  ;;  %v2063_v14 = vadd.f32 %v2062_v11, %v2061_v45 }
 0x198   : > { %v2010_v24 = vadd.f32 %v2009_v12, %v2008_v0  ;;  %v2064_v39 = vrot.slane %v2063_v14, 2 }
 0x19a   : > { %v2011_v63 = vrot.slane %v2010_v24, 1  ;;  %v2065_v47 = vadd.f32 %v2064_v39, %v2063_v14 }
 0x19c   : > { %v2012_v5 = vadd.f32 %v2011_v63, %v2010_v24  ;;  %v2066_v21 = vrot.slane %v2065_v47, 1 }
 0x19e   : > { %2014 = vst.msk [vmem:[%s238_s22] sm:$0x1] %vm2013_vm7, %v2012_v5  ;;  %v2067_v22 = vadd.f32 %v2066_v21, %v2065_v47 }
 0x1a0   : > { %2068 = vst.msk [vmem:[%s241_s25] sm:$0x1] %vm2013_vm7, %v2067_v22 }
 0x1a1 PF: > { %s16_s18 = sadd.s32 1, %s2793_s18  }
 0x1a2   : > { %p13_p4 = scmp.ge.s32.totalorder %s16_s18, 6  }
 0x1a4   :  { %15 = sbr.rel (!%p13_p4) target bundleno = 1 (0x1), region = 94 }

</bundles_post_ra>
